<compile_context>
chip_gen: v7x
topology: tpu7x:2x2x1
jax: 0.10.0
libtpu: 0.0.40
codegen_flags: <defaults>
</compile_context>

<pallas_src>
import jax
import jax.numpy as jnp
from jax.experimental import pallas as pl
from jax.experimental.pallas import tpu as pltpu


def _make_link_predictor_kernel(num_layers: int, tile_m: int):
    """Kernel body for a fixed layer count.

    Ref order:
      x_i, x_j,
      (W_0, b_0, ..., W_{L-2}, b_{L-2}),   # hidden layers, W bf16 / b f32
      w_last (1, hid) bf16, b_last (1, 1) f32 in SMEM,
      out (1, 1, tile_m) f32
    """
    n_hidden = num_layers - 1

    def kernel(*refs):
        xi_ref, xj_ref = refs[0], refs[1]
        w_last_ref = refs[2 + 2 * n_hidden]
        b_last_ref = refs[3 + 2 * n_hidden]
        out_ref = refs[-1]

        # Elementwise product in the streaming dtype (bf16 at-rest stays bf16,
        # f32 at-rest stays f32); round to bf16 only for the MXU operand.
        prod = xi_ref[...] * xj_ref[...]
        h = prod.astype(jnp.bfloat16)

        # Hidden layers: Linear -> ReLU (dropout p=0.0 -> identity).
        for layer in range(n_hidden):
            w = refs[2 + 2 * layer][...]          # (d_in, d_out) bf16, resident
            b = refs[3 + 2 * layer][...]          # (1, d_out) f32, resident
            a = jnp.dot(h, w, preferred_element_type=jnp.float32) + b
            a = jnp.maximum(a, 0.0)               # ReLU
            h = a.astype(jnp.bfloat16)

        # Final layer (out_dim == 1): logits[0, m] = sum_k w_last[k] * h[m, k],
        # computed as (1, hid) contracted with (tile_m, hid) on the MXU so the
        # result is a lane-dense (1, tile_m) row (no [*,1] masked stores).
        w_row = w_last_ref[...]                   # (1, hid) bf16
        logits = jax.lax.dot_general(
            w_row, h,
            dimension_numbers=(((1,), (1,)), ((), ())),
            preferred_element_type=jnp.float32,
        )                                         # (1, tile_m) f32
        logits = logits + b_last_ref[0, 0]        # scalar bias from SMEM

        out_ref[...] = (
            jax.nn.sigmoid(logits).reshape(1, 1, tile_m).astype(out_ref.dtype)
        )

    return kernel


def _round_up(x: int, m: int) -> int:
    return ((x + m - 1) // m) * m


def link_predictor_forward(x_i, x_j, weights, biases, *, tile_m: int = 8192):
    """LinkPredictor forward pass as one row-tiled Pallas kernel.

    x_i, x_j : [N, in_dim]  (streamed in their at-rest dtype: bf16 or f32)
    weights  : list of [d_in, d_out] arrays (pre-transposed vs PyTorch)
    biases   : list of [1, d_out] arrays
    returns  : [N, 1] float32 sigmoid probabilities
    """
    assert len(weights) == len(biases) and len(weights) >= 2
    num_layers = len(weights)
    n, in_dim = x_i.shape
    assert x_j.shape == (n, in_dim)
    out_dim = weights[-1].shape[-1]
    # The lane-dense output path assumes a scalar link score per edge.
    assert out_dim == 1, "LinkPredictor kernel assumes out_dim == 1"

    # Cap the tile at the (lane-aligned) row count so tiny inputs don't blow up
    # VMEM; keep it a multiple of 128 so the lane-dense output stays unmasked.
    tile_m = max(128, min(tile_m, _round_up(n, 128)))
    num_tiles = pl.cdiv(n, tile_m)   # last block may be partial: no host-side pad,
                                     # garbage rows in that block are sliced off below.

    in_specs = [
        pl.BlockSpec((tile_m, in_dim), lambda i: (i, 0)),
        pl.BlockSpec((tile_m, in_dim), lambda i: (i, 0)),
    ]

    hidden_params = []
    for l in range(num_layers - 1):
        w = weights[l].astype(jnp.bfloat16)                 # (d_in, d_out)
        b = biases[l].reshape(1, -1).astype(jnp.float32)    # (1, d_out)
        hidden_params.extend([w, b])
        # Constant block index -> fetched once, stays VMEM-resident across steps.
        in_specs.append(pl.BlockSpec(w.shape, lambda i: (0, 0)))
        in_specs.append(pl.BlockSpec(b.shape, lambda i: (0, 0)))

    w_last = weights[-1].reshape(1, -1).astype(jnp.bfloat16)   # (1, hid)
    b_last = biases[-1].reshape(1, 1).astype(jnp.float32)      # (1, 1) scalar
    in_specs.append(pl.BlockSpec(w_last.shape, lambda i: (0, 0)))
    in_specs.append(pl.BlockSpec(memory_space=pltpu.MemorySpace.SMEM))

    # Lane-dense output slab: one (1, tile_m) row per grid step.
    out_shape = jax.ShapeDtypeStruct((num_tiles, 1, tile_m), jnp.float32)
    out_spec = pl.BlockSpec((1, 1, tile_m), lambda i: (i, 0, 0))

    kernel = _make_link_predictor_kernel(num_layers, tile_m)

    out = pl.pallas_call(
        kernel,
        grid=(num_tiles,),
        in_specs=in_specs,
        out_specs=out_spec,
        out_shape=out_shape,
        compiler_params=pltpu.CompilerParams(
            dimension_semantics=("parallel",),   # megacore / both TCs on v7x
            vmem_limit_bytes=48 * 1024 * 1024,   # headroom for tile_m up to ~8-16K
        ),
    )(x_i, x_j, *hidden_params, w_last, b_last)

    # Flatten the slab (row-major: tile t, lane m -> row t*tile_m + m) and drop
    # the out-of-range rows of the final partial block.
    return out.reshape(-1)[:n].reshape(n, 1)


def init_link_predictor_params(key, in_dim, hid_dim, out_dim, num_layers):
    """Deterministic init mirroring torch.nn.Linear default U(-1/sqrt(fan_in), +)."""
    dims = [in_dim] + [hid_dim] * (num_layers - 1) + [out_dim]
    weights, biases = [], []
    for layer in range(num_layers):
        d_in, d_out = dims[layer], dims[layer + 1]
        key, kw, kb = jax.random.split(key, 3)
        bound = 1.0 / (d_in ** 0.5)
        # stored as [d_in, d_out] (transpose of PyTorch's [d_out, d_in])
        w = jax.random.uniform(kw, (d_in, d_out), jnp.float32, -bound, bound)
        b = jax.random.uniform(kb, (1, d_out), jnp.float32, -bound, bound)
        weights.append(w)
        biases.append(b)
    return weights, biases


def reference_forward(x_i, x_j, weights, biases):
    """Plain-JAX f32 reference, semantically identical to the PyTorch module."""
    x = x_i.astype(jnp.float32) * x_j.astype(jnp.float32)
    for layer, (w, b) in enumerate(zip(weights, biases)):
        x = x @ w + b.reshape(1, -1)
        if layer < len(weights) - 1:
            x = jnp.maximum(x, 0.0)   # ReLU; dropout p=0.0 -> identity
    return jax.nn.sigmoid(x)


if __name__ == "__main__":
    # Small but multi-tile + ragged: N not a multiple of TILE_M exercises the
    # no-pad partial-boundary-block path and a 2-step grid.
    N, IN_DIM, HID_DIM, OUT_DIM, NUM_LAYERS = 2500, 32, 32, 1, 3
    TILE_M = 2048   # production default is 8192; small here so the demo is multi-tile

    key = jax.random.PRNGKey(0)
    key, k_i, k_j = jax.random.split(key, 3)
    # Edge features stored at-rest in bf16 (halves the dominant HBM read);
    # the kernel would equally accept f32 inputs without a wrapper-side cast.
    x_i = jax.random.normal(k_i, (N, IN_DIM), jnp.float32).astype(jnp.bfloat16)
    x_j = jax.random.normal(k_j, (N, IN_DIM), jnp.float32).astype(jnp.bfloat16)

    weights, biases = init_link_predictor_params(
        key, IN_DIM, HID_DIM, OUT_DIM, NUM_LAYERS
    )

    out = link_predictor_forward(x_i, x_j, weights, biases, tile_m=TILE_M)
    out = jax.block_until_ready(out)

    ref = reference_forward(x_i, x_j, weights, biases)
    assert out.shape == (N, OUT_DIM)
    max_err = float(jnp.max(jnp.abs(out - ref)))
    # bf16 matmul inputs vs f32 reference: expected error ~1e-3 on sigmoid outputs.
    assert max_err < 2e-2, f"mismatch vs reference (max abs err {max_err})"

    print("KERNEL_OK")
</pallas_src>

<mosaic_0001>
module attributes {stable_mosaic.version = 11 : i64} {
  func.func @kernel(%arg0: i32, %arg1: memref<2048x32xbf16, #tpu.memory_space<vmem>>, %arg2: memref<2048x32xbf16, #tpu.memory_space<vmem>>, %arg3: memref<32x32xbf16, #tpu.memory_space<vmem>>, %arg4: memref<1x32xf32, #tpu.memory_space<vmem>>, %arg5: memref<32x32xbf16, #tpu.memory_space<vmem>>, %arg6: memref<1x32xf32, #tpu.memory_space<vmem>>, %arg7: memref<1x32xbf16, #tpu.memory_space<vmem>>, %arg8: memref<1x1xf32, #tpu.memory_space<smem>>, %arg9: memref<1x1x2048xf32, #tpu.memory_space<vmem>>) attributes {dimension_semantics = [#tpu.dimension_semantics<parallel>], iteration_bounds = array<i64: 2>, scalar_prefetch = 0 : i64, scratch_operands = 0 : i64, tpu.core_type = #tpu.core_type<tc>, window_params = [{transform_indices = @transform_0, window_bounds = array<i64: 2048, 32>}, {transform_indices = @transform_1, window_bounds = array<i64: 2048, 32>}, {pipeline_mode = #tpu.pipeline_mode<synchronous>, transform_indices = @transform_2, window_bounds = array<i64: 32, 32>}, {pipeline_mode = #tpu.pipeline_mode<synchronous>, transform_indices = @transform_3, window_bounds = array<i64: 1, 32>}, {pipeline_mode = #tpu.pipeline_mode<synchronous>, transform_indices = @transform_4, window_bounds = array<i64: 32, 32>}, {pipeline_mode = #tpu.pipeline_mode<synchronous>, transform_indices = @transform_5, window_bounds = array<i64: 1, 32>}, {pipeline_mode = #tpu.pipeline_mode<synchronous>, transform_indices = @transform_6, window_bounds = array<i64: 1, 32>}, {transform_indices = @transform_7, window_bounds = array<i64: 1, 1>}, {transform_indices = @transform_8, window_bounds = array<i64: 1, 1, 2048>}]} {
    %c0 = arith.constant 0 : index
    %c0_0 = arith.constant 0 : index
    %0 = vector.load %arg1[%c0, %c0_0] : memref<2048x32xbf16, #tpu.memory_space<vmem>>, vector<2048x32xbf16>
    %c0_1 = arith.constant 0 : index
    %c0_2 = arith.constant 0 : index
    %1 = vector.load %arg2[%c0_1, %c0_2] : memref<2048x32xbf16, #tpu.memory_space<vmem>>, vector<2048x32xbf16>
    %2 = arith.mulf %0, %1 : vector<2048x32xbf16>
    %c0_3 = arith.constant 0 : index
    %c0_4 = arith.constant 0 : index
    %3 = vector.load %arg3[%c0_3, %c0_4] : memref<32x32xbf16, #tpu.memory_space<vmem>>, vector<32x32xbf16>
    %c0_5 = arith.constant 0 : index
    %c0_6 = arith.constant 0 : index
    %4 = vector.load %arg4[%c0_5, %c0_6] : memref<1x32xf32, #tpu.memory_space<vmem>>, vector<1x32xf32>
    %cst = arith.constant dense<0.000000e+00> : vector<2048x32xf32>
    %5 = tpu.matmul %2, %3, %cst {dimension_numbers = #tpu.dot_dimension_numbers<[1], [0], [0], [1], [0, 0, 1, 1], [], []>} : vector<2048x32xbf16>, vector<32x32xbf16>, vector<2048x32xf32> -> vector<2048x32xf32>
    %6 = vector.broadcast %4 : vector<1x32xf32> to vector<2048x32xf32>
    %7 = arith.addf %5, %6 : vector<2048x32xf32>
    %cst_7 = arith.constant 0.000000e+00 : f32
    %8 = vector.broadcast %cst_7 : f32 to vector<2048x32xf32>
    %9 = arith.maximumf %7, %8 : vector<2048x32xf32>
    %10 = arith.truncf %9 : vector<2048x32xf32> to vector<2048x32xbf16>
    %c0_8 = arith.constant 0 : index
    %c0_9 = arith.constant 0 : index
    %11 = vector.load %arg5[%c0_8, %c0_9] : memref<32x32xbf16, #tpu.memory_space<vmem>>, vector<32x32xbf16>
    %c0_10 = arith.constant 0 : index
    %c0_11 = arith.constant 0 : index
    %12 = vector.load %arg6[%c0_10, %c0_11] : memref<1x32xf32, #tpu.memory_space<vmem>>, vector<1x32xf32>
    %cst_12 = arith.constant dense<0.000000e+00> : vector<2048x32xf32>
    %13 = tpu.matmul %10, %11, %cst_12 {dimension_numbers = #tpu.dot_dimension_numbers<[1], [0], [0], [1], [0, 0, 1, 1], [], []>} : vector<2048x32xbf16>, vector<32x32xbf16>, vector<2048x32xf32> -> vector<2048x32xf32>
    %14 = vector.broadcast %12 : vector<1x32xf32> to vector<2048x32xf32>
    %15 = arith.addf %13, %14 : vector<2048x32xf32>
    %cst_13 = arith.constant 0.000000e+00 : f32
    %16 = vector.broadcast %cst_13 : f32 to vector<2048x32xf32>
    %17 = arith.maximumf %15, %16 : vector<2048x32xf32>
    %18 = arith.truncf %17 : vector<2048x32xf32> to vector<2048x32xbf16>
    %c0_14 = arith.constant 0 : index
    %c0_15 = arith.constant 0 : index
    %19 = vector.load %arg7[%c0_14, %c0_15] : memref<1x32xbf16, #tpu.memory_space<vmem>>, vector<1x32xbf16>
    %cst_16 = arith.constant dense<0.000000e+00> : vector<1x2048xf32>
    %20 = tpu.matmul %19, %18, %cst_16 {dimension_numbers = #tpu.dot_dimension_numbers<[1], [1], [0], [0], [0, 0, 1, 0], [], []>} : vector<1x32xbf16>, vector<2048x32xbf16>, vector<1x2048xf32> -> vector<1x2048xf32>
    %c0_17 = arith.constant 0 : index
    %c0_18 = arith.constant 0 : index
    %21 = memref.load %arg8[%c0_17, %c0_18] : memref<1x1xf32, #tpu.memory_space<smem>>
    %22 = vector.broadcast %21 : f32 to vector<1x2048xf32>
    %23 = arith.addf %20, %22 : vector<1x2048xf32>
    %24 = arith.negf %23 : vector<1x2048xf32>
    %25 = math.exp %24 : vector<1x2048xf32>
    %cst_19 = arith.constant 1.000000e+00 : f32
    %26 = vector.broadcast %cst_19 : f32 to vector<1x2048xf32>
    %27 = arith.addf %26, %25 : vector<1x2048xf32>
    %28 = arith.divf %26, %27 : vector<1x2048xf32>
    %29 = vector.shape_cast %28 : vector<1x2048xf32> to vector<1x1x2048xf32>
    %c0_20 = arith.constant 0 : index
    %c0_21 = arith.constant 0 : index
    %c0_22 = arith.constant 0 : index
    %30 = vector.load %arg9[%c0_20, %c0_21, %c0_22] : memref<1x1x2048xf32, #tpu.memory_space<vmem>>, vector<1x1x2048xf32>
    tpu.vector_store %arg9[%c0_20, %c0_21, %c0_22], %29 {strides = array<i32>} : memref<1x1x2048xf32, #tpu.memory_space<vmem>>, vector<1x1x2048xf32>,
    return
  }
  func.func @transform_0(%arg0: i32) -> (i32, i32) {
    %c0_i32 = arith.constant 0 : i32
    %c0_i32_0 = arith.constant 0 : i32
    return %arg0, %c0_i32 : i32, i32
  }
  func.func @transform_1(%arg0: i32) -> (i32, i32) {
    %c0_i32 = arith.constant 0 : i32
    %c0_i32_0 = arith.constant 0 : i32
    return %arg0, %c0_i32 : i32, i32
  }
  func.func @transform_2(%arg0: i32) -> (i32, i32) {
    %c0_i32 = arith.constant 0 : i32
    %c0_i32_0 = arith.constant 0 : i32
    %c0_i32_1 = arith.constant 0 : i32
    return %c0_i32, %c0_i32_0 : i32, i32
  }
  func.func @transform_3(%arg0: i32) -> (i32, i32) {
    %c0_i32 = arith.constant 0 : i32
    %c0_i32_0 = arith.constant 0 : i32
    %c0_i32_1 = arith.constant 0 : i32
    return %c0_i32, %c0_i32_0 : i32, i32
  }
  func.func @transform_4(%arg0: i32) -> (i32, i32) {
    %c0_i32 = arith.constant 0 : i32
    %c0_i32_0 = arith.constant 0 : i32
    %c0_i32_1 = arith.constant 0 : i32
    return %c0_i32, %c0_i32_0 : i32, i32
  }
  func.func @transform_5(%arg0: i32) -> (i32, i32) {
    %c0_i32 = arith.constant 0 : i32
    %c0_i32_0 = arith.constant 0 : i32
    %c0_i32_1 = arith.constant 0 : i32
    return %c0_i32, %c0_i32_0 : i32, i32
  }
  func.func @transform_6(%arg0: i32) -> (i32, i32) {
    %c0_i32 = arith.constant 0 : i32
    %c0_i32_0 = arith.constant 0 : i32
    %c0_i32_1 = arith.constant 0 : i32
    return %c0_i32, %c0_i32_0 : i32, i32
  }
  func.func @transform_7(%arg0: i32) -> (i32, i32) {
    %c0_i32 = arith.constant 0 : i32
    %c0_i32_0 = arith.constant 0 : i32
    %c0_i32_1 = arith.constant 0 : i32
    return %c0_i32, %c0_i32_0 : i32, i32
  }
  func.func @transform_8(%arg0: i32) -> (i32, i32, i32) {
    %c0_i32 = arith.constant 0 : i32
    %c0_i32_0 = arith.constant 0 : i32
    %c0_i32_1 = arith.constant 0 : i32
    return %arg0, %c0_i32, %c0_i32_0 : i32, i32, i32
  }
}

</mosaic_0001>

<bundles_post_ra>
// kernel: tpu_custom_call.1
= control target key start
LH: loop header
LB: loop body
LE: loop exit
PB: predicated region body
PF: predicated region fallthrough
CT: control target
= control target key end

     0   :  { %s10085_s0 = inlined_call_operand.vmem [shape: bf16[2500,32], index: 0, kind: input, shape index: {}]   ;;  %s10086_s1 = inlined_call_operand.vmem [shape: bf16[2500,32], index: 1, kind: input, shape index: {}]   ;;  %s10087_s2 = inlined_call_operand.vmem [shape: bf16[32,32], index: 2, kind: input, shape index: {}]   ;;  %s10088_s3 = inlined_call_operand.vmem [shape: f32[1,32], index: 3, kind: input, shape index: {}]   ;;  %s10089_s4 = inlined_call_operand.vmem [shape: bf16[32,32], index: 4, kind: input, shape index: {}]   ;;  %s10090_s5 = inlined_call_operand.vmem [shape: f32[1,32], index: 5, kind: input, shape index: {}]   ;;  %s10091_s6 = inlined_call_operand.vmem [shape: bf16[1,32], index: 6, kind: input, shape index: {}]   ;;  %s10092_s7 = inlined_call_operand.<no memory space> [shape: f32[1,1], index: 7, kind: input, shape index: {}]   ;;  %s10093_s8 = inlined_call_operand.hbm [shape: f32[2,1,2048], index: 8, kind: output, shape index: {}]  }
   0x1   :  { %13 = sst [smem:[#allocation2]] %s10092_s7 }
   0x2   :  { %14 = vsyncpa [#allocation4], 0 }
   0x3   :  { %16 = vsyncpa [#allocation4 + $0x1], 0  ;;  %s8141_s29 = smov 0   ;;  %s8143_s30 = smov 0  }
   0x4   :  { %s8145_s9 = smov 0   ;;  %s8147_s10 = smov 0  }
   0x5 LB: > { %s6492_s7 = sadd.s32 4294967295, %s8089_s10   ;;  %s6493_s11 = sadd.s32 4294967294, %s8089_s10   ;;  %s8089_s10 = sphi %s8147_s10, %s10099_s10   ;;  %s8085_s9 = sphi %s8145_s9, %s10098_s9   ;;  %s8081_s30 = sphi %s8143_s30, %s10097_s30   ;;  %s8077_s29 = sphi %s8141_s29, %s10096_s29  }
   0x6   : > { %s8164_s12 = sadd.s32 1, %s8089_s10   ;;  %s207_s13 = sadd.s32 1, %s8085_s9 }
   0x7   : > { %s204_s14 = ssub.s32 %s8089_s10, %s8164_s12  ;;  %p217_p0 = scmp.ne.s32.totalorder %s8085_s9, %s8081_s30 }
   0x8   : > { %p205_p1 = scmp.eq.s32.totalorder %s204_s14, 0  ;;  %p218_p2 = scmp.eq.s32.totalorder %s6492_s7, 1 }
   0x9   : > { %p223_p3 = scmp.ne.s32.totalorder %s8081_s30, %s8077_s29  ;;  %p224_p4 = scmp.eq.s32.totalorder %s6493_s11, 1 }
   0xa   : > { %s8174_s15 = scalar_select %p205_p1, %s8085_s9, %s207_s13  }
   0xb   : > { %p8176_p5 = por %p218_p2, %p217_p0  ;;  %p8180_p6 = por %p224_p4, %p223_p3 }
   0xc   : > { %p6496_p7 = scmp.ge.s32.totalorder %s8089_s10, 1  ;;  %p294_p8 = scmp.lt.s32.totalorder %s8089_s10, 3 }
   0xe   : > { %p295_p9 = pnand %p6496_p7, %p294_p8 }
   0xf   : > { %v7950_v0 = vld [vmem:[%s10087_s2] sm:$0xff] (!%p295_p9)   ;;  %s8189_s20 = sshll.u32 (!%p295_p9), %s6492_s7, 8  ;;  %v7951_v1 = vld [vmem:[%s10087_s2 + $0x8] sm:$0xff] (!%p295_p9)   ;;  %vm1801_vm0 = vcmask (!%p295_p9), 261120   ;;  %s338_s14 = sand.u32 (!%p295_p9), 1, %s8081_s30  }
  0x10   : > { %298 = sbr.rel (%p295_p9) target bundleno = 1286 (0x506), region = 52  ;;  %p346_p10 = scmp.lt.s32.totalorder (!%p295_p9), %s8189_s20, 312  ;;  %7326 = vmatprep.subr.bf16.mxu0 (!%p295_p9), %v7950_v0 }
  0x11   : > { %7327 = vmatpush3.bf16.msra.mxu0 (!%p295_p9), %v7950_v0  ;;  %s6497_s18 = sshll.u32 (!%p295_p9), %s338_s14, 4  ;;  %s6408_s25 = scalar_lea.sflag (!%p295_p9), [#allocation4], %s338_s14 }
  0x12   : > { %7328 = vmatprep.subr.bf16.mxu0 (!%p295_p9), %v7951_v1  ;;  %s10020_s19 = scalar_lea.vmem (!%p295_p9), [#allocation3], %s6497_s18  ;;  %s8092_s28 = smov (!%p295_p9), [#allocation3]  }
  0x13   : > { %s6422_s21 = sshll.u32 (!%p295_p9), %s10020_s19, 4  ;;  %s8031_s7 = sshll.u32 (!%p295_p9), %s8092_s28, 4  ;;  %s10042_s21 = int_to_ptr.vmem [resolvable:$true] %s6422_s21  ;;  %s8032_s7 = int_to_ptr.vmem [resolvable:$false] %s8031_s7 }
  0x14   : > { %s8027_s26 = scalar_lea.vmem (!%p295_p9), %s10042_s21, 256  ;;  %p8034_p0 = scmp.lt.s32.totalorder (!%p295_p9), %s10042_s21, %s8032_s7 }
  0x15   : > { %7329 = vmatpush3.bf16.msra.mxu0 (!%p295_p9), %v7951_v1  ;;  %p8028_p11 = scmp.ne.s32.totalorder (!%p295_p9), %s10042_s21, %s8027_s26 }
  0x17   : > { %s347_s23 = scalar_select %p346_p10, %s8189_s20, 312 }
  0x18   : > { %p8029_p12 = pnand %p8028_p11, %p8176_p5 }
  0x19   : > { %s6499_s24 = sshll.u32 %s347_s23, 2 }
  0x1a   : > { %s8199_s27 = scalar_lea.vmem %s10085_s0, %s6499_s24  ;;  %s8204_s11 = scalar_lea.vmem %s10086_s1, %s6499_s24 }
  0x1b   : > { %v370_v2 = vld [vmem:[%s8199_s27] sm:$0xf]  ;;  %v371_v3 = vld [vmem:[%s8199_s27 + $0x4] sm:$0xf]  ;;  %v372_v7 = vld [vmem:[%s8199_s27 + $0x8] sm:$0xf]  ;;  %s10040_s24 = scalar_lea.hbm %s10093_s8, %s8189_s20  ;;  %p8030_p13 = pneg %p8029_p12 }
  0x1c   : > { %v626_v4 = vld [vmem:[%s8204_s11] sm:$0xf]  ;;  %v627_v5 = vld [vmem:[%s8204_s11 + $0x4] sm:$0xf]  ;;  %v373_v8 = vld [vmem:[%s8199_s27 + $0xc] sm:$0xf] }
  0x1d   : > { %v882_v6 = vmul.bf16 %v626_v4, %v370_v2  ;;  %v883_v9 = vmul.bf16 %v627_v5, %v371_v3  ;;  %v628_v10 = vld [vmem:[%s8204_s11 + $0x8] sm:$0xf]  ;;  %v629_v11 = vld [vmem:[%s8204_s11 + $0xc] sm:$0xf]  ;;  %v374_v12 = vld [vmem:[%s8199_s27 + $0x10] sm:$0xf] }
  0x1e   : > { %v884_v13 = vmul.bf16 %v628_v10, %v372_v7  ;;  %v885_v14 = vmul.bf16 %v629_v11, %v373_v8  ;;  %v375_v15 = vld [vmem:[%s8199_s27 + $0x14] sm:$0xf]  ;;  %v630_v16 = vld [vmem:[%s8204_s11 + $0x10] sm:$0xf]  ;;  %v376_v21 = vld [vmem:[%s8199_s27 + $0x18] sm:$0xf] }
  0x1f   : > { %v631_v17 = vld [vmem:[%s8204_s11 + $0x14] sm:$0xf]  ;;  %v6503_v18 = vcombine.low %v882_v6, %v883_v9  ;;  %v886_v19 = vmul.bf16 %v630_v16, %v374_v12  ;;  %v377_v22 = vld [vmem:[%s8199_s27 + $0x1c] sm:$0xf]  ;;  %v632_v23 = vld [vmem:[%s8204_s11 + $0x18] sm:$0xf] }
  0x20   : > { %v887_v20 = vmul.bf16 %v631_v17, %v375_v15  ;;  %v6504_v24 = vcombine.low %v884_v13, %v885_v14  ;;  %v633_v25 = vld [vmem:[%s8204_s11 + $0x1c] sm:$0xf]  ;;  %v378_v26 = vld [vmem:[%s8199_s27 + $0x20] sm:$0xf]  ;;  %v379_v27 = vld [vmem:[%s8199_s27 + $0x24] sm:$0xf]  ;;  %v888_v31 = vmul.bf16 %v632_v23, %v376_v21 }
  0x21   : > { %7330 = vmatprep.mubr.msk.bf16.mxu0 %vm1801_vm0, %v6503_v18  ;;  %v634_v29 = vld [vmem:[%s8204_s11 + $0x20] sm:$0xf]  ;;  %v635_v30 = vld [vmem:[%s8204_s11 + $0x24] sm:$0xf]  ;;  %v889_v32 = vmul.bf16 %v633_v25, %v377_v22  ;;  %v380_v36 = vld [vmem:[%s8199_s27 + $0x28] sm:$0xf] }
  0x22   : > { %v6505_v28 = vcombine.low %v886_v19, %v887_v20  ;;  %7331 = vmatmul.mubr.msk.bf16.vlgmr.msra.gmra.mrb[0].mxu0 %vm1801_vm0, %v6504_v24  ;;  %v890_v33 = vmul.bf16 %v634_v29, %v378_v26  ;;  %v891_v34 = vmul.bf16 %v635_v30, %v379_v27  ;;  %v381_v37 = vld [vmem:[%s8199_s27 + $0x2c] sm:$0xf]  ;;  %v636_v39 = vld [vmem:[%s8204_s11 + $0x28] sm:$0xf]  ;;  %v382_v41 = vld [vmem:[%s8199_s27 + $0x30] sm:$0xf] }
  0x23   : > { %v6506_v35 = vcombine.low %v888_v31, %v889_v32  ;;  %v637_v40 = vld [vmem:[%s8204_s11 + $0x2c] sm:$0xf]  ;;  %v383_v42 = vld [vmem:[%s8199_s27 + $0x34] sm:$0xf]  ;;  %v638_v43 = vld [vmem:[%s8204_s11 + $0x30] sm:$0xf]  ;;  %v892_v45 = vmul.bf16 %v636_v39, %v380_v36 }
  0x24   : > { %7334 = vmatprep.mubr.msk.bf16.mxu0 %vm1801_vm0, %v6505_v28  ;;  %v6507_v38 = vcombine.low %v890_v33, %v891_v34  ;;  %v639_v44 = vld [vmem:[%s8204_s11 + $0x34] sm:$0xf]  ;;  %v893_v46 = vmul.bf16 %v637_v40, %v381_v37  ;;  %v894_v47 = vmul.bf16 %v638_v43, %v382_v41  ;;  %v384_v50 = vld [vmem:[%s8199_s27 + $0x38] sm:$0xf]  ;;  %v385_v51 = vld [vmem:[%s8199_s27 + $0x3c] sm:$0xf] }
  0x25   : > { %v895_v48 = vmul.bf16 %v639_v44, %v383_v42  ;;  %v640_v53 = vld [vmem:[%s8204_s11 + $0x38] sm:$0xf]  ;;  %v641_v54 = vld [vmem:[%s8204_s11 + $0x3c] sm:$0xf]  ;;  %v386_v55 = vld [vmem:[%s8199_s27 + $0x40] sm:$0xf] }
  0x26   : > { %v6508_v49 = vcombine.low %v892_v45, %v893_v46  ;;  %v387_v56 = vld [vmem:[%s8199_s27 + $0x44] sm:$0xf]  ;;  %v642_v57 = vld [vmem:[%s8204_s11 + $0x40] sm:$0xf]  ;;  %v896_v59 = vmul.bf16 %v640_v53, %v384_v50  ;;  %v897_v60 = vmul.bf16 %v641_v54, %v385_v51  ;;  %v388_v0 = vld [vmem:[%s8199_s27 + $0x48] sm:$0xf] }
  0x27   : > { %v6509_v52 = vcombine.low %v894_v47, %v895_v48  ;;  %v643_v58 = vld [vmem:[%s8204_s11 + $0x44] sm:$0xf]  ;;  %v898_v61 = vmul.bf16 %v642_v57, %v386_v55  ;;  %v389_v1 = vld [vmem:[%s8199_s27 + $0x4c] sm:$0xf]  ;;  %v644_v3 = vld [vmem:[%s8204_s11 + $0x48] sm:$0xf] }
  0x28   : > { %v899_v62 = vmul.bf16 %v643_v58, %v387_v56  ;;  %v6510_v63 = vcombine.low %v896_v59, %v897_v60  ;;  %v645_v4 = vld [vmem:[%s8204_s11 + $0x4c] sm:$0xf]  ;;  %v390_v5 = vld [vmem:[%s8199_s27 + $0x50] sm:$0xf]  ;;  %v391_v6 = vld [vmem:[%s8199_s27 + $0x54] sm:$0xf]  ;;  %v900_v9 = vmul.bf16 %v644_v3, %v388_v0 }
  0x29   : > { %v646_v7 = vld [vmem:[%s8204_s11 + $0x50] sm:$0xf]  ;;  %v647_v8 = vld [vmem:[%s8204_s11 + $0x54] sm:$0xf]  ;;  %v901_v10 = vmul.bf16 %v645_v4, %v389_v1  ;;  %v392_v14 = vld [vmem:[%s8199_s27 + $0x58] sm:$0xf] }
  0x2a   : > { %7335 = vmatmul.mubr.msk.bf16.gmra.mrb[4].mxu0 %vm1801_vm0, %v6506_v35  ;;  %v6511_v2 = vcombine.low %v898_v61, %v899_v62  ;;  %v902_v11 = vmul.bf16 %v646_v7, %v390_v5  ;;  %v903_v12 = vmul.bf16 %v647_v8, %v391_v6  ;;  %v393_v15 = vld [vmem:[%s8199_s27 + $0x5c] sm:$0xf]  ;;  %v648_v17 = vld [vmem:[%s8204_s11 + $0x58] sm:$0xf]  ;;  %v394_v19 = vld [vmem:[%s8199_s27 + $0x60] sm:$0xf] }
  0x2b   : > { %7338 = vmatprep.mubr.msk.bf16.mxu0 %vm1801_vm0, %v6507_v38  ;;  %v6512_v13 = vcombine.low %v900_v9, %v901_v10  ;;  %v649_v18 = vld [vmem:[%s8204_s11 + $0x5c] sm:$0xf]  ;;  %v395_v20 = vld [vmem:[%s8199_s27 + $0x64] sm:$0xf]  ;;  %v650_v21 = vld [vmem:[%s8204_s11 + $0x60] sm:$0xf]  ;;  %v904_v23 = vmul.bf16 %v648_v17, %v392_v14 }
  0x2c   : > { %v6513_v16 = vcombine.low %v902_v11, %v903_v12  ;;  %v651_v22 = vld [vmem:[%s8204_s11 + $0x64] sm:$0xf]  ;;  %v905_v24 = vmul.bf16 %v649_v18, %v393_v15  ;;  %v906_v25 = vmul.bf16 %v650_v21, %v394_v19  ;;  %v396_v28 = vld [vmem:[%s8199_s27 + $0x68] sm:$0xf]  ;;  %v397_v29 = vld [vmem:[%s8199_s27 + $0x6c] sm:$0xf] }
  0x2d   : > { %v907_v26 = vmul.bf16 %v651_v22, %v395_v20  ;;  %v652_v31 = vld [vmem:[%s8204_s11 + $0x68] sm:$0xf]  ;;  %v653_v32 = vld [vmem:[%s8204_s11 + $0x6c] sm:$0xf]  ;;  %v398_v33 = vld [vmem:[%s8199_s27 + $0x70] sm:$0xf] }
  0x2e   : > { %v6514_v27 = vcombine.low %v904_v23, %v905_v24  ;;  %v399_v34 = vld [vmem:[%s8199_s27 + $0x74] sm:$0xf]  ;;  %v654_v35 = vld [vmem:[%s8204_s11 + $0x70] sm:$0xf]  ;;  %v908_v37 = vmul.bf16 %v652_v31, %v396_v28  ;;  %v909_v38 = vmul.bf16 %v653_v32, %v397_v29  ;;  %v400_v42 = vld [vmem:[%s8199_s27 + $0x78] sm:$0xf] }
  0x2f   : > { %v6515_v30 = vcombine.low %v906_v25, %v907_v26  ;;  %v655_v36 = vld [vmem:[%s8204_s11 + $0x74] sm:$0xf]  ;;  %v910_v39 = vmul.bf16 %v654_v35, %v398_v33  ;;  %v401_v43 = vld [vmem:[%s8199_s27 + $0x7c] sm:$0xf]  ;;  %v656_v45 = vld [vmem:[%s8204_s11 + $0x78] sm:$0xf] }
  0x30   : > { %v911_v40 = vmul.bf16 %v655_v36, %v399_v34  ;;  %v6516_v41 = vcombine.low %v908_v37, %v909_v38  ;;  %v657_v46 = vld [vmem:[%s8204_s11 + $0x7c] sm:$0xf]  ;;  %v402_v47 = vld [vmem:[%s8199_s27 + $0x80] sm:$0xf]  ;;  %v403_v48 = vld [vmem:[%s8199_s27 + $0x84] sm:$0xf]  ;;  %v912_v51 = vmul.bf16 %v656_v45, %v400_v42 }
  0x31   : > { %v659_v50 = vld [vmem:[%s8204_s11 + $0x84] sm:$0xf]  ;;  %v404_v56 = vld [vmem:[%s8199_s27 + $0x88] sm:$0xf]  ;;  %v405_v57 = vld [vmem:[%s8199_s27 + $0x8c] sm:$0xf] }
  0x32   : > { %7339 = vmatmul.mubr.msk.bf16.gmra.mrb[8].mxu0 %vm1801_vm0, %v6508_v49  ;;  %v6517_v44 = vcombine.low %v910_v39, %v911_v40  ;;  %v658_v49 = vld [vmem:[%s8204_s11 + $0x80] sm:$0xf]  ;;  %v915_v54 = vmul.bf16 %v659_v50, %v403_v48  ;;  %v660_v59 = vld [vmem:[%s8204_s11 + $0x88] sm:$0xf]  ;;  %v661_v60 = vld [vmem:[%s8204_s11 + $0x8c] sm:$0xf] }
  0x33   : > { %7342 = vmatprep.mubr.msk.bf16.mxu0 %vm1801_vm0, %v6509_v52  ;;  %v913_v52 = vmul.bf16 %v657_v46, %v401_v43  ;;  %v914_v53 = vmul.bf16 %v658_v49, %v402_v47  ;;  %v406_v61 = vld [vmem:[%s8199_s27 + $0x90] sm:$0xf]  ;;  %v407_v62 = vld [vmem:[%s8199_s27 + $0x94] sm:$0xf]  ;;  %v916_v1 = vmul.bf16 %v660_v59, %v404_v56  ;;  %v408_v6 = vld [vmem:[%s8199_s27 + $0x98] sm:$0xf] }
  0x34   : > { %v663_v0 = vld [vmem:[%s8204_s11 + $0x94] sm:$0xf]  ;;  %v409_v7 = vld [vmem:[%s8199_s27 + $0x9c] sm:$0xf]  ;;  %v664_v9 = vld [vmem:[%s8204_s11 + $0x98] sm:$0xf] }
  0x35   : > { %v6518_v55 = vcombine.low %v912_v51, %v913_v52  ;;  %v6519_v58 = vcombine.low %v914_v53, %v915_v54  ;;  %v919_v4 = vmul.bf16 %v663_v0, %v407_v62  ;;  %v665_v10 = vld [vmem:[%s8204_s11 + $0x9c] sm:$0xf]  ;;  %v410_v11 = vld [vmem:[%s8199_s27 + $0xa0] sm:$0xf]  ;;  %v411_v12 = vld [vmem:[%s8199_s27 + $0xa4] sm:$0xf]  ;;  %v920_v15 = vmul.bf16 %v664_v9, %v408_v6 }
  0x36   : > { %v667_v14 = vld [vmem:[%s8204_s11 + $0xa4] sm:$0xf]  ;;  %v412_v20 = vld [vmem:[%s8199_s27 + $0xa8] sm:$0xf]  ;;  %v413_v21 = vld [vmem:[%s8199_s27 + $0xac] sm:$0xf] }
  0x37   : > { %v923_v18 = vmul.bf16 %v667_v14, %v411_v12  ;;  %v668_v23 = vld [vmem:[%s8204_s11 + $0xa8] sm:$0xf]  ;;  %v669_v24 = vld [vmem:[%s8204_s11 + $0xac] sm:$0xf]  ;;  %v414_v25 = vld [vmem:[%s8199_s27 + $0xb0] sm:$0xf] }
  0x38   : > { %v415_v26 = vld [vmem:[%s8199_s27 + $0xb4] sm:$0xf]  ;;  %v924_v29 = vmul.bf16 %v668_v23, %v412_v20  ;;  %v416_v34 = vld [vmem:[%s8199_s27 + $0xb8] sm:$0xf]  ;;  %v417_v35 = vld [vmem:[%s8199_s27 + $0xbc] sm:$0xf] }
  0x39   : > { %v671_v28 = vld [vmem:[%s8204_s11 + $0xb4] sm:$0xf]  ;;  %v672_v37 = vld [vmem:[%s8204_s11 + $0xb8] sm:$0xf]  ;;  %v673_v38 = vld [vmem:[%s8204_s11 + $0xbc] sm:$0xf] }
  0x3a   : > { %7343 = vmatmul.mubr.msk.bf16.gmra.mrb[12].mxu0 %vm1801_vm0, %v6510_v63  ;;  %v662_v63 = vld [vmem:[%s8204_s11 + $0x90] sm:$0xf]  ;;  %v927_v32 = vmul.bf16 %v671_v28, %v415_v26  ;;  %v418_v39 = vld [vmem:[%s8199_s27 + $0xc0] sm:$0xf]  ;;  %v419_v40 = vld [vmem:[%s8199_s27 + $0xc4] sm:$0xf]  ;;  %v928_v43 = vmul.bf16 %v672_v37, %v416_v34 }
  0x3b   : > { %7346 = vmatprep.mubr.msk.bf16.mxu0 %vm1801_vm0, %v6511_v2  ;;  %v917_v2 = vmul.bf16 %v661_v60, %v405_v57  ;;  %v918_v3 = vmul.bf16 %v662_v63, %v406_v61  ;;  %v675_v42 = vld [vmem:[%s8204_s11 + $0xc4] sm:$0xf]  ;;  %v420_v48 = vld [vmem:[%s8199_s27 + $0xc8] sm:$0xf]  ;;  %v421_v49 = vld [vmem:[%s8199_s27 + $0xcc] sm:$0xf] }
  0x3c   : > { %v931_v46 = vmul.bf16 %v675_v42, %v419_v40  ;;  %v7952_v50 = vld [vmem:[%s10089_s4] sm:$0xff]   ;;  %v676_v52 = vld [vmem:[%s8204_s11 + $0xc8] sm:$0xf]  ;;  %v677_v53 = vld [vmem:[%s8204_s11 + $0xcc] sm:$0xf] }
  0x3d   : > { %v6520_v5 = vcombine.low %v916_v1, %v917_v2  ;;  %v6521_v8 = vcombine.low %v918_v3, %v919_v4  ;;  %v422_v54 = vld [vmem:[%s8199_s27 + $0xd0] sm:$0xf]  ;;  %v679_v57 = vld [vmem:[%s8204_s11 + $0xd4] sm:$0xf]  ;;  %7586 = vmatprep.subr.bf16.mxu1 %v7952_v50  ;;  %v933_v59 = vmul.bf16 %v677_v53, %v421_v49  ;;  %v7953_v60 = vld [vmem:[%s10089_s4 + $0x8] sm:$0xff]  }
  0x3e   : > { %v678_v56 = vld [vmem:[%s8204_s11 + $0xd0] sm:$0xf]  ;;  %7587 = vmatpush3.bf16.msra.mxu1 %v7952_v50  ;;  %v424_v0 = vld [vmem:[%s8199_s27 + $0xd8] sm:$0xf]  ;;  %v425_v1 = vld [vmem:[%s8199_s27 + $0xdc] sm:$0xf] }
  0x3f   : > { %v934_v61 = vmul.bf16 %v678_v56, %v422_v54  ;;  %7588 = vmatprep.subr.bf16.mxu1 %v7953_v60  ;;  %v680_v3 = vld [vmem:[%s8204_s11 + $0xd8] sm:$0xf]  ;;  %v681_v4 = vld [vmem:[%s8204_s11 + $0xdc] sm:$0xf]  ;;  %v427_v6 = vld [vmem:[%s8199_s27 + $0xe4] sm:$0xf] }
  0x40   : > { %v936_v9 = vmul.bf16 %v680_v3, %v424_v0  ;;  %v428_v14 = vld [vmem:[%s8199_s27 + $0xe8] sm:$0xf]  ;;  %v431_v20 = vld [vmem:[%s8199_s27 + $0xf4] sm:$0xf]  ;;  %v432_v28 = vld [vmem:[%s8199_s27 + $0xf8] sm:$0xf] }
  0x41   : > { %v435_v34 = vld [vmem:[%s8199_s27 + $0x104] sm:$0xf]  ;;  %v436_v42 = vld [vmem:[%s8199_s27 + $0x108] sm:$0xf]  ;;  %v694_v49 = vld [vmem:[%s8204_s11 + $0x110] sm:$0xf] }
  0x42   : > { %7347 = vmatmul.mubr.msk.bf16.gmra.mrb[16].mxu0 %vm1801_vm0, %v6512_v13  ;;  %v666_v13 = vld [vmem:[%s8204_s11 + $0xa0] sm:$0xf]  ;;  %7589 = vmatpush3.bf16.msra.mxu1 %v7953_v60  ;;  %v695_v50 = vld [vmem:[%s8204_s11 + $0x114] sm:$0xf]  ;;  %v440_v56 = vld [vmem:[%s8199_s27 + $0x118] sm:$0xf] }
  0x43   : > { %7350 = vmatprep.mubr.msk.bf16.mxu0 %vm1801_vm0, %v6513_v16  ;;  %v921_v16 = vmul.bf16 %v665_v10, %v409_v7  ;;  %v922_v17 = vmul.bf16 %v666_v13, %v410_v11  ;;  %v682_v7 = vld [vmem:[%s8204_s11 + $0xe0] sm:$0xf]  ;;  %v937_v10 = vmul.bf16 %v681_v4, %v425_v1  ;;  %v697_v60 = vld [vmem:[%s8204_s11 + $0x11c] sm:$0xf]  ;;  %v699_v0 = vld [vmem:[%s8204_s11 + $0x124] sm:$0xf] }
  0x45   : > { %v6522_v19 = vcombine.low %v920_v15, %v921_v16  ;;  %v6523_v22 = vcombine.low %v922_v17, %v923_v18  ;;  %v6530_v13 = vcombine.low %v936_v9, %v937_v10  ;;  %v429_v15 = vld [vmem:[%s8199_s27 + $0xec] sm:$0xf]  ;;  %v684_v17 = vld [vmem:[%s8204_s11 + $0xe8] sm:$0xf] }
  0x46   : > { %v685_v18 = vld [vmem:[%s8204_s11 + $0xec] sm:$0xf]  ;;  %v940_v23 = vmul.bf16 %v684_v17, %v428_v14  ;;  %v700_v9 = vld [vmem:[%s8204_s11 + $0x128] sm:$0xf]  ;;  %v703_v14 = vld [vmem:[%s8204_s11 + $0x134] sm:$0xf] }
  0x47   : > { %v701_v10 = vld [vmem:[%s8204_s11 + $0x12c] sm:$0xf] }
  0x4a   : > { %7351 = vmatmul.mubr.msk.bf16.gmra.mrb[20].mxu0 %vm1801_vm0, %v6514_v27  ;;  %v670_v27 = vld [vmem:[%s8204_s11 + $0xb0] sm:$0xf] }
  0x4b   : > { %7354 = vmatprep.mubr.msk.bf16.mxu0 %vm1801_vm0, %v6515_v30  ;;  %v925_v30 = vmul.bf16 %v669_v24, %v413_v21  ;;  %v926_v31 = vmul.bf16 %v670_v27, %v414_v25  ;;  %v686_v21 = vld [vmem:[%s8204_s11 + $0xf0] sm:$0xf]  ;;  %v941_v24 = vmul.bf16 %v685_v18, %v429_v15 }
  0x4d   : > { %v6524_v33 = vcombine.low %v924_v29, %v925_v30  ;;  %v6525_v36 = vcombine.low %v926_v31, %v927_v32  ;;  %v6532_v27 = vcombine.low %v940_v23, %v941_v24  ;;  %v433_v29 = vld [vmem:[%s8199_s27 + $0xfc] sm:$0xf]  ;;  %v688_v31 = vld [vmem:[%s8204_s11 + $0xf8] sm:$0xf] }
  0x4e   : > { %v689_v32 = vld [vmem:[%s8204_s11 + $0xfc] sm:$0xf]  ;;  %v944_v37 = vmul.bf16 %v688_v31, %v432_v28  ;;  %v704_v23 = vld [vmem:[%s8204_s11 + $0x138] sm:$0xf]  ;;  %v707_v28 = vld [vmem:[%s8204_s11 + $0x144] sm:$0xf] }
  0x4f   : > { %v705_v24 = vld [vmem:[%s8204_s11 + $0x13c] sm:$0xf] }
  0x52   : > { %7355 = vmatmul.mubr.msk.bf16.gmra.mrb[24].mxu0 %vm1801_vm0, %v6516_v41  ;;  %v674_v41 = vld [vmem:[%s8204_s11 + $0xc0] sm:$0xf] }
  0x53   : > { %7358 = vmatprep.mubr.msk.bf16.mxu0 %vm1801_vm0, %v6517_v44  ;;  %v929_v44 = vmul.bf16 %v673_v38, %v417_v35  ;;  %v930_v45 = vmul.bf16 %v674_v41, %v418_v39  ;;  %v690_v35 = vld [vmem:[%s8204_s11 + $0x100] sm:$0xf]  ;;  %v945_v38 = vmul.bf16 %v689_v32, %v433_v29 }
  0x55   : > { %v6526_v47 = vcombine.low %v928_v43, %v929_v44  ;;  %v6527_v51 = vcombine.low %v930_v45, %v931_v46  ;;  %v6534_v41 = vcombine.low %v944_v37, %v945_v38  ;;  %v437_v43 = vld [vmem:[%s8199_s27 + $0x10c] sm:$0xf]  ;;  %v692_v45 = vld [vmem:[%s8204_s11 + $0x108] sm:$0xf] }
  0x56   : > { %v693_v46 = vld [vmem:[%s8204_s11 + $0x10c] sm:$0xf]  ;;  %v708_v37 = vld [vmem:[%s8204_s11 + $0x148] sm:$0xf] }
  0x57   : > { %v709_v38 = vld [vmem:[%s8204_s11 + $0x14c] sm:$0xf] }
  0x5a   : > { %7359 = vmatmul.mubr.msk.bf16.gmra.mrb[28].mxu0 %vm1801_vm0, %v6518_v55  ;;  %v423_v55 = vld [vmem:[%s8199_s27 + $0xd4] sm:$0xf] }
  0x5b   : > { %7362 = vmatprep.mubr.msk.bf16.mxu0 %vm1801_vm0, %v6519_v58  ;;  %v932_v58 = vmul.bf16 %v676_v52, %v420_v48  ;;  %v935_v62 = vmul.bf16 %v679_v57, %v423_v55  ;;  %v439_v48 = vld [vmem:[%s8199_s27 + $0x114] sm:$0xf]  ;;  %v949_v52 = vmul.bf16 %v693_v46, %v437_v43  ;;  %v441_v57 = vld [vmem:[%s8199_s27 + $0x11c] sm:$0xf] }
  0x5c   : > { %v951_v54 = vmul.bf16 %v695_v50, %v439_v48  ;;  %v456_v48 = vld [vmem:[%s8199_s27 + $0x158] sm:$0xf] }
  0x5d   : > { %v6528_v63 = vcombine.low %v932_v58, %v933_v59  ;;  %v6529_v2 = vcombine.low %v934_v61, %v935_v62  ;;  %v696_v59 = vld [vmem:[%s8204_s11 + $0x118] sm:$0xf]  ;;  %v442_v61 = vld [vmem:[%s8199_s27 + $0x120] sm:$0xf]  ;;  %v443_v62 = vld [vmem:[%s8199_s27 + $0x124] sm:$0xf] }
  0x5e   : > { %v952_v1 = vmul.bf16 %v696_v59, %v440_v56  ;;  %v955_v4 = vmul.bf16 %v699_v0, %v443_v62  ;;  %v715_v56 = vld [vmem:[%s8204_s11 + $0x164] sm:$0xf]  ;;  %v460_v62 = vld [vmem:[%s8199_s27 + $0x168] sm:$0xf] }
  0x62   : > { %7363 = vmatmul.mubr.msk.bf16.gmra.mrb[32].mxu0 %vm1801_vm0, %v6520_v5  ;;  %v426_v5 = vld [vmem:[%s8199_s27 + $0xe0] sm:$0xf] }
  0x63   : > { %7366 = vmatprep.mubr.msk.bf16.mxu0 %vm1801_vm0, %v6521_v8  ;;  %v683_v8 = vld [vmem:[%s8204_s11 + $0xe4] sm:$0xf]  ;;  %v938_v11 = vmul.bf16 %v682_v7, %v426_v5  ;;  %v445_v7 = vld [vmem:[%s8199_s27 + $0x12c] sm:$0xf] }
  0x64   : > { %v939_v12 = vmul.bf16 %v683_v8, %v427_v6  ;;  %v444_v6 = vld [vmem:[%s8199_s27 + $0x128] sm:$0xf] }
  0x65   : > { %v956_v15 = vmul.bf16 %v700_v9, %v444_v6  ;;  %v719_v6 = vld [vmem:[%s8204_s11 + $0x174] sm:$0xf] }
  0x66   : > { %v6531_v16 = vcombine.low %v938_v11, %v939_v12  ;;  %v446_v11 = vld [vmem:[%s8199_s27 + $0x130] sm:$0xf]  ;;  %v447_v12 = vld [vmem:[%s8199_s27 + $0x134] sm:$0xf] }
  0x67   : > { %v959_v18 = vmul.bf16 %v703_v14, %v447_v12  ;;  %v464_v12 = vld [vmem:[%s8199_s27 + $0x178] sm:$0xf] }
  0x6a   : > { %7367 = vmatmul.mubr.msk.bf16.gmra.mrb[36].mxu0 %vm1801_vm0, %v6522_v19  ;;  %v430_v19 = vld [vmem:[%s8199_s27 + $0xf0] sm:$0xf] }
  0x6b   : > { %7370 = vmatprep.mubr.msk.bf16.mxu0 %vm1801_vm0, %v6523_v22  ;;  %v687_v22 = vld [vmem:[%s8204_s11 + $0xf4] sm:$0xf]  ;;  %v942_v25 = vmul.bf16 %v686_v21, %v430_v19  ;;  %v449_v21 = vld [vmem:[%s8199_s27 + $0x13c] sm:$0xf] }
  0x6c   : > { %v943_v26 = vmul.bf16 %v687_v22, %v431_v20  ;;  %v448_v20 = vld [vmem:[%s8199_s27 + $0x138] sm:$0xf] }
  0x6d   : > { %v960_v29 = vmul.bf16 %v704_v23, %v448_v20  ;;  %v723_v20 = vld [vmem:[%s8204_s11 + $0x184] sm:$0xf] }
  0x6e   : > { %v6533_v30 = vcombine.low %v942_v25, %v943_v26  ;;  %v450_v25 = vld [vmem:[%s8199_s27 + $0x140] sm:$0xf]  ;;  %v451_v26 = vld [vmem:[%s8199_s27 + $0x144] sm:$0xf] }
  0x6f   : > { %v963_v32 = vmul.bf16 %v707_v28, %v451_v26  ;;  %v468_v26 = vld [vmem:[%s8199_s27 + $0x188] sm:$0xf] }
  0x72   : > { %7371 = vmatmul.mubr.msk.bf16.gmra.mrb[40].mxu0 %vm1801_vm0, %v6524_v33  ;;  %v434_v33 = vld [vmem:[%s8199_s27 + $0x100] sm:$0xf] }
  0x73   : > { %7374 = vmatprep.mubr.msk.bf16.mxu0 %vm1801_vm0, %v6525_v36  ;;  %v691_v36 = vld [vmem:[%s8204_s11 + $0x104] sm:$0xf]  ;;  %v946_v39 = vmul.bf16 %v690_v35, %v434_v33  ;;  %v453_v35 = vld [vmem:[%s8199_s27 + $0x14c] sm:$0xf] }
  0x74   : > { %v947_v40 = vmul.bf16 %v691_v36, %v435_v34  ;;  %v452_v34 = vld [vmem:[%s8199_s27 + $0x148] sm:$0xf] }
  0x75   : > { %v964_v43 = vmul.bf16 %v708_v37, %v452_v34  ;;  %v727_v34 = vld [vmem:[%s8204_s11 + $0x194] sm:$0xf] }
  0x76   : > { %v6535_v44 = vcombine.low %v946_v39, %v947_v40  ;;  %v454_v39 = vld [vmem:[%s8199_s27 + $0x150] sm:$0xf]  ;;  %v455_v40 = vld [vmem:[%s8199_s27 + $0x154] sm:$0xf] }
  0x7a   : > { %7375 = vmatmul.mubr.msk.bf16.gmra.mrb[44].mxu0 %vm1801_vm0, %v6526_v47  ;;  %v438_v47 = vld [vmem:[%s8199_s27 + $0x110] sm:$0xf] }
  0x7b   : > { %7378 = vmatprep.mubr.msk.bf16.mxu0 %vm1801_vm0, %v6527_v51  ;;  %v948_v51 = vmul.bf16 %v692_v45, %v436_v42  ;;  %v950_v53 = vmul.bf16 %v694_v49, %v438_v47  ;;  %v711_v42 = vld [vmem:[%s8204_s11 + $0x154] sm:$0xf]  ;;  %v457_v49 = vld [vmem:[%s8199_s27 + $0x15c] sm:$0xf] }
  0x7c   : > { %v967_v46 = vmul.bf16 %v711_v42, %v455_v40  ;;  %v472_v40 = vld [vmem:[%s8199_s27 + $0x198] sm:$0xf] }
  0x7d   : > { %v6536_v55 = vcombine.low %v948_v51, %v949_v52  ;;  %v6537_v58 = vcombine.low %v950_v53, %v951_v54  ;;  %v712_v51 = vld [vmem:[%s8204_s11 + $0x158] sm:$0xf]  ;;  %v713_v52 = vld [vmem:[%s8204_s11 + $0x15c] sm:$0xf]  ;;  %v458_v53 = vld [vmem:[%s8199_s27 + $0x160] sm:$0xf] }
  0x7e   : > { %v459_v54 = vld [vmem:[%s8199_s27 + $0x164] sm:$0xf] }
  0x82   : > { %7379 = vmatmul.mubr.msk.bf16.gmra.mrb[48].mxu0 %vm1801_vm0, %v6528_v63  ;;  %v698_v63 = vld [vmem:[%s8204_s11 + $0x120] sm:$0xf] }
  0x83   : > { %7382 = vmatprep.mubr.msk.bf16.mxu0 %vm1801_vm0, %v6529_v2  ;;  %v953_v2 = vmul.bf16 %v697_v60, %v441_v57  ;;  %v954_v3 = vmul.bf16 %v698_v63, %v442_v61  ;;  %v968_v57 = vmul.bf16 %v712_v51, %v456_v48  ;;  %v971_v60 = vmul.bf16 %v715_v56, %v459_v54  ;;  %v461_v63 = vld [vmem:[%s8199_s27 + $0x16c] sm:$0xf]  ;;  %v731_v48 = vld [vmem:[%s8204_s11 + $0x1a4] sm:$0xf]  ;;  %v476_v54 = vld [vmem:[%s8199_s27 + $0x1a8] sm:$0xf] }
  0x85   : > { %v6538_v5 = vcombine.low %v952_v1, %v953_v2  ;;  %v6539_v8 = vcombine.low %v954_v3, %v955_v4  ;;  %v716_v1 = vld [vmem:[%s8204_s11 + $0x168] sm:$0xf]  ;;  %v717_v2 = vld [vmem:[%s8204_s11 + $0x16c] sm:$0xf]  ;;  %v462_v3 = vld [vmem:[%s8199_s27 + $0x170] sm:$0xf] }
  0x86   : > { %v463_v4 = vld [vmem:[%s8199_s27 + $0x174] sm:$0xf] }
  0x8a   : > { %7383 = vmatmul.mubr.msk.bf16.gmra.mrb[52].mxu0 %vm1801_vm0, %v6530_v13  ;;  %v702_v13 = vld [vmem:[%s8204_s11 + $0x130] sm:$0xf] }
  0x8b   : > { %7386 = vmatprep.mubr.msk.bf16.mxu0 %vm1801_vm0, %v6531_v16  ;;  %v957_v16 = vmul.bf16 %v701_v10, %v445_v7  ;;  %v958_v17 = vmul.bf16 %v702_v13, %v446_v11  ;;  %v972_v7 = vmul.bf16 %v716_v1, %v460_v62  ;;  %v975_v10 = vmul.bf16 %v719_v6, %v463_v4  ;;  %v465_v13 = vld [vmem:[%s8199_s27 + $0x17c] sm:$0xf]  ;;  %v735_v62 = vld [vmem:[%s8204_s11 + $0x1b4] sm:$0xf]  ;;  %v480_v4 = vld [vmem:[%s8199_s27 + $0x1b8] sm:$0xf] }
  0x8d   : > { %v6540_v19 = vcombine.low %v956_v15, %v957_v16  ;;  %v6541_v22 = vcombine.low %v958_v17, %v959_v18  ;;  %v720_v15 = vld [vmem:[%s8204_s11 + $0x178] sm:$0xf]  ;;  %v721_v16 = vld [vmem:[%s8204_s11 + $0x17c] sm:$0xf]  ;;  %v466_v17 = vld [vmem:[%s8199_s27 + $0x180] sm:$0xf] }
  0x8e   : > { %v467_v18 = vld [vmem:[%s8199_s27 + $0x184] sm:$0xf] }
  0x92   : > { %7387 = vmatmul.mubr.msk.bf16.gmra.mrb[56].mxu0 %vm1801_vm0, %v6532_v27  ;;  %v706_v27 = vld [vmem:[%s8204_s11 + $0x140] sm:$0xf] }
  0x93   : > { %7390 = vmatprep.mubr.msk.bf16.mxu0 %vm1801_vm0, %v6533_v30  ;;  %v961_v30 = vmul.bf16 %v705_v24, %v449_v21  ;;  %v962_v31 = vmul.bf16 %v706_v27, %v450_v25  ;;  %v976_v21 = vmul.bf16 %v720_v15, %v464_v12  ;;  %v979_v24 = vmul.bf16 %v723_v20, %v467_v18  ;;  %v469_v27 = vld [vmem:[%s8199_s27 + $0x18c] sm:$0xf]  ;;  %v739_v12 = vld [vmem:[%s8204_s11 + $0x1c4] sm:$0xf]  ;;  %v8497_v15 = vld [vmem:[%s10088_s3] ss:$0 sm:$0xff] }
  0x94   : > { %v485_v20 = vld [vmem:[%s8199_s27 + $0x1cc] sm:$0xf] }
  0x95   : > { %v6542_v33 = vcombine.low %v960_v29, %v961_v30  ;;  %v6543_v36 = vcombine.low %v962_v31, %v963_v32  ;;  %v724_v29 = vld [vmem:[%s8204_s11 + $0x188] sm:$0xf]  ;;  %v725_v30 = vld [vmem:[%s8204_s11 + $0x18c] sm:$0xf]  ;;  %v470_v31 = vld [vmem:[%s8199_s27 + $0x190] sm:$0xf] }
  0x96   : > { %v471_v32 = vld [vmem:[%s8199_s27 + $0x194] sm:$0xf] }
  0x9a   : > { %7391 = vmatmul.mubr.msk.bf16.gmra.mrb[60].mxu0 %vm1801_vm0, %v6534_v41  ;;  %v710_v41 = vld [vmem:[%s8204_s11 + $0x150] sm:$0xf] }
  0x9b   : > { %7394 = vmatprep.mubr.msk.bf16.mxu0 %vm1801_vm0, %v6535_v44  ;;  %v965_v44 = vmul.bf16 %v709_v38, %v453_v35  ;;  %v966_v45 = vmul.bf16 %v710_v41, %v454_v39  ;;  %v980_v35 = vmul.bf16 %v724_v29, %v468_v26  ;;  %v983_v38 = vmul.bf16 %v727_v34, %v471_v32  ;;  %v473_v41 = vld [vmem:[%s8199_s27 + $0x19c] sm:$0xf]  ;;  %v486_v29 = vld [vmem:[%s8199_s27 + $0x1d0] sm:$0xf]  ;;  %v743_v34 = vld [vmem:[%s8204_s11 + $0x1d4] sm:$0xf] }
  0x9d   : > { %v6544_v47 = vcombine.low %v964_v43, %v965_v44  ;;  %v6545_v50 = vcombine.low %v966_v45, %v967_v46  ;;  %v728_v43 = vld [vmem:[%s8204_s11 + $0x198] sm:$0xf]  ;;  %v729_v44 = vld [vmem:[%s8204_s11 + $0x19c] sm:$0xf]  ;;  %v474_v45 = vld [vmem:[%s8199_s27 + $0x1a0] sm:$0xf] }
  0x9e   : > { %v475_v46 = vld [vmem:[%s8199_s27 + $0x1a4] sm:$0xf] }
  0xa2   : > { %7395 = vmatmul.mubr.msk.bf16.gmra.mrb[64].mxu0 %vm1801_vm0, %v6536_v55  ;;  %v714_v55 = vld [vmem:[%s8204_s11 + $0x160] sm:$0xf] }
  0xa3   : > { %7398 = vmatprep.mubr.msk.bf16.mxu0 %vm1801_vm0, %v6537_v58  ;;  %v969_v58 = vmul.bf16 %v713_v52, %v457_v49  ;;  %v970_v59 = vmul.bf16 %v714_v55, %v458_v53  ;;  %v984_v49 = vmul.bf16 %v728_v43, %v472_v40  ;;  %v987_v52 = vmul.bf16 %v731_v48, %v475_v46  ;;  %v477_v55 = vld [vmem:[%s8199_s27 + $0x1ac] sm:$0xf]  ;;  %v489_v48 = vld [vmem:[%s8199_s27 + $0x1dc] sm:$0xf] }
  0xa5   : > { %v6546_v61 = vcombine.low %v968_v57, %v969_v58  ;;  %v6547_v0 = vcombine.low %v970_v59, %v971_v60  ;;  %v732_v57 = vld [vmem:[%s8204_s11 + $0x1a8] sm:$0xf]  ;;  %v733_v58 = vld [vmem:[%s8204_s11 + $0x1ac] sm:$0xf]  ;;  %v478_v59 = vld [vmem:[%s8199_s27 + $0x1b0] sm:$0xf] }
  0xa6   : > { %v479_v60 = vld [vmem:[%s8199_s27 + $0x1b4] sm:$0xf] }
  0xaa   : > { %7399 = vmatmul.mubr.msk.bf16.gmra.mrb[68].mxu0 %vm1801_vm0, %v6538_v5  ;;  %v718_v5 = vld [vmem:[%s8204_s11 + $0x170] sm:$0xf] }
  0xab   : > { %7402 = vmatprep.mubr.msk.bf16.mxu0 %vm1801_vm0, %v6539_v8  ;;  %v973_v8 = vmul.bf16 %v717_v2, %v461_v63  ;;  %v974_v9 = vmul.bf16 %v718_v5, %v462_v3  ;;  %v988_v63 = vmul.bf16 %v732_v57, %v476_v54  ;;  %v991_v2 = vmul.bf16 %v735_v62, %v479_v60  ;;  %v481_v5 = vld [vmem:[%s8199_s27 + $0x1bc] sm:$0xf]  ;;  %v490_v57 = vld [vmem:[%s8199_s27 + $0x1e0] sm:$0xf]  ;;  %v747_v62 = vld [vmem:[%s8204_s11 + $0x1e4] sm:$0xf] }
  0xad   : > { %v6548_v11 = vcombine.low %v972_v7, %v973_v8  ;;  %v6549_v14 = vcombine.low %v974_v9, %v975_v10  ;;  %v736_v7 = vld [vmem:[%s8204_s11 + $0x1b8] sm:$0xf]  ;;  %v737_v8 = vld [vmem:[%s8204_s11 + $0x1bc] sm:$0xf]  ;;  %v482_v9 = vld [vmem:[%s8199_s27 + $0x1c0] sm:$0xf] }
  0xae   : > { %v483_v10 = vld [vmem:[%s8199_s27 + $0x1c4] sm:$0xf] }
  0xb2   : > { %7403 = vmatmul.mubr.msk.bf16.gmra.mrb[72].mxu0 %vm1801_vm0, %v6540_v19  ;;  %v722_v19 = vld [vmem:[%s8204_s11 + $0x180] sm:$0xf] }
  0xb3   : > { %7406 = vmatprep.mubr.msk.bf16.mxu0 %vm1801_vm0, %v6541_v22  ;;  %v977_v22 = vmul.bf16 %v721_v16, %v465_v13  ;;  %v978_v23 = vmul.bf16 %v722_v19, %v466_v17  ;;  %v992_v13 = vmul.bf16 %v736_v7, %v480_v4  ;;  %v995_v17 = vmul.bf16 %v739_v12, %v483_v10  ;;  %v484_v19 = vld [vmem:[%s8199_s27 + $0x1c8] sm:$0xf]  ;;  %v493_v12 = vld [vmem:[%s8199_s27 + $0x1ec] sm:$0xf] }
  0xb5   : > { %v6550_v25 = vcombine.low %v976_v21, %v977_v22  ;;  %v6551_v28 = vcombine.low %v978_v23, %v979_v24  ;;  %v740_v24 = vld [vmem:[%s8204_s11 + $0x1c8] sm:$0xf] }
  0xba   : > { %7407 = vmatmul.mubr.msk.bf16.gmra.mrb[76].mxu0 %vm1801_vm0, %v6542_v33  ;;  %v726_v33 = vld [vmem:[%s8204_s11 + $0x190] sm:$0xf] }
  0xbb   : > { %7410 = vmatprep.mubr.msk.bf16.mxu0 %vm1801_vm0, %v6543_v36  ;;  %v981_v36 = vmul.bf16 %v725_v30, %v469_v27  ;;  %v982_v37 = vmul.bf16 %v726_v33, %v470_v31  ;;  %v487_v30 = vld [vmem:[%s8199_s27 + $0x1d4] sm:$0xf]  ;;  %v742_v33 = vld [vmem:[%s8204_s11 + $0x1d0] sm:$0xf] }
  0xbc   : > { %v999_v43 = vmul.bf16 %v743_v34, %v487_v30 }
  0xbd   : > { %v6552_v39 = vcombine.low %v980_v35, %v981_v36  ;;  %v6553_v42 = vcombine.low %v982_v37, %v983_v38  ;;  %v996_v38 = vmul.bf16 %v740_v24, %v484_v19 }
  0xc2   : > { %7411 = vmatmul.mubr.msk.bf16.gmra.mrb[80].mxu0 %vm1801_vm0, %v6544_v47  ;;  %v730_v47 = vld [vmem:[%s8204_s11 + $0x1a0] sm:$0xf] }
  0xc3   : > { %7414 = vmatprep.mubr.msk.bf16.mxu0 %vm1801_vm0, %v6545_v50  ;;  %v985_v50 = vmul.bf16 %v729_v44, %v473_v41  ;;  %v986_v51 = vmul.bf16 %v730_v47, %v474_v45  ;;  %v488_v47 = vld [vmem:[%s8199_s27 + $0x1d8] sm:$0xf] }
  0xc5   : > { %v6554_v53 = vcombine.low %v984_v49, %v985_v50  ;;  %v6555_v56 = vcombine.low %v986_v51, %v987_v52  ;;  %v744_v52 = vld [vmem:[%s8204_s11 + $0x1d8] sm:$0xf] }
  0xca   : > { %7415 = vmatmul.mubr.msk.bf16.gmra.mrb[84].mxu0 %vm1801_vm0, %v6546_v61  ;;  %v734_v61 = vld [vmem:[%s8204_s11 + $0x1b0] sm:$0xf] }
  0xcb   : > { %7418 = vmatprep.mubr.msk.bf16.mxu0 %vm1801_vm0, %v6547_v0  ;;  %v989_v0 = vmul.bf16 %v733_v58, %v477_v55  ;;  %v990_v1 = vmul.bf16 %v734_v61, %v478_v59  ;;  %v491_v58 = vld [vmem:[%s8199_s27 + $0x1e4] sm:$0xf]  ;;  %v746_v61 = vld [vmem:[%s8204_s11 + $0x1e0] sm:$0xf] }
  0xcc   : > { %v1003_v7 = vmul.bf16 %v747_v62, %v491_v58 }
  0xcd   : > { %v6556_v3 = vcombine.low %v988_v63, %v989_v0  ;;  %v6557_v6 = vcombine.low %v990_v1, %v991_v2  ;;  %v1000_v2 = vmul.bf16 %v744_v52, %v488_v47 }
  0xd2   : > { %7419 = vmatmul.mubr.msk.bf16.gmra.mrb[88].mxu0 %vm1801_vm0, %v6548_v11  ;;  %v738_v11 = vld [vmem:[%s8204_s11 + $0x1c0] sm:$0xf] }
  0xd3   : > { %7422 = vmatprep.mubr.msk.bf16.mxu0 %vm1801_vm0, %v6549_v14  ;;  %v993_v14 = vmul.bf16 %v737_v8, %v481_v5  ;;  %v994_v16 = vmul.bf16 %v738_v11, %v482_v9  ;;  %v492_v11 = vld [vmem:[%s8199_s27 + $0x1e8] sm:$0xf] }
  0xd5   : > { %v6558_v23 = vcombine.low %v992_v13, %v993_v14 }
  0xda   : > { %7423 = vmatmul.mubr.msk.bf16.gmra.mrb[92].mxu0 %vm1801_vm0, %v6550_v25  ;;  %v741_v25 = vld [vmem:[%s8204_s11 + $0x1cc] sm:$0xf] }
  0xdb   : > { %7426 = vmatprep.mubr.msk.bf16.mxu0 %vm1801_vm0, %v6551_v28  ;;  %v6559_v28 = vcombine.low %v994_v16, %v995_v17  ;;  %v748_v17 = vld [vmem:[%s8204_s11 + $0x1e8] sm:$0xf] }
  0xe2   : > { %7427 = vmatmul.mubr.msk.bf16.gmra.mrb[96].mxu0 %vm1801_vm0, %v6552_v39  ;;  %v997_v39 = vmul.bf16 %v741_v25, %v485_v20 }
  0xe3   : > { %7430 = vmatprep.mubr.msk.bf16.mxu0 %vm1801_vm0, %v6553_v42  ;;  %v998_v42 = vmul.bf16 %v742_v33, %v486_v29 }
  0xe4   : > { %v6560_v51 = vcombine.low %v996_v38, %v997_v39 }
  0xea   : > { %7431 = vmatmul.mubr.msk.bf16.gmra.mrb[100].mxu0 %vm1801_vm0, %v6554_v53  ;;  %v745_v53 = vld [vmem:[%s8204_s11 + $0x1dc] sm:$0xf] }
  0xeb   : > { %7434 = vmatprep.mubr.msk.bf16.mxu0 %vm1801_vm0, %v6555_v56  ;;  %v6561_v56 = vcombine.low %v998_v42, %v999_v43 }
  0xf2   : > { %7435 = vmatmul.mubr.msk.bf16.gmra.mrb[104].mxu0 %vm1801_vm0, %v6556_v3  ;;  %v1001_v3 = vmul.bf16 %v745_v53, %v489_v48 }
  0xf3   : > { %7438 = vmatprep.mubr.msk.bf16.mxu0 %vm1801_vm0, %v6557_v6  ;;  %v1002_v6 = vmul.bf16 %v746_v61, %v490_v57 }
  0xf4   : > { %v6562_v16 = vcombine.low %v1000_v2, %v1001_v3 }
  0xf5   : > { %v7332_v18 = vpop.f32.mrb[0].mxu0 }
  0xf6   : > { %v2229_v21 = vadd.f32 %v7332_v18, %v8497_v15  ;;  %v2220_v22 = vpop.f32.mrb[1].mxu0  ;;  %v749_v18 = vld [vmem:[%s8204_s11 + $0x1ec] sm:$0xf] }
  0xf7   : > { %v2221_v26 = vadd.f32 %v8497_v15, %v2220_v22  ;;  %v7333_v27 = vpop.f32.mrb[2].mxu0  ;;  %v494_v22 = vld [vmem:[%s8199_s27 + $0x1f0] sm:$0xf] }
  0xf8   : > { %v2232_v31 = vadd.f32 %v7333_v27, %v8497_v15  ;;  %v2223_v32 = vpop.f32.mrb[3].mxu0  ;;  %v3245_v36 = vmax.f32 %v2229_v21, 0.0  ;;  %v6563_v21 = vcombine.low %v1002_v6, %v1003_v7  ;;  %v751_v27 = vld [vmem:[%s8204_s11 + $0x1f4] sm:$0xf] }
  0xf9   : > { %v2224_v35 = vadd.f32 %v8497_v15, %v2223_v32  ;;  %v3243_v40 = vmax.f32 %v2221_v26, 0.0  ;;  %v750_v26 = vld [vmem:[%s8204_s11 + $0x1f0] sm:$0xf]  ;;  %v1005_v32 = vmul.bf16 %v749_v18, %v493_v12 }
  0xfa   : > { %v3246_v37 = vmax.f32 %v2232_v31, 0.0  ;;  %7439 = vmatmul.mubr.msk.bf16.gmra.mrb[108].mxu0 %vm1801_vm0, %v6558_v23  ;;  %v495_v23 = vld [vmem:[%s8199_s27 + $0x1f4] sm:$0xf]  ;;  %v1004_v31 = vmul.bf16 %v748_v17, %v492_v11 }
  0xfb   : > { %v3244_v41 = vmax.f32 %v2224_v35, 0.0  ;;  %7442 = vmatprep.mubr.msk.bf16.mxu0 %vm1801_vm0, %v6559_v28  ;;  %v1006_v35 = vmul.bf16 %v750_v26, %v494_v22 }
  0xfc   : > { %v3500_v44 = vpack.c.bf16 %v3246_v37, %v3245_v36  ;;  %v1007_v36 = vmul.bf16 %v751_v27, %v495_v23 }
  0xfd   : > { %v7336_v45 = vpop.f32.mrb[4].mxu0  ;;  %v3499_v46 = vpack.c.bf16 %v3244_v41, %v3243_v40  ;;  %v496_v40 = vld [vmem:[%s8199_s27 + $0x1f8] sm:$0xf]  ;;  %v497_v41 = vld [vmem:[%s8199_s27 + $0x1fc] sm:$0xf] }
  0xfe   : > { %v2245_v49 = vadd.f32 %v7336_v45, %v8497_v15  ;;  %v2236_v50 = vpop.f32.mrb[5].mxu0  ;;  %v752_v45 = vld [vmem:[%s8204_s11 + $0x1f8] sm:$0xf] }
  0xff   : > { %v2237_v54 = vadd.f32 %v8497_v15, %v2236_v50  ;;  %v7337_v55 = vpop.f32.mrb[6].mxu0  ;;  %7590 = vmatprep.mubr.msk.bf16.mxu1 %vm1801_vm0, %v3499_v46  ;;  %v753_v46 = vld [vmem:[%s8204_s11 + $0x1fc] sm:$0xf]  ;;  %v498_v50 = vld [vmem:[%s8199_s27 + $0x200] sm:$0xf] }
 0x100   : > { %v2248_v59 = vadd.f32 %v7337_v55, %v8497_v15  ;;  %v2239_v60 = vpop.f32.mrb[7].mxu0  ;;  %7591 = vmatmul.mubr.msk.bf16.vlgmr.msra.gmra.mrb[0].mxu1 %vm1801_vm0, %v3500_v44  ;;  %v3249_v0 = vmax.f32 %v2245_v49, 0.0  ;;  %v6564_v44 = vcombine.low %v1004_v31, %v1005_v32  ;;  %v6565_v49 = vcombine.low %v1006_v35, %v1007_v36  ;;  %v755_v55 = vld [vmem:[%s8204_s11 + $0x204] sm:$0xf] }
 0x101   : > { %v2240_v63 = vadd.f32 %v8497_v15, %v2239_v60  ;;  %v3247_v4 = vmax.f32 %v2237_v54, 0.0  ;;  %v754_v54 = vld [vmem:[%s8204_s11 + $0x200] sm:$0xf]  ;;  %v1009_v60 = vmul.bf16 %v753_v46, %v497_v41 }
 0x102   : > { %v3250_v1 = vmax.f32 %v2248_v59, 0.0  ;;  %7443 = vmatmul.mubr.msk.bf16.gmra.mrb[112].mxu0 %vm1801_vm0, %v6560_v51  ;;  %v499_v51 = vld [vmem:[%s8199_s27 + $0x204] sm:$0xf]  ;;  %v1008_v59 = vmul.bf16 %v752_v45, %v496_v40 }
 0x103   : > { %v3248_v5 = vmax.f32 %v2240_v63, 0.0  ;;  %7446 = vmatprep.mubr.msk.bf16.mxu0 %vm1801_vm0, %v6561_v56  ;;  %v1010_v63 = vmul.bf16 %v754_v54, %v498_v50 }
 0x104   : > { %v3502_v8 = vpack.c.bf16 %v3250_v1, %v3249_v0  ;;  %v1011_v0 = vmul.bf16 %v755_v55, %v499_v51 }
 0x105   : > { %v3501_v9 = vpack.c.bf16 %v3248_v5, %v3247_v4  ;;  %v7340_v10 = vpop.f32.mrb[8].mxu0  ;;  %v500_v4 = vld [vmem:[%s8199_s27 + $0x208] sm:$0xf]  ;;  %v501_v5 = vld [vmem:[%s8199_s27 + $0x20c] sm:$0xf] }
 0x106   : > { %v2261_v13 = vadd.f32 %v7340_v10, %v8497_v15  ;;  %v2252_v14 = vpop.f32.mrb[9].mxu0  ;;  %v757_v10 = vld [vmem:[%s8204_s11 + $0x20c] sm:$0xf] }
 0x107   : > { %v2253_v19 = vadd.f32 %v8497_v15, %v2252_v14  ;;  %v7341_v20 = vpop.f32.mrb[10].mxu0  ;;  %7594 = vmatprep.mubr.msk.bf16.mxu1 %vm1801_vm0, %v3501_v9  ;;  %v756_v9 = vld [vmem:[%s8204_s11 + $0x208] sm:$0xf]  ;;  %v502_v14 = vld [vmem:[%s8199_s27 + $0x210] sm:$0xf] }
 0x108   : > { %v2264_v24 = vadd.f32 %v7341_v20, %v8497_v15  ;;  %v2255_v25 = vpop.f32.mrb[11].mxu0  ;;  %7595 = vmatmul.mubr.msk.bf16.gmra.mrb[4].mxu1 %vm1801_vm0, %v3502_v8  ;;  %v3253_v29 = vmax.f32 %v2261_v13, 0.0  ;;  %v6566_v8 = vcombine.low %v1008_v59, %v1009_v60  ;;  %v6567_v13 = vcombine.low %v1010_v63, %v1011_v0  ;;  %v759_v20 = vld [vmem:[%s8204_s11 + $0x214] sm:$0xf] }
 0x109   : > { %v2256_v28 = vadd.f32 %v8497_v15, %v2255_v25  ;;  %v3251_v33 = vmax.f32 %v2253_v19, 0.0  ;;  %v758_v19 = vld [vmem:[%s8204_s11 + $0x210] sm:$0xf]  ;;  %v1013_v25 = vmul.bf16 %v757_v10, %v501_v5 }
 0x10a   : > { %v3254_v30 = vmax.f32 %v2264_v24, 0.0  ;;  %7447 = vmatmul.mubr.msk.bf16.gmra.mrb[116].mxu0 %vm1801_vm0, %v6562_v16  ;;  %v503_v16 = vld [vmem:[%s8199_s27 + $0x214] sm:$0xf]  ;;  %v1012_v24 = vmul.bf16 %v756_v9, %v500_v4 }
 0x10b   : > { %v3252_v34 = vmax.f32 %v2256_v28, 0.0  ;;  %7450 = vmatprep.mubr.msk.bf16.mxu0 %vm1801_vm0, %v6563_v21  ;;  %v1014_v28 = vmul.bf16 %v758_v19, %v502_v14 }
 0x10c   : > { %v3504_v37 = vpack.c.bf16 %v3254_v30, %v3253_v29  ;;  %v1015_v29 = vmul.bf16 %v759_v20, %v503_v16 }
 0x10d   : > { %v3503_v38 = vpack.c.bf16 %v3252_v34, %v3251_v33  ;;  %v7344_v39 = vpop.f32.mrb[12].mxu0  ;;  %v504_v33 = vld [vmem:[%s8199_s27 + $0x218] sm:$0xf]  ;;  %v505_v34 = vld [vmem:[%s8199_s27 + $0x21c] sm:$0xf] }
 0x10e   : > { %v2277_v42 = vadd.f32 %v7344_v39, %v8497_v15  ;;  %v2268_v43 = vpop.f32.mrb[13].mxu0  ;;  %v761_v39 = vld [vmem:[%s8204_s11 + $0x21c] sm:$0xf] }
 0x10f   : > { %v2269_v47 = vadd.f32 %v8497_v15, %v2268_v43  ;;  %v7345_v48 = vpop.f32.mrb[14].mxu0  ;;  %7598 = vmatprep.mubr.msk.bf16.mxu1 %vm1801_vm0, %v3503_v38  ;;  %v760_v38 = vld [vmem:[%s8204_s11 + $0x218] sm:$0xf]  ;;  %v506_v43 = vld [vmem:[%s8199_s27 + $0x220] sm:$0xf] }
 0x110   : > { %v2280_v52 = vadd.f32 %v7345_v48, %v8497_v15  ;;  %v2271_v53 = vpop.f32.mrb[15].mxu0  ;;  %7599 = vmatmul.mubr.msk.bf16.gmra.mrb[8].mxu1 %vm1801_vm0, %v3504_v37  ;;  %v3257_v57 = vmax.f32 %v2277_v42, 0.0  ;;  %v6568_v37 = vcombine.low %v1012_v24, %v1013_v25  ;;  %v6569_v42 = vcombine.low %v1014_v28, %v1015_v29  ;;  %v763_v48 = vld [vmem:[%s8204_s11 + $0x224] sm:$0xf] }
 0x111   : > { %v2272_v56 = vadd.f32 %v8497_v15, %v2271_v53  ;;  %v3255_v61 = vmax.f32 %v2269_v47, 0.0  ;;  %v762_v47 = vld [vmem:[%s8204_s11 + $0x220] sm:$0xf]  ;;  %v1017_v53 = vmul.bf16 %v761_v39, %v505_v34 }
 0x112   : > { %v3258_v58 = vmax.f32 %v2280_v52, 0.0  ;;  %7451 = vmatmul.mubr.msk.bf16.gmra.mrb[120].mxu0 %vm1801_vm0, %v6564_v44  ;;  %v507_v44 = vld [vmem:[%s8199_s27 + $0x224] sm:$0xf]  ;;  %v1016_v52 = vmul.bf16 %v760_v38, %v504_v33 }
 0x113   : > { %v3256_v62 = vmax.f32 %v2272_v56, 0.0  ;;  %7454 = vmatprep.mubr.msk.bf16.mxu0 %vm1801_vm0, %v6565_v49  ;;  %v1018_v56 = vmul.bf16 %v762_v47, %v506_v43 }
 0x114   : > { %v3506_v1 = vpack.c.bf16 %v3258_v58, %v3257_v57  ;;  %v1019_v57 = vmul.bf16 %v763_v48, %v507_v44 }
 0x115   : > { %v3505_v2 = vpack.c.bf16 %v3256_v62, %v3255_v61  ;;  %v7348_v3 = vpop.f32.mrb[16].mxu0  ;;  %v508_v61 = vld [vmem:[%s8199_s27 + $0x228] sm:$0xf]  ;;  %v509_v62 = vld [vmem:[%s8199_s27 + $0x22c] sm:$0xf] }
 0x116   : > { %v2293_v6 = vadd.f32 %v7348_v3, %v8497_v15  ;;  %v2284_v7 = vpop.f32.mrb[17].mxu0  ;;  %v765_v3 = vld [vmem:[%s8204_s11 + $0x22c] sm:$0xf] }
 0x117   : > { %v2285_v11 = vadd.f32 %v8497_v15, %v2284_v7  ;;  %v7349_v12 = vpop.f32.mrb[18].mxu0  ;;  %7602 = vmatprep.mubr.msk.bf16.mxu1 %vm1801_vm0, %v3505_v2  ;;  %v764_v2 = vld [vmem:[%s8204_s11 + $0x228] sm:$0xf]  ;;  %v510_v7 = vld [vmem:[%s8199_s27 + $0x230] sm:$0xf] }
 0x118   : > { %v2296_v17 = vadd.f32 %v7349_v12, %v8497_v15  ;;  %v2287_v18 = vpop.f32.mrb[19].mxu0  ;;  %7603 = vmatmul.mubr.msk.bf16.gmra.mrb[12].mxu1 %vm1801_vm0, %v3506_v1  ;;  %v3261_v22 = vmax.f32 %v2293_v6, 0.0  ;;  %v6570_v1 = vcombine.low %v1016_v52, %v1017_v53  ;;  %v6571_v6 = vcombine.low %v1018_v56, %v1019_v57  ;;  %v767_v12 = vld [vmem:[%s8204_s11 + $0x234] sm:$0xf] }
 0x119   : > { %v2288_v21 = vadd.f32 %v8497_v15, %v2287_v18  ;;  %v3259_v26 = vmax.f32 %v2285_v11, 0.0  ;;  %v766_v11 = vld [vmem:[%s8204_s11 + $0x230] sm:$0xf]  ;;  %v1021_v18 = vmul.bf16 %v765_v3, %v509_v62 }
 0x11a   : > { %v3262_v23 = vmax.f32 %v2296_v17, 0.0  ;;  %7455 = vmatmul.mubr.msk.bf16.gmra.mrb[124].mxu0 %vm1801_vm0, %v6566_v8  ;;  %v511_v8 = vld [vmem:[%s8199_s27 + $0x234] sm:$0xf]  ;;  %v1020_v17 = vmul.bf16 %v764_v2, %v508_v61 }
 0x11b   : > { %v3260_v27 = vmax.f32 %v2288_v21, 0.0  ;;  %7458 = vmatprep.mubr.msk.bf16.mxu0 %vm1801_vm0, %v6567_v13  ;;  %v1022_v21 = vmul.bf16 %v766_v11, %v510_v7 }
 0x11c   : > { %v3508_v30 = vpack.c.bf16 %v3262_v23, %v3261_v22  ;;  %v1023_v22 = vmul.bf16 %v767_v12, %v511_v8 }
 0x11d   : > { %v3507_v31 = vpack.c.bf16 %v3260_v27, %v3259_v26  ;;  %v7352_v32 = vpop.f32.mrb[20].mxu0  ;;  %v512_v26 = vld [vmem:[%s8199_s27 + $0x238] sm:$0xf]  ;;  %v513_v27 = vld [vmem:[%s8199_s27 + $0x23c] sm:$0xf] }
 0x11e   : > { %v2309_v35 = vadd.f32 %v7352_v32, %v8497_v15  ;;  %v2300_v36 = vpop.f32.mrb[21].mxu0  ;;  %v769_v32 = vld [vmem:[%s8204_s11 + $0x23c] sm:$0xf] }
 0x11f   : > { %v2301_v40 = vadd.f32 %v8497_v15, %v2300_v36  ;;  %v7353_v41 = vpop.f32.mrb[22].mxu0  ;;  %7606 = vmatprep.mubr.msk.bf16.mxu1 %vm1801_vm0, %v3507_v31  ;;  %v768_v31 = vld [vmem:[%s8204_s11 + $0x238] sm:$0xf]  ;;  %v514_v36 = vld [vmem:[%s8199_s27 + $0x240] sm:$0xf] }
 0x120   : > { %v2312_v45 = vadd.f32 %v7353_v41, %v8497_v15  ;;  %v2303_v46 = vpop.f32.mrb[23].mxu0  ;;  %7607 = vmatmul.mubr.msk.bf16.gmra.mrb[16].mxu1 %vm1801_vm0, %v3508_v30  ;;  %v3265_v50 = vmax.f32 %v2309_v35, 0.0  ;;  %v6572_v30 = vcombine.low %v1020_v17, %v1021_v18  ;;  %v6573_v35 = vcombine.low %v1022_v21, %v1023_v22  ;;  %v771_v41 = vld [vmem:[%s8204_s11 + $0x244] sm:$0xf] }
 0x121   : > { %v2304_v49 = vadd.f32 %v8497_v15, %v2303_v46  ;;  %v3263_v54 = vmax.f32 %v2301_v40, 0.0  ;;  %v770_v40 = vld [vmem:[%s8204_s11 + $0x240] sm:$0xf]  ;;  %v1025_v46 = vmul.bf16 %v769_v32, %v513_v27 }
 0x122   : > { %v3266_v51 = vmax.f32 %v2312_v45, 0.0  ;;  %7459 = vmatmul.mubr.msk.bf16.gmra.mrb[128].mxu0 %vm1801_vm0, %v6568_v37  ;;  %v515_v37 = vld [vmem:[%s8199_s27 + $0x244] sm:$0xf]  ;;  %v1024_v45 = vmul.bf16 %v768_v31, %v512_v26 }
 0x123   : > { %v3264_v55 = vmax.f32 %v2304_v49, 0.0  ;;  %7462 = vmatprep.mubr.msk.bf16.mxu0 %vm1801_vm0, %v6569_v42  ;;  %v1026_v49 = vmul.bf16 %v770_v40, %v514_v36 }
 0x124   : > { %v3510_v58 = vpack.c.bf16 %v3266_v51, %v3265_v50  ;;  %v1027_v50 = vmul.bf16 %v771_v41, %v515_v37 }
 0x125   : > { %v3509_v59 = vpack.c.bf16 %v3264_v55, %v3263_v54  ;;  %v7356_v60 = vpop.f32.mrb[24].mxu0  ;;  %v516_v54 = vld [vmem:[%s8199_s27 + $0x248] sm:$0xf]  ;;  %v517_v55 = vld [vmem:[%s8199_s27 + $0x24c] sm:$0xf] }
 0x126   : > { %v2325_v63 = vadd.f32 %v7356_v60, %v8497_v15  ;;  %v2316_v0 = vpop.f32.mrb[25].mxu0  ;;  %v773_v60 = vld [vmem:[%s8204_s11 + $0x24c] sm:$0xf] }
 0x127   : > { %v2317_v4 = vadd.f32 %v8497_v15, %v2316_v0  ;;  %v7357_v5 = vpop.f32.mrb[26].mxu0  ;;  %7610 = vmatprep.mubr.msk.bf16.mxu1 %vm1801_vm0, %v3509_v59  ;;  %v772_v59 = vld [vmem:[%s8204_s11 + $0x248] sm:$0xf]  ;;  %v518_v0 = vld [vmem:[%s8199_s27 + $0x250] sm:$0xf] }
 0x128   : > { %v2328_v9 = vadd.f32 %v7357_v5, %v8497_v15  ;;  %v2319_v10 = vpop.f32.mrb[27].mxu0  ;;  %7611 = vmatmul.mubr.msk.bf16.gmra.mrb[20].mxu1 %vm1801_vm0, %v3510_v58  ;;  %v3269_v14 = vmax.f32 %v2325_v63, 0.0  ;;  %v6574_v58 = vcombine.low %v1024_v45, %v1025_v46  ;;  %v6575_v63 = vcombine.low %v1026_v49, %v1027_v50  ;;  %v775_v5 = vld [vmem:[%s8204_s11 + $0x254] sm:$0xf] }
 0x129   : > { %v2320_v13 = vadd.f32 %v8497_v15, %v2319_v10  ;;  %v3267_v19 = vmax.f32 %v2317_v4, 0.0  ;;  %v774_v4 = vld [vmem:[%s8204_s11 + $0x250] sm:$0xf]  ;;  %v1029_v10 = vmul.bf16 %v773_v60, %v517_v55 }
 0x12a   : > { %v3270_v16 = vmax.f32 %v2328_v9, 0.0  ;;  %7463 = vmatmul.mubr.msk.bf16.gmra.mrb[132].mxu0 %vm1801_vm0, %v6570_v1  ;;  %v519_v1 = vld [vmem:[%s8199_s27 + $0x254] sm:$0xf]  ;;  %v1028_v9 = vmul.bf16 %v772_v59, %v516_v54 }
 0x12b   : > { %v3268_v20 = vmax.f32 %v2320_v13, 0.0  ;;  %7466 = vmatprep.mubr.msk.bf16.mxu0 %vm1801_vm0, %v6571_v6  ;;  %v1030_v13 = vmul.bf16 %v774_v4, %v518_v0 }
 0x12c   : > { %v3512_v23 = vpack.c.bf16 %v3270_v16, %v3269_v14  ;;  %v1031_v14 = vmul.bf16 %v775_v5, %v519_v1 }
 0x12d   : > { %v3511_v24 = vpack.c.bf16 %v3268_v20, %v3267_v19  ;;  %v7360_v25 = vpop.f32.mrb[28].mxu0  ;;  %v520_v19 = vld [vmem:[%s8199_s27 + $0x258] sm:$0xf]  ;;  %v521_v20 = vld [vmem:[%s8199_s27 + $0x25c] sm:$0xf] }
 0x12e   : > { %v2341_v28 = vadd.f32 %v7360_v25, %v8497_v15  ;;  %v2332_v29 = vpop.f32.mrb[29].mxu0  ;;  %v777_v25 = vld [vmem:[%s8204_s11 + $0x25c] sm:$0xf] }
 0x12f   : > { %v2333_v33 = vadd.f32 %v8497_v15, %v2332_v29  ;;  %v7361_v34 = vpop.f32.mrb[30].mxu0  ;;  %7614 = vmatprep.mubr.msk.bf16.mxu1 %vm1801_vm0, %v3511_v24  ;;  %v776_v24 = vld [vmem:[%s8204_s11 + $0x258] sm:$0xf]  ;;  %v522_v29 = vld [vmem:[%s8199_s27 + $0x260] sm:$0xf] }
 0x130   : > { %v2344_v38 = vadd.f32 %v7361_v34, %v8497_v15  ;;  %v2335_v39 = vpop.f32.mrb[31].mxu0  ;;  %7615 = vmatmul.mubr.msk.bf16.gmra.mrb[24].mxu1 %vm1801_vm0, %v3512_v23  ;;  %v3273_v43 = vmax.f32 %v2341_v28, 0.0  ;;  %v6576_v23 = vcombine.low %v1028_v9, %v1029_v10  ;;  %v6577_v28 = vcombine.low %v1030_v13, %v1031_v14  ;;  %v779_v34 = vld [vmem:[%s8204_s11 + $0x264] sm:$0xf] }
 0x131   : > { %v2336_v42 = vadd.f32 %v8497_v15, %v2335_v39  ;;  %v3271_v47 = vmax.f32 %v2333_v33, 0.0  ;;  %v778_v33 = vld [vmem:[%s8204_s11 + $0x260] sm:$0xf]  ;;  %v1033_v39 = vmul.bf16 %v777_v25, %v521_v20 }
 0x132   : > { %v3274_v44 = vmax.f32 %v2344_v38, 0.0  ;;  %7467 = vmatmul.mubr.msk.bf16.gmra.mrb[136].mxu0 %vm1801_vm0, %v6572_v30  ;;  %v523_v30 = vld [vmem:[%s8199_s27 + $0x264] sm:$0xf]  ;;  %v1032_v38 = vmul.bf16 %v776_v24, %v520_v19 }
 0x133   : > { %v3272_v48 = vmax.f32 %v2336_v42, 0.0  ;;  %7470 = vmatprep.mubr.msk.bf16.mxu0 %vm1801_vm0, %v6573_v35  ;;  %v1034_v42 = vmul.bf16 %v778_v33, %v522_v29 }
 0x134   : > { %v3514_v51 = vpack.c.bf16 %v3274_v44, %v3273_v43  ;;  %v1035_v43 = vmul.bf16 %v779_v34, %v523_v30 }
 0x135   : > { %v3513_v52 = vpack.c.bf16 %v3272_v48, %v3271_v47  ;;  %v7364_v53 = vpop.f32.mrb[32].mxu0  ;;  %v524_v47 = vld [vmem:[%s8199_s27 + $0x268] sm:$0xf]  ;;  %v525_v48 = vld [vmem:[%s8199_s27 + $0x26c] sm:$0xf] }
 0x136   : > { %v2357_v56 = vadd.f32 %v7364_v53, %v8497_v15  ;;  %v2348_v57 = vpop.f32.mrb[33].mxu0  ;;  %v781_v53 = vld [vmem:[%s8204_s11 + $0x26c] sm:$0xf] }
 0x137   : > { %v2349_v61 = vadd.f32 %v8497_v15, %v2348_v57  ;;  %v7365_v62 = vpop.f32.mrb[34].mxu0  ;;  %7618 = vmatprep.mubr.msk.bf16.mxu1 %vm1801_vm0, %v3513_v52  ;;  %v780_v52 = vld [vmem:[%s8204_s11 + $0x268] sm:$0xf]  ;;  %v526_v57 = vld [vmem:[%s8199_s27 + $0x270] sm:$0xf] }
 0x138   : > { %v2360_v2 = vadd.f32 %v7365_v62, %v8497_v15  ;;  %v2351_v3 = vpop.f32.mrb[35].mxu0  ;;  %7619 = vmatmul.mubr.msk.bf16.gmra.mrb[28].mxu1 %vm1801_vm0, %v3514_v51  ;;  %v3277_v7 = vmax.f32 %v2357_v56, 0.0  ;;  %v6578_v51 = vcombine.low %v1032_v38, %v1033_v39  ;;  %v6579_v56 = vcombine.low %v1034_v42, %v1035_v43  ;;  %v783_v62 = vld [vmem:[%s8204_s11 + $0x274] sm:$0xf] }
 0x139   : > { %v2352_v6 = vadd.f32 %v8497_v15, %v2351_v3  ;;  %v3275_v11 = vmax.f32 %v2349_v61, 0.0  ;;  %v782_v61 = vld [vmem:[%s8204_s11 + $0x270] sm:$0xf]  ;;  %v1037_v3 = vmul.bf16 %v781_v53, %v525_v48 }
 0x13a   : > { %v3278_v8 = vmax.f32 %v2360_v2, 0.0  ;;  %7471 = vmatmul.mubr.msk.bf16.gmra.mrb[140].mxu0 %vm1801_vm0, %v6574_v58  ;;  %v527_v58 = vld [vmem:[%s8199_s27 + $0x274] sm:$0xf]  ;;  %v1036_v2 = vmul.bf16 %v780_v52, %v524_v47 }
 0x13b   : > { %v3276_v12 = vmax.f32 %v2352_v6, 0.0  ;;  %7474 = vmatprep.mubr.msk.bf16.mxu0 %vm1801_vm0, %v6575_v63  ;;  %v1038_v6 = vmul.bf16 %v782_v61, %v526_v57 }
 0x13c   : > { %v3516_v16 = vpack.c.bf16 %v3278_v8, %v3277_v7  ;;  %v1039_v7 = vmul.bf16 %v783_v62, %v527_v58 }
 0x13d   : > { %v3515_v17 = vpack.c.bf16 %v3276_v12, %v3275_v11  ;;  %v7368_v18 = vpop.f32.mrb[36].mxu0  ;;  %v528_v11 = vld [vmem:[%s8199_s27 + $0x278] sm:$0xf]  ;;  %v529_v12 = vld [vmem:[%s8199_s27 + $0x27c] sm:$0xf] }
 0x13e   : > { %v2373_v21 = vadd.f32 %v7368_v18, %v8497_v15  ;;  %v2364_v22 = vpop.f32.mrb[37].mxu0  ;;  %v785_v18 = vld [vmem:[%s8204_s11 + $0x27c] sm:$0xf] }
 0x13f   : > { %v2365_v26 = vadd.f32 %v8497_v15, %v2364_v22  ;;  %v7369_v27 = vpop.f32.mrb[38].mxu0  ;;  %7622 = vmatprep.mubr.msk.bf16.mxu1 %vm1801_vm0, %v3515_v17  ;;  %v784_v17 = vld [vmem:[%s8204_s11 + $0x278] sm:$0xf]  ;;  %v530_v22 = vld [vmem:[%s8199_s27 + $0x280] sm:$0xf] }
 0x140   : > { %v2376_v31 = vadd.f32 %v7369_v27, %v8497_v15  ;;  %v2367_v32 = vpop.f32.mrb[39].mxu0  ;;  %7623 = vmatmul.mubr.msk.bf16.gmra.mrb[32].mxu1 %vm1801_vm0, %v3516_v16  ;;  %v3281_v36 = vmax.f32 %v2373_v21, 0.0  ;;  %v6580_v16 = vcombine.low %v1036_v2, %v1037_v3  ;;  %v6581_v21 = vcombine.low %v1038_v6, %v1039_v7  ;;  %v787_v27 = vld [vmem:[%s8204_s11 + $0x284] sm:$0xf] }
 0x141   : > { %v2368_v35 = vadd.f32 %v8497_v15, %v2367_v32  ;;  %v3279_v40 = vmax.f32 %v2365_v26, 0.0  ;;  %v786_v26 = vld [vmem:[%s8204_s11 + $0x280] sm:$0xf]  ;;  %v1041_v32 = vmul.bf16 %v785_v18, %v529_v12 }
 0x142   : > { %v3282_v37 = vmax.f32 %v2376_v31, 0.0  ;;  %7475 = vmatmul.mubr.msk.bf16.gmra.mrb[144].mxu0 %vm1801_vm0, %v6576_v23  ;;  %v531_v23 = vld [vmem:[%s8199_s27 + $0x284] sm:$0xf]  ;;  %v1040_v31 = vmul.bf16 %v784_v17, %v528_v11 }
 0x143   : > { %v3280_v41 = vmax.f32 %v2368_v35, 0.0  ;;  %7478 = vmatprep.mubr.msk.bf16.mxu0 %vm1801_vm0, %v6577_v28  ;;  %v1042_v35 = vmul.bf16 %v786_v26, %v530_v22 }
 0x144   : > { %v3518_v44 = vpack.c.bf16 %v3282_v37, %v3281_v36  ;;  %v1043_v36 = vmul.bf16 %v787_v27, %v531_v23 }
 0x145   : > { %v3517_v45 = vpack.c.bf16 %v3280_v41, %v3279_v40  ;;  %v7372_v46 = vpop.f32.mrb[40].mxu0  ;;  %v532_v40 = vld [vmem:[%s8199_s27 + $0x288] sm:$0xf]  ;;  %v533_v41 = vld [vmem:[%s8199_s27 + $0x28c] sm:$0xf] }
 0x146   : > { %v2389_v49 = vadd.f32 %v7372_v46, %v8497_v15  ;;  %v2380_v50 = vpop.f32.mrb[41].mxu0  ;;  %v789_v46 = vld [vmem:[%s8204_s11 + $0x28c] sm:$0xf] }
 0x147   : > { %v2381_v54 = vadd.f32 %v8497_v15, %v2380_v50  ;;  %v7373_v55 = vpop.f32.mrb[42].mxu0  ;;  %7626 = vmatprep.mubr.msk.bf16.mxu1 %vm1801_vm0, %v3517_v45  ;;  %v788_v45 = vld [vmem:[%s8204_s11 + $0x288] sm:$0xf]  ;;  %v534_v50 = vld [vmem:[%s8199_s27 + $0x290] sm:$0xf] }
 0x148   : > { %v2392_v59 = vadd.f32 %v7373_v55, %v8497_v15  ;;  %v2383_v60 = vpop.f32.mrb[43].mxu0  ;;  %7627 = vmatmul.mubr.msk.bf16.gmra.mrb[36].mxu1 %vm1801_vm0, %v3518_v44  ;;  %v3285_v0 = vmax.f32 %v2389_v49, 0.0  ;;  %v6582_v44 = vcombine.low %v1040_v31, %v1041_v32  ;;  %v6583_v49 = vcombine.low %v1042_v35, %v1043_v36  ;;  %v791_v55 = vld [vmem:[%s8204_s11 + $0x294] sm:$0xf] }
 0x149   : > { %v2384_v63 = vadd.f32 %v8497_v15, %v2383_v60  ;;  %v3283_v4 = vmax.f32 %v2381_v54, 0.0  ;;  %v790_v54 = vld [vmem:[%s8204_s11 + $0x290] sm:$0xf]  ;;  %v1045_v60 = vmul.bf16 %v789_v46, %v533_v41 }
 0x14a   : > { %v3286_v1 = vmax.f32 %v2392_v59, 0.0  ;;  %7479 = vmatmul.mubr.msk.bf16.gmra.mrb[148].mxu0 %vm1801_vm0, %v6578_v51  ;;  %v535_v51 = vld [vmem:[%s8199_s27 + $0x294] sm:$0xf]  ;;  %v1044_v59 = vmul.bf16 %v788_v45, %v532_v40 }
 0x14b   : > { %v3284_v5 = vmax.f32 %v2384_v63, 0.0  ;;  %7482 = vmatprep.mubr.msk.bf16.mxu0 %vm1801_vm0, %v6579_v56  ;;  %v1046_v63 = vmul.bf16 %v790_v54, %v534_v50 }
 0x14c   : > { %v3520_v8 = vpack.c.bf16 %v3286_v1, %v3285_v0  ;;  %v1047_v0 = vmul.bf16 %v791_v55, %v535_v51 }
 0x14d   : > { %v3519_v9 = vpack.c.bf16 %v3284_v5, %v3283_v4  ;;  %v7376_v10 = vpop.f32.mrb[44].mxu0  ;;  %v536_v4 = vld [vmem:[%s8199_s27 + $0x298] sm:$0xf]  ;;  %v537_v5 = vld [vmem:[%s8199_s27 + $0x29c] sm:$0xf] }
 0x14e   : > { %v2405_v13 = vadd.f32 %v7376_v10, %v8497_v15  ;;  %v2396_v14 = vpop.f32.mrb[45].mxu0  ;;  %v793_v10 = vld [vmem:[%s8204_s11 + $0x29c] sm:$0xf] }
 0x14f   : > { %v2397_v19 = vadd.f32 %v8497_v15, %v2396_v14  ;;  %v7377_v20 = vpop.f32.mrb[46].mxu0  ;;  %7630 = vmatprep.mubr.msk.bf16.mxu1 %vm1801_vm0, %v3519_v9  ;;  %v792_v9 = vld [vmem:[%s8204_s11 + $0x298] sm:$0xf]  ;;  %v538_v14 = vld [vmem:[%s8199_s27 + $0x2a0] sm:$0xf] }
 0x150   : > { %v2408_v24 = vadd.f32 %v7377_v20, %v8497_v15  ;;  %v2399_v25 = vpop.f32.mrb[47].mxu0  ;;  %7631 = vmatmul.mubr.msk.bf16.gmra.mrb[40].mxu1 %vm1801_vm0, %v3520_v8  ;;  %v3289_v29 = vmax.f32 %v2405_v13, 0.0  ;;  %v6584_v8 = vcombine.low %v1044_v59, %v1045_v60  ;;  %v6585_v13 = vcombine.low %v1046_v63, %v1047_v0  ;;  %v795_v20 = vld [vmem:[%s8204_s11 + $0x2a4] sm:$0xf] }
 0x151   : > { %v2400_v28 = vadd.f32 %v8497_v15, %v2399_v25  ;;  %v3287_v33 = vmax.f32 %v2397_v19, 0.0  ;;  %v794_v19 = vld [vmem:[%s8204_s11 + $0x2a0] sm:$0xf]  ;;  %v1049_v25 = vmul.bf16 %v793_v10, %v537_v5 }
 0x152   : > { %v3290_v30 = vmax.f32 %v2408_v24, 0.0  ;;  %7483 = vmatmul.mubr.msk.bf16.gmra.mrb[152].mxu0 %vm1801_vm0, %v6580_v16  ;;  %v539_v16 = vld [vmem:[%s8199_s27 + $0x2a4] sm:$0xf]  ;;  %v1048_v24 = vmul.bf16 %v792_v9, %v536_v4 }
 0x153   : > { %v3288_v34 = vmax.f32 %v2400_v28, 0.0  ;;  %7486 = vmatprep.mubr.msk.bf16.mxu0 %vm1801_vm0, %v6581_v21  ;;  %v1050_v28 = vmul.bf16 %v794_v19, %v538_v14 }
 0x154   : > { %v3522_v37 = vpack.c.bf16 %v3290_v30, %v3289_v29  ;;  %v1051_v29 = vmul.bf16 %v795_v20, %v539_v16 }
 0x155   : > { %v3521_v38 = vpack.c.bf16 %v3288_v34, %v3287_v33  ;;  %v7380_v39 = vpop.f32.mrb[48].mxu0  ;;  %v540_v33 = vld [vmem:[%s8199_s27 + $0x2a8] sm:$0xf]  ;;  %v541_v34 = vld [vmem:[%s8199_s27 + $0x2ac] sm:$0xf] }
 0x156   : > { %v2421_v42 = vadd.f32 %v7380_v39, %v8497_v15  ;;  %v2412_v43 = vpop.f32.mrb[49].mxu0  ;;  %v797_v39 = vld [vmem:[%s8204_s11 + $0x2ac] sm:$0xf] }
 0x157   : > { %v2413_v47 = vadd.f32 %v8497_v15, %v2412_v43  ;;  %v7381_v48 = vpop.f32.mrb[50].mxu0  ;;  %7634 = vmatprep.mubr.msk.bf16.mxu1 %vm1801_vm0, %v3521_v38  ;;  %v796_v38 = vld [vmem:[%s8204_s11 + $0x2a8] sm:$0xf]  ;;  %v542_v43 = vld [vmem:[%s8199_s27 + $0x2b0] sm:$0xf] }
 0x158   : > { %v2424_v52 = vadd.f32 %v7381_v48, %v8497_v15  ;;  %v2415_v53 = vpop.f32.mrb[51].mxu0  ;;  %7635 = vmatmul.mubr.msk.bf16.gmra.mrb[44].mxu1 %vm1801_vm0, %v3522_v37  ;;  %v3293_v57 = vmax.f32 %v2421_v42, 0.0  ;;  %v6586_v37 = vcombine.low %v1048_v24, %v1049_v25  ;;  %v6587_v42 = vcombine.low %v1050_v28, %v1051_v29  ;;  %v799_v48 = vld [vmem:[%s8204_s11 + $0x2b4] sm:$0xf] }
 0x159   : > { %v2416_v56 = vadd.f32 %v8497_v15, %v2415_v53  ;;  %v3291_v61 = vmax.f32 %v2413_v47, 0.0  ;;  %v798_v47 = vld [vmem:[%s8204_s11 + $0x2b0] sm:$0xf]  ;;  %v1053_v53 = vmul.bf16 %v797_v39, %v541_v34 }
 0x15a   : > { %v3294_v58 = vmax.f32 %v2424_v52, 0.0  ;;  %7487 = vmatmul.mubr.msk.bf16.gmra.mrb[156].mxu0 %vm1801_vm0, %v6582_v44  ;;  %v543_v44 = vld [vmem:[%s8199_s27 + $0x2b4] sm:$0xf]  ;;  %v1052_v52 = vmul.bf16 %v796_v38, %v540_v33 }
 0x15b   : > { %v3292_v62 = vmax.f32 %v2416_v56, 0.0  ;;  %7490 = vmatprep.mubr.msk.bf16.mxu0 %vm1801_vm0, %v6583_v49  ;;  %v1054_v56 = vmul.bf16 %v798_v47, %v542_v43 }
 0x15c   : > { %v3524_v1 = vpack.c.bf16 %v3294_v58, %v3293_v57  ;;  %v1055_v57 = vmul.bf16 %v799_v48, %v543_v44 }
 0x15d   : > { %v3523_v2 = vpack.c.bf16 %v3292_v62, %v3291_v61  ;;  %v7384_v3 = vpop.f32.mrb[52].mxu0  ;;  %v544_v61 = vld [vmem:[%s8199_s27 + $0x2b8] sm:$0xf]  ;;  %v545_v62 = vld [vmem:[%s8199_s27 + $0x2bc] sm:$0xf] }
 0x15e   : > { %v2437_v6 = vadd.f32 %v7384_v3, %v8497_v15  ;;  %v2428_v7 = vpop.f32.mrb[53].mxu0  ;;  %v801_v3 = vld [vmem:[%s8204_s11 + $0x2bc] sm:$0xf] }
 0x15f   : > { %7638 = vmatprep.mubr.msk.bf16.mxu1 %vm1801_vm0, %v3523_v2  ;;  %v2429_v11 = vadd.f32 %v8497_v15, %v2428_v7  ;;  %v7385_v12 = vpop.f32.mrb[54].mxu0  ;;  %v800_v2 = vld [vmem:[%s8204_s11 + $0x2b8] sm:$0xf]  ;;  %v546_v7 = vld [vmem:[%s8199_s27 + $0x2c0] sm:$0xf] }
 0x160   : > { %7639 = vmatmul.mubr.msk.bf16.gmra.mrb[48].mxu1 %vm1801_vm0, %v3524_v1  ;;  %v2440_v17 = vadd.f32 %v7385_v12, %v8497_v15  ;;  %v2431_v18 = vpop.f32.mrb[55].mxu0  ;;  %v3297_v22 = vmax.f32 %v2437_v6, 0.0  ;;  %v6588_v1 = vcombine.low %v1052_v52, %v1053_v53  ;;  %v6589_v6 = vcombine.low %v1054_v56, %v1055_v57  ;;  %v803_v12 = vld [vmem:[%s8204_s11 + $0x2c4] sm:$0xf] }
 0x161   : > { %v2432_v21 = vadd.f32 %v8497_v15, %v2431_v18  ;;  %v3295_v26 = vmax.f32 %v2429_v11, 0.0  ;;  %v802_v11 = vld [vmem:[%s8204_s11 + $0x2c0] sm:$0xf]  ;;  %v1057_v18 = vmul.bf16 %v801_v3, %v545_v62 }
 0x162   : > { %v3298_v23 = vmax.f32 %v2440_v17, 0.0  ;;  %7491 = vmatmul.mubr.msk.bf16.gmra.mrb[160].mxu0 %vm1801_vm0, %v6584_v8  ;;  %v547_v8 = vld [vmem:[%s8199_s27 + $0x2c4] sm:$0xf]  ;;  %v1056_v17 = vmul.bf16 %v800_v2, %v544_v61 }
 0x163   : > { %v3296_v27 = vmax.f32 %v2432_v21, 0.0  ;;  %7494 = vmatprep.mubr.msk.bf16.mxu0 %vm1801_vm0, %v6585_v13  ;;  %v1058_v21 = vmul.bf16 %v802_v11, %v546_v7 }
 0x164   : > { %v3526_v30 = vpack.c.bf16 %v3298_v23, %v3297_v22  ;;  %v1059_v22 = vmul.bf16 %v803_v12, %v547_v8 }
 0x165   : > { %v3525_v31 = vpack.c.bf16 %v3296_v27, %v3295_v26  ;;  %v7388_v32 = vpop.f32.mrb[56].mxu0  ;;  %v549_v26 = vld [vmem:[%s8199_s27 + $0x2cc] sm:$0xf]  ;;  %v8759_v27 = vld [vmem:[%s10088_s3] ss:$0 sm:$0xff] }
 0x166   : > { %v2453_v35 = vadd.f32 %v7388_v32, %v8497_v15  ;;  %v2444_v36 = vpop.f32.mrb[57].mxu0  ;;  %v805_v32 = vld [vmem:[%s8204_s11 + $0x2cc] sm:$0xf] }
 0x167   : > { %7642 = vmatprep.mubr.msk.bf16.mxu1 %vm1801_vm0, %v3525_v31  ;;  %v2445_v40 = vadd.f32 %v8497_v15, %v2444_v36  ;;  %v7389_v41 = vpop.f32.mrb[58].mxu0  ;;  %v804_v31 = vld [vmem:[%s8204_s11 + $0x2c8] sm:$0xf]  ;;  %v550_v36 = vld [vmem:[%s8199_s27 + $0x2d0] sm:$0xf] }
 0x168   : > { %7643 = vmatmul.mubr.msk.bf16.gmra.mrb[52].mxu1 %vm1801_vm0, %v3526_v30  ;;  %v2456_v45 = vadd.f32 %v7389_v41, %v8497_v15  ;;  %v2447_v46 = vpop.f32.mrb[59].mxu0  ;;  %v3301_v50 = vmax.f32 %v2453_v35, 0.0  ;;  %v6590_v30 = vcombine.low %v1056_v17, %v1057_v18  ;;  %v6591_v35 = vcombine.low %v1058_v21, %v1059_v22  ;;  %v807_v41 = vld [vmem:[%s8204_s11 + $0x2d4] sm:$0xf] }
 0x169   : > { %v2448_v49 = vadd.f32 %v8497_v15, %v2447_v46  ;;  %v3299_v54 = vmax.f32 %v2445_v40, 0.0  ;;  %v806_v40 = vld [vmem:[%s8204_s11 + $0x2d0] sm:$0xf]  ;;  %v1061_v46 = vmul.bf16 %v805_v32, %v549_v26 }
 0x16a   : > { %v3302_v51 = vmax.f32 %v2456_v45, 0.0  ;;  %7495 = vmatmul.mubr.msk.bf16.gmra.mrb[164].mxu0 %vm1801_vm0, %v6586_v37  ;;  %v551_v37 = vld [vmem:[%s8199_s27 + $0x2d4] sm:$0xf] }
 0x16b   : > { %v3300_v55 = vmax.f32 %v2448_v49, 0.0  ;;  %7498 = vmatprep.mubr.msk.bf16.mxu0 %vm1801_vm0, %v6587_v42  ;;  %v1062_v49 = vmul.bf16 %v806_v40, %v550_v36 }
 0x16c   : > { %v3528_v58 = vpack.c.bf16 %v3302_v51, %v3301_v50  ;;  %v1063_v50 = vmul.bf16 %v807_v41, %v551_v37 }
 0x16d   : > { %v3527_v59 = vpack.c.bf16 %v3300_v55, %v3299_v54  ;;  %v7392_v60 = vpop.f32.mrb[60].mxu0  ;;  %v552_v54 = vld [vmem:[%s8199_s27 + $0x2d8] sm:$0xf]  ;;  %v553_v55 = vld [vmem:[%s8199_s27 + $0x2dc] sm:$0xf] }
 0x16e   : > { %v2469_v63 = vadd.f32 %v7392_v60, %v8497_v15  ;;  %v2460_v0 = vpop.f32.mrb[61].mxu0  ;;  %v809_v60 = vld [vmem:[%s8204_s11 + $0x2dc] sm:$0xf] }
 0x16f   : > { %7646 = vmatprep.mubr.msk.bf16.mxu1 %vm1801_vm0, %v3527_v59  ;;  %v2461_v4 = vadd.f32 %v8497_v15, %v2460_v0  ;;  %v7393_v5 = vpop.f32.mrb[62].mxu0  ;;  %v808_v59 = vld [vmem:[%s8204_s11 + $0x2d8] sm:$0xf]  ;;  %v554_v0 = vld [vmem:[%s8199_s27 + $0x2e0] sm:$0xf] }
 0x170   : > { %7647 = vmatmul.mubr.msk.bf16.gmra.mrb[56].mxu1 %vm1801_vm0, %v3528_v58  ;;  %v2472_v9 = vadd.f32 %v7393_v5, %v8497_v15  ;;  %v2463_v10 = vpop.f32.mrb[63].mxu0  ;;  %v3305_v14 = vmax.f32 %v2469_v63, 0.0  ;;  %v6593_v63 = vcombine.low %v1062_v49, %v1063_v50  ;;  %v811_v5 = vld [vmem:[%s8204_s11 + $0x2e4] sm:$0xf] }
 0x171   : > { %v2464_v13 = vadd.f32 %v8497_v15, %v2463_v10  ;;  %v3303_v19 = vmax.f32 %v2461_v4, 0.0  ;;  %v548_v15 = vld [vmem:[%s8199_s27 + $0x2c8] sm:$0xf]  ;;  %v810_v4 = vld [vmem:[%s8204_s11 + $0x2e0] sm:$0xf]  ;;  %v1065_v10 = vmul.bf16 %v809_v60, %v553_v55 }
 0x172   : > { %v3306_v16 = vmax.f32 %v2472_v9, 0.0  ;;  %7499 = vmatmul.mubr.msk.bf16.gmra.mrb[168].mxu0 %vm1801_vm0, %v6588_v1  ;;  %v1060_v45 = vmul.bf16 %v804_v31, %v548_v15  ;;  %v555_v1 = vld [vmem:[%s8199_s27 + $0x2e4] sm:$0xf]  ;;  %v1064_v9 = vmul.bf16 %v808_v59, %v552_v54 }
 0x173   : > { %v3304_v20 = vmax.f32 %v2464_v13, 0.0  ;;  %7502 = vmatprep.mubr.msk.bf16.mxu0 %vm1801_vm0, %v6589_v6  ;;  %v1066_v13 = vmul.bf16 %v810_v4, %v554_v0 }
 0x174   : > { %v3530_v23 = vpack.c.bf16 %v3306_v16, %v3305_v14  ;;  %v6592_v58 = vcombine.low %v1060_v45, %v1061_v46  ;;  %v1067_v14 = vmul.bf16 %v811_v5, %v555_v1 }
 0x175   : > { %v3529_v24 = vpack.c.bf16 %v3304_v20, %v3303_v19  ;;  %v7396_v25 = vpop.f32.mrb[64].mxu0  ;;  %v556_v19 = vld [vmem:[%s8199_s27 + $0x2e8] sm:$0xf]  ;;  %v557_v20 = vld [vmem:[%s8199_s27 + $0x2ec] sm:$0xf] }
 0x176   : > { %v2485_v28 = vadd.f32 %v8759_v27, %v7396_v25  ;;  %v2476_v29 = vpop.f32.mrb[65].mxu0  ;;  %v813_v25 = vld [vmem:[%s8204_s11 + $0x2ec] sm:$0xf] }
 0x177   : > { %7650 = vmatprep.mubr.msk.bf16.mxu1 %vm1801_vm0, %v3529_v24  ;;  %v2477_v33 = vadd.f32 %v8759_v27, %v2476_v29  ;;  %v7397_v34 = vpop.f32.mrb[66].mxu0  ;;  %v812_v24 = vld [vmem:[%s8204_s11 + $0x2e8] sm:$0xf]  ;;  %v558_v29 = vld [vmem:[%s8199_s27 + $0x2f0] sm:$0xf] }
 0x178   : > { %7651 = vmatmul.mubr.msk.bf16.gmra.mrb[60].mxu1 %vm1801_vm0, %v3530_v23  ;;  %v2488_v38 = vadd.f32 %v8759_v27, %v7397_v34  ;;  %v2479_v39 = vpop.f32.mrb[67].mxu0  ;;  %v3309_v43 = vmax.f32 %v2485_v28, 0.0  ;;  %v6594_v23 = vcombine.low %v1064_v9, %v1065_v10  ;;  %v6595_v28 = vcombine.low %v1066_v13, %v1067_v14  ;;  %v815_v34 = vld [vmem:[%s8204_s11 + $0x2f4] sm:$0xf] }
 0x179   : > { %v2480_v42 = vadd.f32 %v8759_v27, %v2479_v39  ;;  %v3307_v47 = vmax.f32 %v2477_v33, 0.0  ;;  %v814_v33 = vld [vmem:[%s8204_s11 + $0x2f0] sm:$0xf]  ;;  %v1069_v39 = vmul.bf16 %v813_v25, %v557_v20 }
 0x17a   : > { %v3310_v44 = vmax.f32 %v2488_v38, 0.0  ;;  %7503 = vmatmul.mubr.msk.bf16.gmra.mrb[172].mxu0 %vm1801_vm0, %v6590_v30  ;;  %v559_v30 = vld [vmem:[%s8199_s27 + $0x2f4] sm:$0xf]  ;;  %v1068_v38 = vmul.bf16 %v812_v24, %v556_v19 }
 0x17b   : > { %v3308_v48 = vmax.f32 %v2480_v42, 0.0  ;;  %7506 = vmatprep.mubr.msk.bf16.mxu0 %vm1801_vm0, %v6591_v35  ;;  %v1070_v42 = vmul.bf16 %v814_v33, %v558_v29 }
 0x17c   : > { %v3532_v51 = vpack.c.bf16 %v3310_v44, %v3309_v43  ;;  %v1071_v43 = vmul.bf16 %v815_v34, %v559_v30 }
 0x17d   : > { %v3531_v52 = vpack.c.bf16 %v3308_v48, %v3307_v47  ;;  %v7400_v53 = vpop.f32.mrb[68].mxu0  ;;  %v560_v47 = vld [vmem:[%s8199_s27 + $0x2f8] sm:$0xf]  ;;  %v561_v48 = vld [vmem:[%s8199_s27 + $0x2fc] sm:$0xf] }
 0x17e   : > { %v2501_v56 = vadd.f32 %v8759_v27, %v7400_v53  ;;  %v2492_v57 = vpop.f32.mrb[69].mxu0  ;;  %v817_v53 = vld [vmem:[%s8204_s11 + $0x2fc] sm:$0xf] }
 0x17f   : > { %v2493_v61 = vadd.f32 %v8759_v27, %v2492_v57  ;;  %v7401_v62 = vpop.f32.mrb[70].mxu0  ;;  %7654 = vmatprep.mubr.msk.bf16.mxu1 %vm1801_vm0, %v3531_v52  ;;  %v816_v52 = vld [vmem:[%s8204_s11 + $0x2f8] sm:$0xf]  ;;  %v562_v57 = vld [vmem:[%s8199_s27 + $0x300] sm:$0xf] }
 0x180   : > { %v2504_v2 = vadd.f32 %v8759_v27, %v7401_v62  ;;  %v2495_v3 = vpop.f32.mrb[71].mxu0  ;;  %7655 = vmatmul.mubr.msk.bf16.gmra.mrb[64].mxu1 %vm1801_vm0, %v3532_v51  ;;  %v3313_v7 = vmax.f32 %v2501_v56, 0.0  ;;  %v6596_v51 = vcombine.low %v1068_v38, %v1069_v39  ;;  %v6597_v56 = vcombine.low %v1070_v42, %v1071_v43  ;;  %v819_v62 = vld [vmem:[%s8204_s11 + $0x304] sm:$0xf] }
 0x181   : > { %v2496_v6 = vadd.f32 %v8759_v27, %v2495_v3  ;;  %v3311_v11 = vmax.f32 %v2493_v61, 0.0  ;;  %v818_v61 = vld [vmem:[%s8204_s11 + $0x300] sm:$0xf]  ;;  %v1073_v3 = vmul.bf16 %v817_v53, %v561_v48 }
 0x182   : > { %v3314_v8 = vmax.f32 %v2504_v2, 0.0  ;;  %7507 = vmatmul.mubr.msk.bf16.gmra.mrb[176].mxu0 %vm1801_vm0, %v6592_v58  ;;  %v563_v58 = vld [vmem:[%s8199_s27 + $0x304] sm:$0xf]  ;;  %v1072_v2 = vmul.bf16 %v816_v52, %v560_v47 }
 0x183   : > { %v3312_v12 = vmax.f32 %v2496_v6, 0.0  ;;  %7510 = vmatprep.mubr.msk.bf16.mxu0 %vm1801_vm0, %v6593_v63  ;;  %v1074_v6 = vmul.bf16 %v818_v61, %v562_v57 }
 0x184   : > { %v3534_v16 = vpack.c.bf16 %v3314_v8, %v3313_v7  ;;  %v1075_v7 = vmul.bf16 %v819_v62, %v563_v58 }
 0x185   : > { %v3533_v17 = vpack.c.bf16 %v3312_v12, %v3311_v11  ;;  %v7404_v18 = vpop.f32.mrb[72].mxu0  ;;  %v564_v11 = vld [vmem:[%s8199_s27 + $0x308] sm:$0xf]  ;;  %v565_v12 = vld [vmem:[%s8199_s27 + $0x30c] sm:$0xf] }
 0x186   : > { %v2517_v21 = vadd.f32 %v8759_v27, %v7404_v18  ;;  %v2508_v22 = vpop.f32.mrb[73].mxu0  ;;  %v821_v18 = vld [vmem:[%s8204_s11 + $0x30c] sm:$0xf] }
 0x187   : > { %v2509_v15 = vadd.f32 %v8759_v27, %v2508_v22  ;;  %v7405_v26 = vpop.f32.mrb[74].mxu0  ;;  %7658 = vmatprep.mubr.msk.bf16.mxu1 %vm1801_vm0, %v3533_v17  ;;  %v820_v17 = vld [vmem:[%s8204_s11 + $0x308] sm:$0xf]  ;;  %v566_v22 = vld [vmem:[%s8199_s27 + $0x310] sm:$0xf] }
 0x188   : > { %v2520_v31 = vadd.f32 %v8759_v27, %v7405_v26  ;;  %v2511_v32 = vpop.f32.mrb[75].mxu0  ;;  %7659 = vmatmul.mubr.msk.bf16.gmra.mrb[68].mxu1 %vm1801_vm0, %v3534_v16  ;;  %v3317_v36 = vmax.f32 %v2517_v21, 0.0  ;;  %v6598_v16 = vcombine.low %v1072_v2, %v1073_v3  ;;  %v6599_v21 = vcombine.low %v1074_v6, %v1075_v7  ;;  %v823_v26 = vld [vmem:[%s8204_s11 + $0x314] sm:$0xf] }
 0x189   : > { %v2512_v35 = vadd.f32 %v8759_v27, %v2511_v32  ;;  %v3315_v40 = vmax.f32 %v2509_v15, 0.0  ;;  %v822_v15 = vld [vmem:[%s8204_s11 + $0x310] sm:$0xf]  ;;  %v1077_v32 = vmul.bf16 %v821_v18, %v565_v12 }
 0x18a   : > { %v3318_v37 = vmax.f32 %v2520_v31, 0.0  ;;  %7511 = vmatmul.mubr.msk.bf16.gmra.mrb[180].mxu0 %vm1801_vm0, %v6594_v23  ;;  %v567_v23 = vld [vmem:[%s8199_s27 + $0x314] sm:$0xf]  ;;  %v1076_v31 = vmul.bf16 %v820_v17, %v564_v11 }
 0x18b   : > { %v3316_v41 = vmax.f32 %v2512_v35, 0.0  ;;  %7514 = vmatprep.mubr.msk.bf16.mxu0 %vm1801_vm0, %v6595_v28  ;;  %v1078_v35 = vmul.bf16 %v822_v15, %v566_v22 }
 0x18c   : > { %v3536_v44 = vpack.c.bf16 %v3318_v37, %v3317_v36  ;;  %v1079_v36 = vmul.bf16 %v823_v26, %v567_v23 }
 0x18d   : > { %v3535_v45 = vpack.c.bf16 %v3316_v41, %v3315_v40  ;;  %v7408_v46 = vpop.f32.mrb[76].mxu0  ;;  %v568_v40 = vld [vmem:[%s8199_s27 + $0x318] sm:$0xf]  ;;  %v569_v41 = vld [vmem:[%s8199_s27 + $0x31c] sm:$0xf] }
 0x18e   : > { %v2533_v49 = vadd.f32 %v8759_v27, %v7408_v46  ;;  %v2524_v50 = vpop.f32.mrb[77].mxu0  ;;  %v825_v46 = vld [vmem:[%s8204_s11 + $0x31c] sm:$0xf] }
 0x18f   : > { %v2525_v54 = vadd.f32 %v8759_v27, %v2524_v50  ;;  %v7409_v55 = vpop.f32.mrb[78].mxu0  ;;  %7662 = vmatprep.mubr.msk.bf16.mxu1 %vm1801_vm0, %v3535_v45  ;;  %v824_v45 = vld [vmem:[%s8204_s11 + $0x318] sm:$0xf]  ;;  %v570_v50 = vld [vmem:[%s8199_s27 + $0x320] sm:$0xf] }
 0x190   : > { %v2536_v59 = vadd.f32 %v8759_v27, %v7409_v55  ;;  %v2527_v60 = vpop.f32.mrb[79].mxu0  ;;  %7663 = vmatmul.mubr.msk.bf16.gmra.mrb[72].mxu1 %vm1801_vm0, %v3536_v44  ;;  %v3321_v0 = vmax.f32 %v2533_v49, 0.0  ;;  %v6600_v44 = vcombine.low %v1076_v31, %v1077_v32  ;;  %v6601_v49 = vcombine.low %v1078_v35, %v1079_v36  ;;  %v827_v55 = vld [vmem:[%s8204_s11 + $0x324] sm:$0xf] }
 0x191   : > { %v2528_v63 = vadd.f32 %v8759_v27, %v2527_v60  ;;  %v3319_v4 = vmax.f32 %v2525_v54, 0.0  ;;  %v826_v54 = vld [vmem:[%s8204_s11 + $0x320] sm:$0xf]  ;;  %v1081_v60 = vmul.bf16 %v825_v46, %v569_v41 }
 0x192   : > { %v3322_v1 = vmax.f32 %v2536_v59, 0.0  ;;  %7515 = vmatmul.mubr.msk.bf16.gmra.mrb[184].mxu0 %vm1801_vm0, %v6596_v51  ;;  %v571_v51 = vld [vmem:[%s8199_s27 + $0x324] sm:$0xf]  ;;  %v1080_v59 = vmul.bf16 %v824_v45, %v568_v40 }
 0x193   : > { %v3320_v5 = vmax.f32 %v2528_v63, 0.0  ;;  %7518 = vmatprep.mubr.msk.bf16.mxu0 %vm1801_vm0, %v6597_v56  ;;  %v1082_v63 = vmul.bf16 %v826_v54, %v570_v50 }
 0x194   : > { %v3538_v8 = vpack.c.bf16 %v3322_v1, %v3321_v0  ;;  %v1083_v0 = vmul.bf16 %v827_v55, %v571_v51 }
 0x195   : > { %v3537_v9 = vpack.c.bf16 %v3320_v5, %v3319_v4  ;;  %v7412_v10 = vpop.f32.mrb[80].mxu0  ;;  %v572_v4 = vld [vmem:[%s8199_s27 + $0x328] sm:$0xf]  ;;  %v573_v5 = vld [vmem:[%s8199_s27 + $0x32c] sm:$0xf] }
 0x196   : > { %v2549_v13 = vadd.f32 %v8759_v27, %v7412_v10  ;;  %v2540_v14 = vpop.f32.mrb[81].mxu0  ;;  %v829_v10 = vld [vmem:[%s8204_s11 + $0x32c] sm:$0xf] }
 0x197   : > { %v2541_v19 = vadd.f32 %v8759_v27, %v2540_v14  ;;  %v7413_v20 = vpop.f32.mrb[82].mxu0  ;;  %7666 = vmatprep.mubr.msk.bf16.mxu1 %vm1801_vm0, %v3537_v9  ;;  %v828_v9 = vld [vmem:[%s8204_s11 + $0x328] sm:$0xf]  ;;  %v574_v14 = vld [vmem:[%s8199_s27 + $0x330] sm:$0xf] }
 0x198   : > { %v2552_v24 = vadd.f32 %v8759_v27, %v7413_v20  ;;  %v2543_v25 = vpop.f32.mrb[83].mxu0  ;;  %7667 = vmatmul.mubr.msk.bf16.gmra.mrb[76].mxu1 %vm1801_vm0, %v3538_v8  ;;  %v3325_v29 = vmax.f32 %v2549_v13, 0.0  ;;  %v6602_v8 = vcombine.low %v1080_v59, %v1081_v60  ;;  %v6603_v13 = vcombine.low %v1082_v63, %v1083_v0  ;;  %v831_v20 = vld [vmem:[%s8204_s11 + $0x334] sm:$0xf] }
 0x199   : > { %v2544_v28 = vadd.f32 %v8759_v27, %v2543_v25  ;;  %v3323_v33 = vmax.f32 %v2541_v19, 0.0  ;;  %v830_v19 = vld [vmem:[%s8204_s11 + $0x330] sm:$0xf]  ;;  %v1085_v25 = vmul.bf16 %v829_v10, %v573_v5 }
 0x19a   : > { %v3326_v30 = vmax.f32 %v2552_v24, 0.0  ;;  %7519 = vmatmul.mubr.msk.bf16.gmra.mrb[188].mxu0 %vm1801_vm0, %v6598_v16  ;;  %v575_v16 = vld [vmem:[%s8199_s27 + $0x334] sm:$0xf]  ;;  %v1084_v24 = vmul.bf16 %v828_v9, %v572_v4 }
 0x19b   : > { %v3324_v34 = vmax.f32 %v2544_v28, 0.0  ;;  %7522 = vmatprep.mubr.msk.bf16.mxu0 %vm1801_vm0, %v6599_v21  ;;  %v1086_v28 = vmul.bf16 %v830_v19, %v574_v14 }
 0x19c   : > { %v3540_v37 = vpack.c.bf16 %v3326_v30, %v3325_v29  ;;  %v1087_v29 = vmul.bf16 %v831_v20, %v575_v16 }
 0x19d   : > { %v3539_v38 = vpack.c.bf16 %v3324_v34, %v3323_v33  ;;  %v7416_v39 = vpop.f32.mrb[84].mxu0  ;;  %v576_v33 = vld [vmem:[%s8199_s27 + $0x338] sm:$0xf]  ;;  %v577_v34 = vld [vmem:[%s8199_s27 + $0x33c] sm:$0xf] }
 0x19e   : > { %v2565_v42 = vadd.f32 %v8759_v27, %v7416_v39  ;;  %v2556_v43 = vpop.f32.mrb[85].mxu0  ;;  %v833_v39 = vld [vmem:[%s8204_s11 + $0x33c] sm:$0xf] }
 0x19f   : > { %v2557_v47 = vadd.f32 %v8759_v27, %v2556_v43  ;;  %v7417_v48 = vpop.f32.mrb[86].mxu0  ;;  %7670 = vmatprep.mubr.msk.bf16.mxu1 %vm1801_vm0, %v3539_v38  ;;  %v832_v38 = vld [vmem:[%s8204_s11 + $0x338] sm:$0xf]  ;;  %v578_v43 = vld [vmem:[%s8199_s27 + $0x340] sm:$0xf] }
 0x1a0   : > { %v2568_v52 = vadd.f32 %v8759_v27, %v7417_v48  ;;  %v2559_v53 = vpop.f32.mrb[87].mxu0  ;;  %7671 = vmatmul.mubr.msk.bf16.gmra.mrb[80].mxu1 %vm1801_vm0, %v3540_v37  ;;  %v3329_v57 = vmax.f32 %v2565_v42, 0.0  ;;  %v6604_v37 = vcombine.low %v1084_v24, %v1085_v25  ;;  %v6605_v42 = vcombine.low %v1086_v28, %v1087_v29  ;;  %v835_v48 = vld [vmem:[%s8204_s11 + $0x344] sm:$0xf] }
 0x1a1   : > { %v2560_v56 = vadd.f32 %v8759_v27, %v2559_v53  ;;  %v3327_v61 = vmax.f32 %v2557_v47, 0.0  ;;  %v834_v47 = vld [vmem:[%s8204_s11 + $0x340] sm:$0xf]  ;;  %v1089_v53 = vmul.bf16 %v833_v39, %v577_v34 }
 0x1a2   : > { %v3330_v58 = vmax.f32 %v2568_v52, 0.0  ;;  %7523 = vmatmul.mubr.msk.bf16.gmra.mrb[192].mxu0 %vm1801_vm0, %v6600_v44  ;;  %v579_v44 = vld [vmem:[%s8199_s27 + $0x344] sm:$0xf]  ;;  %v1088_v52 = vmul.bf16 %v832_v38, %v576_v33 }
 0x1a3   : > { %v3328_v62 = vmax.f32 %v2560_v56, 0.0  ;;  %7526 = vmatprep.mubr.msk.bf16.mxu0 %vm1801_vm0, %v6601_v49  ;;  %v1090_v56 = vmul.bf16 %v834_v47, %v578_v43 }
 0x1a4   : > { %v3542_v1 = vpack.c.bf16 %v3330_v58, %v3329_v57  ;;  %v1091_v57 = vmul.bf16 %v835_v48, %v579_v44 }
 0x1a5   : > { %v3541_v2 = vpack.c.bf16 %v3328_v62, %v3327_v61  ;;  %v7420_v3 = vpop.f32.mrb[88].mxu0  ;;  %v580_v61 = vld [vmem:[%s8199_s27 + $0x348] sm:$0xf]  ;;  %v581_v62 = vld [vmem:[%s8199_s27 + $0x34c] sm:$0xf] }
 0x1a6   : > { %v2581_v6 = vadd.f32 %v8759_v27, %v7420_v3  ;;  %v2572_v7 = vpop.f32.mrb[89].mxu0  ;;  %v837_v3 = vld [vmem:[%s8204_s11 + $0x34c] sm:$0xf] }
 0x1a7   : > { %v2573_v11 = vadd.f32 %v8759_v27, %v2572_v7  ;;  %v7421_v12 = vpop.f32.mrb[90].mxu0  ;;  %7674 = vmatprep.mubr.msk.bf16.mxu1 %vm1801_vm0, %v3541_v2  ;;  %v836_v2 = vld [vmem:[%s8204_s11 + $0x348] sm:$0xf]  ;;  %v582_v7 = vld [vmem:[%s8199_s27 + $0x350] sm:$0xf] }
 0x1a8   : > { %v2584_v17 = vadd.f32 %v8759_v27, %v7421_v12  ;;  %v2575_v18 = vpop.f32.mrb[91].mxu0  ;;  %7675 = vmatmul.mubr.msk.bf16.gmra.mrb[84].mxu1 %vm1801_vm0, %v3542_v1  ;;  %v3333_v22 = vmax.f32 %v2581_v6, 0.0  ;;  %v6606_v1 = vcombine.low %v1088_v52, %v1089_v53  ;;  %v6607_v6 = vcombine.low %v1090_v56, %v1091_v57  ;;  %v839_v12 = vld [vmem:[%s8204_s11 + $0x354] sm:$0xf] }
 0x1a9   : > { %v2576_v21 = vadd.f32 %v8759_v27, %v2575_v18  ;;  %v3331_v15 = vmax.f32 %v2573_v11, 0.0  ;;  %v838_v11 = vld [vmem:[%s8204_s11 + $0x350] sm:$0xf]  ;;  %v1093_v18 = vmul.bf16 %v837_v3, %v581_v62 }
 0x1aa   : > { %v3334_v23 = vmax.f32 %v2584_v17, 0.0  ;;  %7527 = vmatmul.mubr.msk.bf16.gmra.mrb[196].mxu0 %vm1801_vm0, %v6602_v8  ;;  %v583_v8 = vld [vmem:[%s8199_s27 + $0x354] sm:$0xf]  ;;  %v1092_v17 = vmul.bf16 %v836_v2, %v580_v61 }
 0x1ab   : > { %v3332_v26 = vmax.f32 %v2576_v21, 0.0  ;;  %7530 = vmatprep.mubr.msk.bf16.mxu0 %vm1801_vm0, %v6603_v13  ;;  %v1094_v21 = vmul.bf16 %v838_v11, %v582_v7 }
 0x1ac   : > { %v3544_v30 = vpack.c.bf16 %v3334_v23, %v3333_v22  ;;  %v1095_v22 = vmul.bf16 %v839_v12, %v583_v8 }
 0x1ad   : > { %v3543_v31 = vpack.c.bf16 %v3332_v26, %v3331_v15  ;;  %v7424_v32 = vpop.f32.mrb[92].mxu0  ;;  %v584_v15 = vld [vmem:[%s8199_s27 + $0x358] sm:$0xf]  ;;  %v585_v26 = vld [vmem:[%s8199_s27 + $0x35c] sm:$0xf] }
 0x1ae   : > { %v2597_v35 = vadd.f32 %v8759_v27, %v7424_v32  ;;  %v2588_v36 = vpop.f32.mrb[93].mxu0  ;;  %v841_v32 = vld [vmem:[%s8204_s11 + $0x35c] sm:$0xf] }
 0x1af   : > { %v2589_v40 = vadd.f32 %v8759_v27, %v2588_v36  ;;  %v7425_v41 = vpop.f32.mrb[94].mxu0  ;;  %7678 = vmatprep.mubr.msk.bf16.mxu1 %vm1801_vm0, %v3543_v31  ;;  %v840_v31 = vld [vmem:[%s8204_s11 + $0x358] sm:$0xf]  ;;  %v586_v36 = vld [vmem:[%s8199_s27 + $0x360] sm:$0xf] }
 0x1b0   : > { %v2600_v45 = vadd.f32 %v8759_v27, %v7425_v41  ;;  %v2591_v46 = vpop.f32.mrb[95].mxu0  ;;  %7679 = vmatmul.mubr.msk.bf16.gmra.mrb[88].mxu1 %vm1801_vm0, %v3544_v30  ;;  %v3337_v50 = vmax.f32 %v2597_v35, 0.0  ;;  %v6608_v30 = vcombine.low %v1092_v17, %v1093_v18  ;;  %v6609_v35 = vcombine.low %v1094_v21, %v1095_v22  ;;  %v843_v41 = vld [vmem:[%s8204_s11 + $0x364] sm:$0xf] }
 0x1b1   : > { %v2592_v49 = vadd.f32 %v8759_v27, %v2591_v46  ;;  %v3335_v54 = vmax.f32 %v2589_v40, 0.0  ;;  %v842_v40 = vld [vmem:[%s8204_s11 + $0x360] sm:$0xf]  ;;  %v1097_v46 = vmul.bf16 %v841_v32, %v585_v26 }
 0x1b2   : > { %v3338_v51 = vmax.f32 %v2600_v45, 0.0  ;;  %7531 = vmatmul.mubr.msk.bf16.gmra.mrb[200].mxu0 %vm1801_vm0, %v6604_v37  ;;  %v587_v37 = vld [vmem:[%s8199_s27 + $0x364] sm:$0xf]  ;;  %v1096_v45 = vmul.bf16 %v840_v31, %v584_v15 }
 0x1b3   : > { %v3336_v55 = vmax.f32 %v2592_v49, 0.0  ;;  %7534 = vmatprep.mubr.msk.bf16.mxu0 %vm1801_vm0, %v6605_v42  ;;  %v1098_v49 = vmul.bf16 %v842_v40, %v586_v36 }
 0x1b4   : > { %v3546_v58 = vpack.c.bf16 %v3338_v51, %v3337_v50  ;;  %v1099_v50 = vmul.bf16 %v843_v41, %v587_v37 }
 0x1b5   : > { %v3545_v59 = vpack.c.bf16 %v3336_v55, %v3335_v54  ;;  %v7428_v60 = vpop.f32.mrb[96].mxu0  ;;  %v588_v54 = vld [vmem:[%s8199_s27 + $0x368] sm:$0xf]  ;;  %v589_v55 = vld [vmem:[%s8199_s27 + $0x36c] sm:$0xf] }
 0x1b6   : > { %v2613_v63 = vadd.f32 %v8759_v27, %v7428_v60  ;;  %v2604_v0 = vpop.f32.mrb[97].mxu0  ;;  %v845_v60 = vld [vmem:[%s8204_s11 + $0x36c] sm:$0xf] }
 0x1b7   : > { %v2605_v4 = vadd.f32 %v8759_v27, %v2604_v0  ;;  %v7429_v5 = vpop.f32.mrb[98].mxu0  ;;  %7682 = vmatprep.mubr.msk.bf16.mxu1 %vm1801_vm0, %v3545_v59  ;;  %v844_v59 = vld [vmem:[%s8204_s11 + $0x368] sm:$0xf]  ;;  %v590_v0 = vld [vmem:[%s8199_s27 + $0x370] sm:$0xf] }
 0x1b8   : > { %v2616_v9 = vadd.f32 %v8759_v27, %v7429_v5  ;;  %v2607_v10 = vpop.f32.mrb[99].mxu0  ;;  %7683 = vmatmul.mubr.msk.bf16.gmra.mrb[92].mxu1 %vm1801_vm0, %v3546_v58  ;;  %v3341_v14 = vmax.f32 %v2613_v63, 0.0  ;;  %v6610_v58 = vcombine.low %v1096_v45, %v1097_v46  ;;  %v6611_v63 = vcombine.low %v1098_v49, %v1099_v50  ;;  %v847_v5 = vld [vmem:[%s8204_s11 + $0x374] sm:$0xf]  ;;  %v596_v49 = vld [vmem:[%s8199_s27 + $0x388] sm:$0xf] }
 0x1b9   : > { %v2608_v13 = vadd.f32 %v8759_v27, %v2607_v10  ;;  %v3339_v19 = vmax.f32 %v2605_v4, 0.0  ;;  %v846_v4 = vld [vmem:[%s8204_s11 + $0x370] sm:$0xf]  ;;  %v1101_v10 = vmul.bf16 %v845_v60, %v589_v55  ;;  %v852_v55 = vld [vmem:[%s8204_s11 + $0x388] sm:$0xf] }
 0x1ba   : > { %v3342_v16 = vmax.f32 %v2616_v9, 0.0  ;;  %7535 = vmatmul.mubr.msk.bf16.gmra.mrb[204].mxu0 %vm1801_vm0, %v6606_v1  ;;  %v591_v1 = vld [vmem:[%s8199_s27 + $0x374] sm:$0xf]  ;;  %v1100_v9 = vmul.bf16 %v844_v59, %v588_v54  ;;  %v597_v54 = vld [vmem:[%s8199_s27 + $0x38c] sm:$0xf] }
 0x1bb   : > { %v3340_v20 = vmax.f32 %v2608_v13, 0.0  ;;  %7538 = vmatprep.mubr.msk.bf16.mxu0 %vm1801_vm0, %v6607_v6  ;;  %v1102_v13 = vmul.bf16 %v846_v4, %v590_v0  ;;  %v854_v4 = vld [vmem:[%s8204_s11 + $0x390] sm:$0xf] }
 0x1bc   : > { %v3548_v23 = vpack.c.bf16 %v3342_v16, %v3341_v14  ;;  %v1103_v14 = vmul.bf16 %v847_v5, %v591_v1 }
 0x1bd   : > { %v3547_v24 = vpack.c.bf16 %v3340_v20, %v3339_v19  ;;  %v7432_v25 = vpop.f32.mrb[100].mxu0  ;;  %v592_v19 = vld [vmem:[%s8199_s27 + $0x378] sm:$0xf]  ;;  %v593_v20 = vld [vmem:[%s8199_s27 + $0x37c] sm:$0xf] }
 0x1be   : > { %v2629_v28 = vadd.f32 %v8759_v27, %v7432_v25  ;;  %v2620_v29 = vpop.f32.mrb[101].mxu0  ;;  %v849_v25 = vld [vmem:[%s8204_s11 + $0x37c] sm:$0xf] }
 0x1bf   : > { %v2621_v33 = vadd.f32 %v8759_v27, %v2620_v29  ;;  %v7433_v34 = vpop.f32.mrb[102].mxu0  ;;  %7686 = vmatprep.mubr.msk.bf16.mxu1 %vm1801_vm0, %v3547_v24  ;;  %v848_v24 = vld [vmem:[%s8204_s11 + $0x378] sm:$0xf]  ;;  %v594_v29 = vld [vmem:[%s8199_s27 + $0x380] sm:$0xf]  ;;  %v1105_v40 = vmul.bf16 %v849_v25, %v593_v20 }
 0x1c0   : > { %v2632_v38 = vadd.f32 %v8759_v27, %v7433_v34  ;;  %v2623_v39 = vpop.f32.mrb[103].mxu0  ;;  %7687 = vmatmul.mubr.msk.bf16.gmra.mrb[96].mxu1 %vm1801_vm0, %v3548_v23  ;;  %v3345_v43 = vmax.f32 %v2629_v28, 0.0  ;;  %v6612_v23 = vcombine.low %v1100_v9, %v1101_v10  ;;  %v6613_v28 = vcombine.low %v1102_v13, %v1103_v14  ;;  %v851_v34 = vld [vmem:[%s8204_s11 + $0x384] sm:$0xf]  ;;  %v855_v10 = vld [vmem:[%s8204_s11 + $0x394] sm:$0xf] }
 0x1c1   : > { %v2624_v42 = vadd.f32 %v8759_v27, %v2623_v39  ;;  %v3343_v47 = vmax.f32 %v2621_v33, 0.0  ;;  %v850_v33 = vld [vmem:[%s8204_s11 + $0x380] sm:$0xf]  ;;  %v1104_v39 = vmul.bf16 %v848_v24, %v592_v19  ;;  %v1108_v9 = vmul.bf16 %v852_v55, %v596_v49 }
 0x1c2   : > { %v3346_v44 = vmax.f32 %v2632_v38, 0.0  ;;  %7539 = vmatmul.mubr.msk.bf16.gmra.mrb[208].mxu0 %vm1801_vm0, %v6608_v30  ;;  %v595_v30 = vld [vmem:[%s8199_s27 + $0x384] sm:$0xf] }
 0x1c3   : > { %v3344_v48 = vmax.f32 %v2624_v42, 0.0  ;;  %7542 = vmatprep.mubr.msk.bf16.mxu0 %vm1801_vm0, %v6609_v35  ;;  %v8951_v35 = vld [vmem:[%s10090_s5] ss:$0 sm:$0xff]  ;;  %v1107_v45 = vmul.bf16 %v851_v34, %v595_v30  ;;  %v6614_v60 = vcombine.low %v1104_v39, %v1105_v40  ;;  %v856_v34 = vld [vmem:[%s8204_s11 + $0x398] sm:$0xf] }
 0x1c4   : > { %v3550_v51 = vpack.c.bf16 %v3346_v44, %v3345_v43  ;;  %v1106_v44 = vmul.bf16 %v850_v33, %v594_v29  ;;  %v601_v33 = vld [vmem:[%s8199_s27 + $0x39c] sm:$0xf] }
 0x1c5   : > { %v3549_v52 = vpack.c.bf16 %v3344_v48, %v3343_v47  ;;  %v7436_v53 = vpop.f32.mrb[104].mxu0 }
 0x1c6   : > { %v2645_v56 = vadd.f32 %v8759_v27, %v7436_v53  ;;  %v2636_v57 = vpop.f32.mrb[105].mxu0 }
 0x1c7   : > { %v2637_v61 = vadd.f32 %v8759_v27, %v2636_v57  ;;  %v7437_v62 = vpop.f32.mrb[106].mxu0  ;;  %7690 = vmatprep.mubr.msk.bf16.mxu1 %vm1801_vm0, %v3549_v52 }
 0x1c8   : > { %v2648_v2 = vadd.f32 %v8759_v27, %v7437_v62  ;;  %v2639_v3 = vpop.f32.mrb[107].mxu0  ;;  %7691 = vmatmul.mubr.msk.bf16.gmra.mrb[100].mxu1 %vm1801_vm0, %v3550_v51  ;;  %v3349_v7 = vmax.f32 %v2645_v56, 0.0  ;;  %v598_v62 = vld [vmem:[%s8199_s27 + $0x390] sm:$0xf] }
 0x1c9   : > { %v2640_v6 = vadd.f32 %v8759_v27, %v2639_v3  ;;  %v3347_v11 = vmax.f32 %v2637_v61, 0.0  ;;  %v853_v61 = vld [vmem:[%s8204_s11 + $0x38c] sm:$0xf]  ;;  %v599_v3 = vld [vmem:[%s8199_s27 + $0x394] sm:$0xf]  ;;  %v1110_v19 = vmul.bf16 %v854_v4, %v598_v62 }
 0x1ca   : > { %v3350_v8 = vmax.f32 %v2648_v2, 0.0  ;;  %7543 = vmatmul.mubr.msk.bf16.gmra.mrb[212].mxu0 %vm1801_vm0, %v6610_v58  ;;  %v6615_v2 = vcombine.low %v1106_v44, %v1107_v45  ;;  %v1109_v14 = vmul.bf16 %v853_v61, %v597_v54  ;;  %v1111_v24 = vmul.bf16 %v855_v10, %v599_v3  ;;  %v859_v54 = vld [vmem:[%s8204_s11 + $0x3a4] sm:$0xf] }
 0x1cb   : > { %v3348_v12 = vmax.f32 %v2640_v6, 0.0  ;;  %7546 = vmatprep.mubr.msk.bf16.mxu0 %vm1801_vm0, %v6611_v63 }
 0x1cc   : > { %v3552_v16 = vpack.c.bf16 %v3350_v8, %v3349_v7  ;;  %v6616_v40 = vcombine.low %v1108_v9, %v1109_v14 }
 0x1cd   : > { %v3551_v17 = vpack.c.bf16 %v3348_v12, %v3347_v11  ;;  %v7440_v18 = vpop.f32.mrb[108].mxu0 }
 0x1ce   : > { %v2661_v21 = vadd.f32 %v8759_v27, %v7440_v18  ;;  %v2652_v22 = vpop.f32.mrb[109].mxu0 }
 0x1cf   : > { %v2653_v15 = vadd.f32 %v8759_v27, %v2652_v22  ;;  %v7441_v26 = vpop.f32.mrb[110].mxu0  ;;  %7694 = vmatprep.mubr.msk.bf16.mxu1 %vm1801_vm0, %v3551_v17 }
 0x1d0   : > { %v2664_v31 = vadd.f32 %v8759_v27, %v7441_v26  ;;  %v2655_v32 = vpop.f32.mrb[111].mxu0  ;;  %7695 = vmatmul.mubr.msk.bf16.gmra.mrb[104].mxu1 %vm1801_vm0, %v3552_v16  ;;  %v3353_v37 = vmax.f32 %v2661_v21, 0.0 }
 0x1d1   : > { %v2656_v36 = vadd.f32 %v8759_v27, %v2655_v32  ;;  %v3351_v42 = vmax.f32 %v2653_v15, 0.0 }
 0x1d2   : > { %v3354_v38 = vmax.f32 %v2664_v31, 0.0  ;;  %7547 = vmatmul.mubr.msk.bf16.gmra.mrb[216].mxu0 %vm1801_vm0, %v6612_v23 }
 0x1d3   : > { %v7592_v41 = vpop.f32.mrb[0].mxu1  ;;  %v3352_v43 = vmax.f32 %v2656_v36, 0.0  ;;  %7550 = vmatprep.mubr.msk.bf16.mxu0 %vm1801_vm0, %v6613_v28  ;;  %v600_v28 = vld [vmem:[%s8199_s27 + $0x398] sm:$0xf] }
 0x1d4   : > { %v4077_v46 = vadd.f32 %v7592_v41, %v8951_v35  ;;  %v4068_v47 = vpop.f32.mrb[1].mxu1  ;;  %v3554_v48 = vpack.c.bf16 %v3354_v38, %v3353_v37  ;;  %v857_v41 = vld [vmem:[%s8204_s11 + $0x39c] sm:$0xf] }
 0x1d5   : > { %v4069_v50 = vadd.f32 %v8951_v35, %v4068_v47  ;;  %v7593_v51 = vpop.f32.mrb[2].mxu1  ;;  %v3553_v52 = vpack.c.bf16 %v3352_v43, %v3351_v42  ;;  %v7444_v53 = vpop.f32.mrb[112].mxu0  ;;  %v602_v42 = vld [vmem:[%s8199_s27 + $0x3a0] sm:$0xf]  ;;  %v603_v47 = vld [vmem:[%s8199_s27 + $0x3a4] sm:$0xf] }
 0x1d6   : > { %v4080_v56 = vadd.f32 %v7593_v51, %v8951_v35  ;;  %v4071_v57 = vpop.f32.mrb[3].mxu1  ;;  %v2677_v58 = vadd.f32 %v8759_v27, %v7444_v53  ;;  %v2668_v59 = vpop.f32.mrb[113].mxu0  ;;  %v5093_v5 = vmax.f32 %v4077_v46, 0.0  ;;  %v6617_v46 = vcombine.low %v1110_v19, %v1111_v24 }
 0x1d7   : > { %v4072_v63 = vadd.f32 %v8951_v35, %v4071_v57  ;;  %v2669_v0 = vadd.f32 %v8759_v27, %v2668_v59  ;;  %v7445_v1 = vpop.f32.mrb[114].mxu0  ;;  %7698 = vmatprep.mubr.msk.bf16.mxu1 %vm1801_vm0, %v3553_v52  ;;  %v5091_v11 = vmax.f32 %v4069_v50, 0.0  ;;  %v1112_v53 = vmul.bf16 %v856_v34, %v600_v28  ;;  %v607_v28 = vld [vmem:[%s8199_s27 + $0x3b4] sm:$0xf] }
 0x1d8   : > { %v5094_v6 = vmax.f32 %v4080_v56, 0.0  ;;  %v2680_v7 = vadd.f32 %v8759_v27, %v7445_v1  ;;  %v2671_v8 = vpop.f32.mrb[115].mxu0  ;;  %7699 = vmatmul.mubr.msk.bf16.gmra.mrb[108].mxu1 %vm1801_vm0, %v3554_v48  ;;  %v3357_v17 = vmax.f32 %v2677_v58, 0.0  ;;  %v858_v48 = vld [vmem:[%s8204_s11 + $0x3a0] sm:$0xf]  ;;  %v1113_v58 = vmul.bf16 %v857_v41, %v601_v33 }
 0x1d9   : > { %v5092_v12 = vmax.f32 %v4072_v63, 0.0  ;;  %v2672_v13 = vadd.f32 %v8759_v27, %v2671_v8  ;;  %v3355_v22 = vmax.f32 %v2669_v0, 0.0  ;;  %v1114_v62 = vmul.bf16 %v858_v48, %v602_v42 }
 0x1da   : > { %v8974_v16 = vpack.c.bf16 %v5094_v6, %v5093_v5  ;;  %v3358_v18 = vmax.f32 %v2680_v7, 0.0  ;;  %7551 = vmatmul.mubr.msk.bf16.gmra.mrb[220].mxu0 %vm1801_vm0, %v6614_v60  ;;  %v1115_v3 = vmul.bf16 %v859_v54, %v603_v47  ;;  %v604_v7 = vld [vmem:[%s8199_s27 + $0x3a8] sm:$0xf] }
 0x1db   : > { %v7596_v20 = vpop.f32.mrb[4].mxu1  ;;  %v8977_v21 = vpack.c.bf16 %v5092_v12, %v5091_v11  ;;  %v3356_v23 = vmax.f32 %v2672_v13, 0.0  ;;  %7554 = vmatprep.mubr.msk.bf16.mxu0 %vm1801_vm0, %v6615_v2  ;;  %v605_v12 = vld [vmem:[%s8199_s27 + $0x3ac] sm:$0xf]  ;;  %v860_v13 = vld [vmem:[%s8204_s11 + $0x3a8] sm:$0xf] }
 0x1dc   : > { %v4093_v25 = vadd.f32 %v7596_v20, %v8951_v35  ;;  %v4084_v15 = vpop.f32.mrb[5].mxu1  ;;  %v3556_v26 = vpack.c.bf16 %v3358_v18, %v3357_v17  ;;  %v6618_v20 = vcombine.low %v1112_v53, %v1113_v58  ;;  %v1116_v34 = vmul.bf16 %v860_v13, %v604_v7  ;;  %v864_v58 = vld [vmem:[%s8204_s11 + $0x3b8] sm:$0xf] }
 0x1dd   : > { %v4085_v29 = vadd.f32 %v8951_v35, %v4084_v15  ;;  %v7597_v30 = vpop.f32.mrb[6].mxu1  ;;  %v3555_v31 = vpack.c.bf16 %v3356_v23, %v3355_v22  ;;  %v7448_v32 = vpop.f32.mrb[116].mxu0  ;;  %v861_v22 = vld [vmem:[%s8204_s11 + $0x3ac] sm:$0xf]  ;;  %v606_v23 = vld [vmem:[%s8199_s27 + $0x3b0] sm:$0xf] }
 0x1de   : > { %v4096_v36 = vadd.f32 %v7597_v30, %v8951_v35  ;;  %v4087_v37 = vpop.f32.mrb[7].mxu1  ;;  %v2693_v38 = vadd.f32 %v8759_v27, %v7448_v32  ;;  %v2684_v39 = vpop.f32.mrb[117].mxu0  ;;  %v5097_v49 = vmax.f32 %v4093_v25, 0.0 }
 0x1df   : > { %v4088_v43 = vadd.f32 %v8951_v35, %v4087_v37  ;;  %v2685_v44 = vadd.f32 %v8759_v27, %v2684_v39  ;;  %v7449_v45 = vpop.f32.mrb[118].mxu0  ;;  %7702 = vmatprep.mubr.msk.bf16.mxu1 %vm1801_vm0, %v3555_v31  ;;  %v5095_v55 = vmax.f32 %v4085_v29, 0.0  ;;  %v862_v29 = vld [vmem:[%s8204_s11 + $0x3b0] sm:$0xf] }
 0x1e0   : > { %v5098_v50 = vmax.f32 %v4096_v36, 0.0  ;;  %v2696_v51 = vadd.f32 %v8759_v27, %v7449_v45  ;;  %v2687_v52 = vpop.f32.mrb[119].mxu0  ;;  %7703 = vmatmul.mubr.msk.bf16.gmra.mrb[112].mxu1 %vm1801_vm0, %v3556_v26  ;;  %v3361_v60 = vmax.f32 %v2693_v38, 0.0  ;;  %v6619_v26 = vcombine.low %v1114_v62, %v1115_v3  ;;  %v863_v36 = vld [vmem:[%s8204_s11 + $0x3b4] sm:$0xf] }
 0x1e1   : > { %v5096_v56 = vmax.f32 %v4088_v43, 0.0  ;;  %v2688_v57 = vadd.f32 %v8759_v27, %v2687_v52  ;;  %v3359_v1 = vmax.f32 %v2685_v44, 0.0  ;;  %v1118_v44 = vmul.bf16 %v862_v29, %v606_v23  ;;  %v608_v52 = vld [vmem:[%s8199_s27 + $0x3b8] sm:$0xf]  ;;  %v9037_v62 = vld [vmem:[%s10088_s3] ss:$0 sm:$0xff] }
 0x1e2   : > { %v8998_v59 = vpack.c.bf16 %v5098_v50, %v5097_v49  ;;  %v3362_v61 = vmax.f32 %v2696_v51, 0.0  ;;  %7555 = vmatmul.mubr.msk.bf16.gmra.mrb[224].mxu0 %vm1801_vm0, %v6616_v40  ;;  %v1117_v40 = vmul.bf16 %v861_v22, %v605_v12  ;;  %v1119_v49 = vmul.bf16 %v863_v36, %v607_v28  ;;  %v865_v3 = vld [vmem:[%s8204_s11 + $0x3bc] sm:$0xf] }
 0x1e3   : > { %v7600_v63 = vpop.f32.mrb[8].mxu1  ;;  %v9001_v0 = vpack.c.bf16 %v5096_v56, %v5095_v55  ;;  %v3360_v2 = vmax.f32 %v2688_v57, 0.0  ;;  %7558 = vmatprep.mubr.msk.bf16.mxu0 %vm1801_vm0, %v6617_v46  ;;  %v609_v57 = vld [vmem:[%s8199_s27 + $0x3bc] sm:$0xf] }
 0x1e4   : > { %v4109_v4 = vadd.f32 %v7600_v63, %v8951_v35  ;;  %v4100_v5 = vpop.f32.mrb[9].mxu1  ;;  %v3558_v6 = vpack.c.bf16 %v3362_v61, %v3361_v60  ;;  %v1121_v23 = vmul.bf16 %v865_v3, %v609_v57  ;;  %v870_v57 = vld [vmem:[%s8204_s11 + $0x3d0] sm:$0xf] }
 0x1e5   : > { %v4101_v8 = vadd.f32 %v8951_v35, %v4100_v5  ;;  %v7601_v9 = vpop.f32.mrb[10].mxu1  ;;  %v3557_v10 = vpack.c.bf16 %v3360_v2, %v3359_v1  ;;  %v7452_v11 = vpop.f32.mrb[120].mxu0  ;;  %v6620_v2 = vcombine.low %v1116_v34, %v1117_v40 }
 0x1e6   : > { %v4112_v14 = vadd.f32 %v7601_v9, %v8951_v35  ;;  %v4103_v17 = vpop.f32.mrb[11].mxu1  ;;  %v2709_v18 = vadd.f32 %v8759_v27, %v7452_v11  ;;  %v2700_v19 = vpop.f32.mrb[121].mxu0  ;;  %v5101_v30 = vmax.f32 %v4109_v4, 0.0  ;;  %v610_v4 = vld [vmem:[%s8199_s27 + $0x3c0] sm:$0xf] }
 0x1e7   : > { %v4104_v24 = vadd.f32 %v8951_v35, %v4103_v17  ;;  %v2701_v25 = vadd.f32 %v8759_v27, %v2700_v19  ;;  %v7453_v15 = vpop.f32.mrb[122].mxu0  ;;  %7706 = vmatprep.mubr.msk.bf16.mxu1 %vm1801_vm0, %v3557_v10  ;;  %v5099_v37 = vmax.f32 %v4101_v8, 0.0  ;;  %v6621_v8 = vcombine.low %v1118_v44, %v1119_v49  ;;  %v611_v9 = vld [vmem:[%s8199_s27 + $0x3c4] sm:$0xf]  ;;  %v866_v10 = vld [vmem:[%s8204_s11 + $0x3c0] sm:$0xf] }
 0x1e8   : > { %v5102_v31 = vmax.f32 %v4112_v14, 0.0  ;;  %v2712_v32 = vadd.f32 %v8759_v27, %v7453_v15  ;;  %v2703_v33 = vpop.f32.mrb[123].mxu0  ;;  %7707 = vmatmul.mubr.msk.bf16.gmra.mrb[116].mxu1 %vm1801_vm0, %v3558_v6  ;;  %v3365_v42 = vmax.f32 %v2709_v18, 0.0  ;;  %v1120_v17 = vmul.bf16 %v864_v58, %v608_v52  ;;  %v867_v18 = vld [vmem:[%s8204_s11 + $0x3c4] sm:$0xf] }
 0x1e9   : > { %v5100_v38 = vmax.f32 %v4104_v24, 0.0  ;;  %v2704_v39 = vadd.f32 %v8759_v27, %v2703_v33  ;;  %v3363_v47 = vmax.f32 %v2701_v25, 0.0  ;;  %v868_v44 = vld [vmem:[%s8204_s11 + $0x3c8] sm:$0xf] }
 0x1ea   : > { %v9022_v41 = vpack.c.bf16 %v5102_v31, %v5101_v30  ;;  %v3366_v43 = vmax.f32 %v2712_v32, 0.0  ;;  %7559 = vmatmul.mubr.msk.bf16.gmra.mrb[228].mxu0 %vm1801_vm0, %v6618_v20  ;;  %v1123_v32 = vmul.bf16 %v867_v18, %v611_v9 }
 0x1eb   : > { %v7604_v45 = vpop.f32.mrb[12].mxu1  ;;  %v9025_v46 = vpack.c.bf16 %v5100_v38, %v5099_v37  ;;  %v3364_v48 = vmax.f32 %v2704_v39, 0.0  ;;  %7562 = vmatprep.mubr.msk.bf16.mxu0 %vm1801_vm0, %v6619_v26  ;;  %v1122_v26 = vmul.bf16 %v866_v10, %v610_v4  ;;  %v612_v37 = vld [vmem:[%s8199_s27 + $0x3c8] sm:$0xf] }
 0x1ec   : > { %v4125_v27 = vadd.f32 %v7604_v45, %v8951_v35  ;;  %v4116_v50 = vpop.f32.mrb[13].mxu1  ;;  %v3560_v51 = vpack.c.bf16 %v3366_v43, %v3365_v42  ;;  %v613_v43 = vld [vmem:[%s8199_s27 + $0x3cc] sm:$0xf] }
 0x1ed   : > { %v4117_v53 = vadd.f32 %v8951_v35, %v4116_v50  ;;  %v7605_v54 = vpop.f32.mrb[14].mxu1  ;;  %v3559_v55 = vpack.c.bf16 %v3364_v48, %v3363_v47  ;;  %v7456_v56 = vpop.f32.mrb[124].mxu0  ;;  %v869_v50 = vld [vmem:[%s8204_s11 + $0x3cc] sm:$0xf] }
 0x1ee   : > { %v4128_v60 = vadd.f32 %v7605_v54, %v8951_v35  ;;  %v4119_v61 = vpop.f32.mrb[15].mxu1  ;;  %v2725_v63 = vadd.f32 %v9037_v62, %v7456_v56  ;;  %v2716_v1 = vpop.f32.mrb[125].mxu0  ;;  %v5105_v11 = vmax.f32 %v4125_v27, 0.0  ;;  %v6622_v27 = vcombine.low %v1120_v17, %v1121_v23  ;;  %v615_v56 = vld [vmem:[%s8199_s27 + $0x3d4] sm:$0xf] }
 0x1ef   : > { %v4120_v5 = vadd.f32 %v8951_v35, %v4119_v61  ;;  %v2717_v6 = vadd.f32 %v9037_v62, %v2716_v1  ;;  %v7457_v7 = vpop.f32.mrb[126].mxu0  ;;  %7710 = vmatprep.mubr.msk.bf16.mxu1 %vm1801_vm0, %v3559_v55  ;;  %v5103_v19 = vmax.f32 %v4117_v53, 0.0  ;;  %v6623_v55 = vcombine.low %v1122_v26, %v1123_v32  ;;  %v9082_v23 = vld [vmem:[%s8199_s27 + $0x3dc] sm:$0xf] }
 0x1f0   : > { %v5106_v12 = vmax.f32 %v4128_v60, 0.0  ;;  %v2728_v13 = vadd.f32 %v9037_v62, %v7457_v7  ;;  %v2719_v14 = vpop.f32.mrb[127].mxu0  ;;  %7711 = vmatmul.mubr.msk.bf16.gmra.mrb[120].mxu1 %vm1801_vm0, %v3560_v51  ;;  %v3369_v25 = vmax.f32 %v2725_v63, 0.0  ;;  %v614_v51 = vld [vmem:[%s8199_s27 + $0x3d0] sm:$0xf]  ;;  %v1124_v1 = vmul.bf16 %v868_v44, %v612_v37 }
 0x1f1   : > { %v5104_v20 = vmax.f32 %v4120_v5, 0.0  ;;  %v2720_v22 = vadd.f32 %v9037_v62, %v2719_v14  ;;  %v3367_v30 = vmax.f32 %v2717_v6, 0.0  ;;  %v1125_v6 = vmul.bf16 %v869_v50, %v613_v43  ;;  %v619_v44 = vld [vmem:[%s8199_s27 + $0x3e4] sm:$0xf] }
 0x1f2   : > { %v9051_v24 = vpack.c.bf16 %v5106_v12, %v5105_v11  ;;  %v3370_v15 = vmax.f32 %v2728_v13, 0.0  ;;  %7563 = vmatmul.mubr.msk.bf16.gmra.mrb[232].mxu0 %vm1801_vm0, %v6620_v2  ;;  %v871_v2 = vld [vmem:[%s8204_s11 + $0x3d4] sm:$0xf]  ;;  %v1126_v10 = vmul.bf16 %v870_v57, %v614_v51  ;;  %v5482_v26 = vsel %vm1801_vm0, %v8977_v21, 0  ;;  %v875_v51 = vld [vmem:[%s8204_s11 + $0x3e4] sm:$0xf] }
 0x1f3   : > { %v7608_v28 = vpop.f32.mrb[16].mxu1  ;;  %v9054_v29 = vpack.c.bf16 %v5104_v20, %v5103_v19  ;;  %v3368_v31 = vmax.f32 %v2720_v22, 0.0  ;;  %7566 = vmatprep.mubr.msk.bf16.mxu0 %vm1801_vm0, %v6621_v8  ;;  %v1127_v17 = vmul.bf16 %v871_v2, %v615_v56  ;;  %v9079_v22 = vld [vmem:[%s8199_s27 + $0x3d8] sm:$0xf]  ;;  %v6624_v37 = vcombine.low %v1124_v1, %v1125_v6 }
 0x1f4   : > { %v4141_v33 = vadd.f32 %v7608_v28, %v8951_v35  ;;  %v4132_v34 = vpop.f32.mrb[17].mxu1  ;;  %v3562_v36 = vpack.c.bf16 %v3370_v15, %v3369_v25 }
 0x1f5   : > { %v4133_v38 = vadd.f32 %v8951_v35, %v4132_v34  ;;  %v7609_v39 = vpop.f32.mrb[18].mxu1  ;;  %v3561_v40 = vpack.c.bf16 %v3368_v31, %v3367_v30  ;;  %v7460_v42 = vpop.f32.mrb[128].mxu0  ;;  %v872_v31 = vld [vmem:[%s8204_s11 + $0x3d8] sm:$0xf]  ;;  %v6625_v43 = vcombine.low %v1126_v10, %v1127_v17 }
 0x1f6   : > { %v4144_v45 = vadd.f32 %v7609_v39, %v8951_v35  ;;  %v4135_v47 = vpop.f32.mrb[19].mxu1  ;;  %v2741_v48 = vadd.f32 %v9037_v62, %v7460_v42  ;;  %v2732_v49 = vpop.f32.mrb[129].mxu0  ;;  %v5109_v58 = vmax.f32 %v4141_v33, 0.0  ;;  %v618_v39 = vld [vmem:[%s8199_s27 + $0x3e0] sm:$0xf]  ;;  %v1128_v50 = vmul.bf16 %v872_v31, %v9079_v22 }
 0x1f7   : > { %v4136_v52 = vadd.f32 %v8951_v35, %v4135_v47  ;;  %v2733_v53 = vadd.f32 %v9037_v62, %v2732_v49  ;;  %v7461_v54 = vpop.f32.mrb[130].mxu0  ;;  %7714 = vmatprep.mubr.msk.bf16.mxu1 %vm1801_vm0, %v3561_v40  ;;  %v5107_v3 = vmax.f32 %v4133_v38, 0.0  ;;  %v873_v38 = vld [vmem:[%s8204_s11 + $0x3dc] sm:$0xf]  ;;  %v878_v31 = vld [vmem:[%s8204_s11 + $0x3f0] sm:$0xf] }
 0x1f8   : > { %v5110_v60 = vmax.f32 %v4144_v45, 0.0  ;;  %v2744_v61 = vadd.f32 %v9037_v62, %v7461_v54  ;;  %v2735_v63 = vpop.f32.mrb[131].mxu0  ;;  %7715 = vmatmul.mubr.msk.bf16.gmra.mrb[124].mxu1 %vm1801_vm0, %v3562_v36  ;;  %v3373_v8 = vmax.f32 %v2741_v48, 0.0  ;;  %v874_v45 = vld [vmem:[%s8204_s11 + $0x3e0] sm:$0xf] }
 0x1f9   : > { %v5108_v4 = vmax.f32 %v4136_v52, 0.0  ;;  %v2736_v5 = vadd.f32 %v9037_v62, %v2735_v63  ;;  %v3371_v13 = vmax.f32 %v2733_v53, 0.0 }
 0x1fa   : > { %v5356_v7 = vpack.c.bf16 %v5110_v60, %v5109_v58  ;;  %v3374_v9 = vmax.f32 %v2744_v61, 0.0  ;;  %7567 = vmatmul.mubr.msk.bf16.gmra.mrb[236].mxu0 %vm1801_vm0, %v6622_v27  ;;  %v1130_v60 = vmul.bf16 %v874_v45, %v618_v39 }
 0x1fb   : > { %v5355_v11 = vpack.c.bf16 %v5108_v4, %v5107_v3  ;;  %v7612_v12 = vpop.f32.mrb[20].mxu1  ;;  %v3372_v14 = vmax.f32 %v2736_v5, 0.0  ;;  %7570 = vmatprep.mubr.msk.bf16.mxu0 %vm1801_vm0, %v6623_v55  ;;  %v1129_v55 = vmul.bf16 %v873_v38, %v9082_v23  ;;  %v1131_v3 = vmul.bf16 %v875_v51, %v619_v44  ;;  %v877_v23 = vld [vmem:[%s8204_s11 + $0x3ec] sm:$0xf]  ;;  %v879_v38 = vld [vmem:[%s8204_s11 + $0x3f4] sm:$0xf] }
 0x1fc   : > { %v4157_v18 = vadd.f32 %v7612_v12, %v8951_v35  ;;  %v4148_v19 = vpop.f32.mrb[21].mxu1  ;;  %v3564_v20 = vpack.c.bf16 %v3374_v9, %v3373_v8  ;;  %v621_v8 = vld [vmem:[%s8199_s27 + $0x3ec] sm:$0xf] }
 0x1fd   : > { %v4149_v25 = vadd.f32 %v8951_v35, %v4148_v19  ;;  %v7613_v15 = vpop.f32.mrb[22].mxu1  ;;  %7846 = vmatprep.subr.msk.bf16.mxu0 %vm1801_vm0, %v5355_v11  ;;  %v3563_v28 = vpack.c.bf16 %v3372_v14, %v3371_v13  ;;  %v7464_v30 = vpop.f32.mrb[132].mxu0  ;;  %v5485_v11 = vsel %vm1801_vm0, %v8974_v16, 0  ;;  %v876_v14 = vld [vmem:[%s8204_s11 + $0x3e8] sm:$0xf]  ;;  %v6626_v22 = vcombine.low %v1128_v50, %v1129_v55 }
 0x1fe   : > { %v4160_v32 = vadd.f32 %v7613_v15, %v8951_v35  ;;  %v4151_v33 = vpop.f32.mrb[23].mxu1  ;;  %7183 = vmatpush3.bf16.xpose.msra.mxu0 %v5482_v26  ;;  %v2757_v34 = vadd.f32 %v9037_v62, %v7464_v30  ;;  %v2748_v36 = vpop.f32.mrb[133].mxu0  ;;  %v5113_v47 = vmax.f32 %v4157_v18, 0.0  ;;  %v623_v30 = vld [vmem:[%s8199_s27 + $0x3f4] sm:$0xf] }
 0x1ff   : > { %v4152_v40 = vadd.f32 %v8951_v35, %v4151_v33  ;;  %7847 = vmatprep.subr.msk.bf16.mxu0 %vm1801_vm0, %v5356_v7  ;;  %v2749_v21 = vadd.f32 %v9037_v62, %v2748_v36  ;;  %v7465_v42 = vpop.f32.mrb[134].mxu0  ;;  %7718 = vmatprep.mubr.msk.bf16.mxu1 %vm1801_vm0, %v3563_v28  ;;  %v5111_v52 = vmax.f32 %v4149_v25, 0.0  ;;  %v620_v7 = vld [vmem:[%s8199_s27 + $0x3e8] sm:$0xf]  ;;  %v622_v25 = vld [vmem:[%s8199_s27 + $0x3f0] sm:$0xf]  ;;  %v6627_v28 = vcombine.low %v1130_v60, %v1131_v3 }
 0x200   : > { %v5114_v48 = vmax.f32 %v4160_v32, 0.0  ;;  %v2760_v49 = vadd.f32 %v9037_v62, %v7465_v42  ;;  %v2751_v27 = vpop.f32.mrb[135].mxu0  ;;  %7719 = vmatmul.mubr.msk.bf16.gmra.mrb[128].mxu1 %vm1801_vm0, %v3564_v20  ;;  %v3377_v57 = vmax.f32 %v2757_v34, 0.0  ;;  %v1133_v42 = vmul.bf16 %v877_v23, %v621_v8 }
 0x201   : > { %v5112_v53 = vmax.f32 %v4152_v40, 0.0  ;;  %v2752_v54 = vadd.f32 %v9037_v62, %v2751_v27  ;;  %v3375_v1 = vmax.f32 %v2749_v21, 0.0  ;;  %v1135_v51 = vmul.bf16 %v879_v38, %v623_v30 }
 0x202   : > { %v9105_v56 = vpack.c.bf16 %v5114_v48, %v5113_v47  ;;  %v3378_v58 = vmax.f32 %v2760_v49, 0.0  ;;  %7571 = vmatmul.mubr.msk.bf16.gmra.mrb[240].mxu0 %vm1801_vm0, %v6624_v37  ;;  %v1132_v37 = vmul.bf16 %v876_v14, %v620_v7  ;;  %v1134_v47 = vmul.bf16 %v878_v31, %v622_v25 }
 0x203   : > { %v5357_v61 = vpack.c.bf16 %v5112_v53, %v5111_v52  ;;  %v7616_v63 = vpop.f32.mrb[24].mxu1  ;;  %v3376_v2 = vmax.f32 %v2752_v54, 0.0  ;;  %7574 = vmatprep.mubr.msk.bf16.mxu0 %vm1801_vm0, %v6625_v43 }
 0x204   : > { %v4173_v4 = vadd.f32 %v7616_v63, %v8951_v35  ;;  %v4164_v5 = vpop.f32.mrb[25].mxu1  ;;  %v3566_v6 = vpack.c.bf16 %v3378_v58, %v3377_v57  ;;  %v5488_v58 = vsel %vm1801_vm0, %v9001_v0, 0 }
 0x205   : > { %v4165_v9 = vadd.f32 %v8951_v35, %v4164_v5  ;;  %v7617_v10 = vpop.f32.mrb[26].mxu1  ;;  %v3565_v12 = vpack.c.bf16 %v3376_v2, %v3375_v1  ;;  %v7468_v13 = vpop.f32.mrb[136].mxu0  ;;  %v624_v5 = vld [vmem:[%s8199_s27 + $0x3f8] sm:$0xf] }
 0x206   : > { %v4176_v17 = vadd.f32 %v7617_v10, %v8951_v35  ;;  %v4167_v18 = vpop.f32.mrb[27].mxu1  ;;  %7185 = vmatpush3.bf16.xpose.msra.mxu0 %v5485_v11  ;;  %v2773_v19 = vadd.f32 %v9037_v62, %v7468_v13  ;;  %v2764_v20 = vpop.f32.mrb[137].mxu0  ;;  %v5117_v32 = vmax.f32 %v4173_v4, 0.0  ;;  %v6628_v4 = vcombine.low %v1132_v37, %v1133_v42  ;;  %v625_v10 = vld [vmem:[%s8199_s27 + $0x3fc] sm:$0xf]  ;;  %s5476_s27 = sld [smem:[#allocation2]] }
 0x207   : > { %v4168_v15 = vadd.f32 %v8951_v35, %v4167_v18  ;;  %7848 = vmatprep.subr.msk.bf16.mxu0 %vm1801_vm0, %v5357_v61  ;;  %v2765_v16 = vadd.f32 %v9037_v62, %v2764_v20  ;;  %v7469_v26 = vpop.f32.mrb[138].mxu0  ;;  %7722 = vmatprep.mubr.msk.bf16.mxu1 %vm1801_vm0, %v3565_v12  ;;  %v5115_v39 = vmax.f32 %v4165_v9, 0.0  ;;  %v6629_v9 = vcombine.low %v1134_v47, %v1135_v51  ;;  %v881_v11 = vld [vmem:[%s8204_s11 + $0x3fc] sm:$0xf] }
 0x208   : > { %v5118_v33 = vmax.f32 %v4176_v17, 0.0  ;;  %v2776_v34 = vadd.f32 %v9037_v62, %v7469_v26  ;;  %v2767_v36 = vpop.f32.mrb[139].mxu0  ;;  %7723 = vmatmul.mubr.msk.bf16.gmra.mrb[132].mxu1 %vm1801_vm0, %v3566_v6  ;;  %v3381_v44 = vmax.f32 %v2773_v19, 0.0  ;;  %v880_v6 = vld [vmem:[%s8204_s11 + $0x3f8] sm:$0xf]  ;;  %v5491_v37 = vsel %vm1801_vm0, %v8998_v59, 0 }
 0x209   : > { %v5116_v40 = vmax.f32 %v4168_v15, 0.0  ;;  %v2768_v21 = vadd.f32 %v9037_v62, %v2767_v36  ;;  %v3379_v27 = vmax.f32 %v2765_v16, 0.0  ;;  %v1137_v15 = vmul.bf16 %v881_v11, %v625_v10 }
 0x20a   : > { %v9130_v43 = vpack.c.bf16 %v5118_v33, %v5117_v32  ;;  %v3382_v45 = vmax.f32 %v2776_v34, 0.0  ;;  %7575 = vmatmul.mubr.msk.bf16.gmra.mrb[244].mxu0 %vm1801_vm0, %v6626_v22 }
 0x20b   : > { %v9133_v48 = vpack.c.bf16 %v5116_v40, %v5115_v39  ;;  %v7620_v49 = vpop.f32.mrb[28].mxu1  ;;  %v3380_v50 = vmax.f32 %v2768_v21, 0.0  ;;  %7578 = vmatprep.mubr.msk.bf16.mxu0 %vm1801_vm0, %v6627_v28 }
 0x20c   : > { %v4189_v52 = vadd.f32 %v7620_v49, %v8951_v35  ;;  %v4180_v53 = vpop.f32.mrb[29].mxu1  ;;  %v3568_v54 = vpack.c.bf16 %v3382_v45, %v3381_v44 }
 0x20d   : > { %v4181_v55 = vadd.f32 %v8951_v35, %v4180_v53  ;;  %v7621_v57 = vpop.f32.mrb[30].mxu1  ;;  %v3567_v60 = vpack.c.bf16 %v3380_v50, %v3379_v27  ;;  %v7472_v61 = vpop.f32.mrb[140].mxu0  ;;  %v9176_v53 = vld [vmem:[%s10091_s6] sm:$0x1] }
 0x20e   : > { %v4192_v63 = vadd.f32 %v7621_v57, %v8951_v35  ;;  %v4183_v1 = vpop.f32.mrb[31].mxu1  ;;  %7187 = vmatpush3.bf16.xpose.msra.mxu0 %v5488_v58  ;;  %v2789_v2 = vadd.f32 %v9037_v62, %v7472_v61  ;;  %v2780_v3 = vpop.f32.mrb[141].mxu0  ;;  %v5121_v12 = vmax.f32 %v4189_v52, 0.0 }
 0x20f   : > { %v4184_v7 = vadd.f32 %v8951_v35, %v4183_v1  ;;  %7849 = vmatprep.subr.msk.bf16.mxu0 %vm1801_vm0, %v9105_v56  ;;  %v2781_v0 = vadd.f32 %v9037_v62, %v2780_v3  ;;  %v7473_v8 = vpop.f32.mrb[142].mxu0  ;;  %7726 = vmatprep.mubr.msk.bf16.mxu1 %vm1801_vm0, %v3567_v60  ;;  %v5119_v18 = vmax.f32 %v4181_v55, 0.0  ;;  %v1136_v56 = vmul.bf16 %v880_v6, %v624_v5 }
 0x210   : > { %v5122_v13 = vmax.f32 %v4192_v63, 0.0  ;;  %v2792_v14 = vadd.f32 %v9037_v62, %v7473_v8  ;;  %v2783_v17 = vpop.f32.mrb[143].mxu0  ;;  %7727 = vmatmul.mubr.msk.bf16.gmra.mrb[136].mxu1 %vm1801_vm0, %v3568_v54  ;;  %v3385_v23 = vmax.f32 %v2789_v2, 0.0 }
 0x211   : > { %v5120_v19 = vmax.f32 %v4184_v7, 0.0  ;;  %v2784_v20 = vadd.f32 %v9037_v62, %v2783_v17  ;;  %v3383_v28 = vmax.f32 %v2781_v0, 0.0  ;;  %v6630_v45 = vcombine.low %v1136_v56, %v1137_v15 }
 0x212   : > { %v9154_v22 = vpack.c.bf16 %v5122_v13, %v5121_v12  ;;  %v3386_v25 = vmax.f32 %v2792_v14, 0.0  ;;  %7579 = vmatmul.mubr.msk.bf16.gmra.mrb[248].mxu0 %vm1801_vm0, %v6628_v4  ;;  %v5494_v0 = vsel %vm1801_vm0, %v9025_v46, 0 }
 0x213   : > { %v9157_v16 = vpack.c.bf16 %v5120_v19, %v5119_v18  ;;  %v7624_v26 = vpop.f32.mrb[32].mxu1  ;;  %v3384_v30 = vmax.f32 %v2784_v20, 0.0  ;;  %7582 = vmatprep.mubr.msk.bf16.mxu0 %vm1801_vm0, %v6629_v9 }
 0x214   : > { %v4205_v31 = vadd.f32 %v7624_v26, %v8951_v35  ;;  %v4196_v32 = vpop.f32.mrb[33].mxu1  ;;  %v3570_v33 = vpack.c.bf16 %v3386_v25, %v3385_v23 }
 0x215   : > { %v4197_v34 = vadd.f32 %v8951_v35, %v4196_v32  ;;  %v7625_v36 = vpop.f32.mrb[34].mxu1  ;;  %v3569_v38 = vpack.c.bf16 %v3384_v30, %v3383_v28  ;;  %v7476_v39 = vpop.f32.mrb[144].mxu0 }
 0x216   : > { %v4208_v40 = vadd.f32 %v7625_v36, %v8951_v35  ;;  %v4199_v21 = vpop.f32.mrb[35].mxu1  ;;  %7189 = vmatpush3.bf16.xpose.msra.mxu0 %v5491_v37  ;;  %v2805_v42 = vadd.f32 %v9037_v62, %v7476_v39  ;;  %v2796_v44 = vpop.f32.mrb[145].mxu0  ;;  %v5125_v59 = vmax.f32 %v4205_v31, 0.0 }
 0x217   : > { %v4200_v47 = vadd.f32 %v8951_v35, %v4199_v21  ;;  %7850 = vmatprep.subr.msk.bf16.mxu0 %vm1801_vm0, %v9133_v48  ;;  %v2797_v49 = vadd.f32 %v9037_v62, %v2796_v44  ;;  %v7477_v27 = vpop.f32.mrb[146].mxu0  ;;  %7730 = vmatprep.mubr.msk.bf16.mxu1 %vm1801_vm0, %v3569_v38  ;;  %v5123_v54 = vmax.f32 %v4197_v34, 0.0 }
 0x218   : > { %v5126_v50 = vmax.f32 %v4208_v40, 0.0  ;;  %v2808_v51 = vadd.f32 %v9037_v62, %v7477_v27  ;;  %v2799_v52 = vpop.f32.mrb[147].mxu0  ;;  %7731 = vmatmul.mubr.msk.bf16.gmra.mrb[140].mxu1 %vm1801_vm0, %v3570_v33  ;;  %v3389_v58 = vmax.f32 %v2805_v42, 0.0  ;;  %v5497_v40 = vsel %vm1801_vm0, %v9022_v41, 0 }
 0x219   : > { %v5124_v55 = vmax.f32 %v4200_v47, 0.0  ;;  %v2800_v48 = vadd.f32 %v9037_v62, %v2799_v52  ;;  %v3387_v1 = vmax.f32 %v2797_v49, 0.0 }
 0x21a   : > { %v9179_v57 = vpack.c.bf16 %v5126_v50, %v5125_v59  ;;  %v3390_v60 = vmax.f32 %v2808_v51, 0.0  ;;  %7583 = vmatmul.mubr.msk.bf16.gmra.mrb[252].mxu0 %vm1801_vm0, %v6630_v45 }
 0x21b   : > { %v9182_v61 = vpack.c.bf16 %v5124_v55, %v5123_v54  ;;  %v7628_v63 = vpop.f32.mrb[36].mxu1  ;;  %v3388_v2 = vmax.f32 %v2800_v48, 0.0  ;;  %7198 = vmatprep.mubr.msk.bf16.mxu0 %vm1801_vm0, %v9176_v53 }
 0x21c   : > { %v4221_v3 = vadd.f32 %v7628_v63, %v8951_v35  ;;  %v4212_v4 = vpop.f32.mrb[37].mxu1  ;;  %v3572_v5 = vpack.c.bf16 %v3390_v60, %v3389_v58 }
 0x21d   : > { %v4213_v6 = vadd.f32 %v8951_v35, %v4212_v4  ;;  %v7629_v7 = vpop.f32.mrb[38].mxu1  ;;  %v3571_v8 = vpack.c.bf16 %v3388_v2, %v3387_v1  ;;  %v7480_v9 = vpop.f32.mrb[148].mxu0 }
 0x21e   : > { %v4224_v10 = vadd.f32 %v7629_v7, %v8951_v35  ;;  %v4215_v11 = vpop.f32.mrb[39].mxu1  ;;  %7191 = vmatpush3.bf16.xpose.msra.mxu0 %v5494_v0  ;;  %v2821_v12 = vadd.f32 %v9037_v62, %v7480_v9  ;;  %v2812_v13 = vpop.f32.mrb[149].mxu0  ;;  %v5129_v46 = vmax.f32 %v4221_v3, 0.0  ;;  %v5500_v9 = vsel %vm1801_vm0, %v9054_v29, 0 }
 0x21f   : > { %v4216_v14 = vadd.f32 %v8951_v35, %v4215_v11  ;;  %7851 = vmatprep.subr.msk.bf16.mxu0 %vm1801_vm0, %v9130_v43  ;;  %v2813_v17 = vadd.f32 %v9037_v62, %v2812_v13  ;;  %v7481_v18 = vpop.f32.mrb[150].mxu0  ;;  %7734 = vmatprep.mubr.msk.bf16.mxu1 %vm1801_vm0, %v3571_v8  ;;  %v5127_v23 = vmax.f32 %v4213_v6, 0.0 }
 0x220   : > { %v5130_v19 = vmax.f32 %v4224_v10, 0.0  ;;  %v2824_v20 = vadd.f32 %v9037_v62, %v7481_v18  ;;  %v2815_v56 = vpop.f32.mrb[151].mxu0  ;;  %7735 = vmatmul.mubr.msk.bf16.gmra.mrb[144].mxu1 %vm1801_vm0, %v3572_v5  ;;  %v3393_v28 = vmax.f32 %v2821_v12, 0.0 }
 0x221   : > { %v5128_v25 = vmax.f32 %v4216_v14, 0.0  ;;  %v2816_v15 = vadd.f32 %v9037_v62, %v2815_v56  ;;  %v3391_v32 = vmax.f32 %v2813_v17, 0.0 }
 0x222   : > { %v9200_v26 = vpack.c.bf16 %v5130_v19, %v5129_v46  ;;  %v3394_v43 = vmax.f32 %v2824_v20, 0.0 }
 0x223   : > { %v9202_v30 = vpack.c.bf16 %v5128_v25, %v5127_v23  ;;  %v7632_v31 = vpop.f32.mrb[40].mxu1  ;;  %v3392_v33 = vmax.f32 %v2816_v15, 0.0 }
 0x224   : > { %v4237_v34 = vadd.f32 %v7632_v31, %v8951_v35  ;;  %v4228_v36 = vpop.f32.mrb[41].mxu1  ;;  %v3574_v37 = vpack.c.bf16 %v3394_v43, %v3393_v28 }
 0x225   : > { %v4229_v38 = vadd.f32 %v8951_v35, %v4228_v36  ;;  %v7633_v39 = vpop.f32.mrb[42].mxu1  ;;  %v3573_v21 = vpack.c.bf16 %v3392_v33, %v3391_v32  ;;  %v7484_v42 = vpop.f32.mrb[152].mxu0  ;;  %v9243_v36 = vld [vmem:[%s10090_s5] ss:$0 sm:$0xff] }
 0x226   : > { %v4240_v44 = vadd.f32 %v7633_v39, %v8951_v35  ;;  %v4231_v45 = vpop.f32.mrb[43].mxu1  ;;  %7193 = vmatpush3.bf16.xpose.msra.mxu0 %v5497_v40  ;;  %v2837_v47 = vadd.f32 %v9037_v62, %v7484_v42  ;;  %v2828_v49 = vpop.f32.mrb[153].mxu0  ;;  %v5133_v41 = vmax.f32 %v4237_v34, 0.0  ;;  %v5503_v42 = vsel %vm1801_vm0, %v9051_v24, 0 }
 0x227   : > { %v4232_v27 = vadd.f32 %v8951_v35, %v4231_v45  ;;  %7852 = vmatprep.subr.msk.bf16.mxu0 %vm1801_vm0, %v9157_v16  ;;  %v2829_v59 = vadd.f32 %v9037_v62, %v2828_v49  ;;  %v7485_v50 = vpop.f32.mrb[154].mxu0  ;;  %7738 = vmatprep.mubr.msk.bf16.mxu1 %vm1801_vm0, %v3573_v21  ;;  %v5131_v55 = vmax.f32 %v4229_v38, 0.0 }
 0x228   : > { %v5134_v51 = vmax.f32 %v4240_v44, 0.0  ;;  %v2840_v52 = vadd.f32 %v9037_v62, %v7485_v50  ;;  %v2831_v54 = vpop.f32.mrb[155].mxu0  ;;  %7739 = vmatmul.mubr.msk.bf16.gmra.mrb[148].mxu1 %vm1801_vm0, %v3574_v37  ;;  %v3397_v63 = vmax.f32 %v2837_v47, 0.0 }
 0x229   : > { %v5132_v48 = vmax.f32 %v4232_v27, 0.0  ;;  %v2832_v58 = vadd.f32 %v9037_v62, %v2831_v54  ;;  %v3395_v3 = vmax.f32 %v2829_v59, 0.0 }
 0x22a   : > { %v9218_v60 = vpack.c.bf16 %v5134_v51, %v5133_v41  ;;  %v3398_v16 = vmax.f32 %v2840_v52, 0.0 }
 0x22b   : > { %v9220_v1 = vpack.c.bf16 %v5132_v48, %v5131_v55  ;;  %v7636_v2 = vpop.f32.mrb[44].mxu1  ;;  %v3396_v4 = vmax.f32 %v2832_v58, 0.0 }
 0x22c   : > { %v4253_v5 = vadd.f32 %v7636_v2, %v8951_v35  ;;  %v4244_v6 = vpop.f32.mrb[45].mxu1  ;;  %v3576_v7 = vpack.c.bf16 %v3398_v16, %v3397_v63 }
 0x22d   : > { %v4245_v0 = vadd.f32 %v8951_v35, %v4244_v6  ;;  %v7637_v8 = vpop.f32.mrb[46].mxu1  ;;  %v3575_v10 = vpack.c.bf16 %v3396_v4, %v3395_v3  ;;  %v7488_v11 = vpop.f32.mrb[156].mxu0 }
 0x22e   : > { %v4256_v12 = vadd.f32 %v7637_v8, %v8951_v35  ;;  %v4247_v13 = vpop.f32.mrb[47].mxu1  ;;  %7195 = vmatpush3.bf16.xpose.msra.mxu0 %v5500_v9  ;;  %v2853_v14 = vadd.f32 %v9037_v62, %v7488_v11  ;;  %v2844_v17 = vpop.f32.mrb[157].mxu0  ;;  %v5137_v29 = vmax.f32 %v4253_v5, 0.0 }
 0x22f   : > { %v4248_v18 = vadd.f32 %v8951_v35, %v4247_v13  ;;  %7853 = vmatprep.subr.msk.bf16.mxu0 %vm1801_vm0, %v9154_v22  ;;  %v2845_v46 = vadd.f32 %v9037_v62, %v2844_v17  ;;  %v7489_v19 = vpop.f32.mrb[158].mxu0  ;;  %7742 = vmatprep.mubr.msk.bf16.mxu1 %vm1801_vm0, %v3575_v10  ;;  %v5135_v25 = vmax.f32 %v4245_v0, 0.0  ;;  %v5530_v10 = vsel %vm1801_vm0, %v9182_v61, 0 }
 0x230   : > { %v5138_v20 = vmax.f32 %v4256_v12, 0.0  ;;  %v2856_v56 = vadd.f32 %v9037_v62, %v7489_v19  ;;  %v2847_v23 = vpop.f32.mrb[159].mxu0  ;;  %7743 = vmatmul.mubr.msk.bf16.gmra.mrb[152].mxu1 %vm1801_vm0, %v3576_v7  ;;  %v3401_v43 = vmax.f32 %v2853_v14, 0.0 }
 0x231   : > { %v5136_v15 = vmax.f32 %v4248_v18, 0.0  ;;  %v2848_v28 = vadd.f32 %v9037_v62, %v2847_v23  ;;  %v3399_v33 = vmax.f32 %v2845_v46, 0.0 }
 0x232   : > { %v9236_v35 = vpack.c.bf16 %v5138_v20, %v5137_v29  ;;  %v3402_v22 = vmax.f32 %v2856_v56, 0.0 }
 0x233   : > { %v9238_v31 = vpack.c.bf16 %v5136_v15, %v5135_v25  ;;  %v7640_v32 = vpop.f32.mrb[48].mxu1  ;;  %v3400_v34 = vmax.f32 %v2848_v28, 0.0 }
 0x234   : > { %v4269_v37 = vadd.f32 %v9243_v36, %v7640_v32  ;;  %v4260_v38 = vpop.f32.mrb[49].mxu1  ;;  %v3578_v39 = vpack.c.bf16 %v3402_v22, %v3401_v43 }
 0x235   : > { %v4261_v40 = vadd.f32 %v9243_v36, %v4260_v38  ;;  %v7641_v21 = vpop.f32.mrb[50].mxu1  ;;  %v3577_v44 = vpack.c.bf16 %v3400_v34, %v3399_v33  ;;  %v7492_v45 = vpop.f32.mrb[160].mxu0 }
 0x236   : > { %v4272_v47 = vadd.f32 %v9243_v36, %v7641_v21  ;;  %v4263_v49 = vpop.f32.mrb[51].mxu1  ;;  %7197 = vmatpush3.bf16.xpose.msra.mxu0 %v5503_v42  ;;  %v2869_v27 = vadd.f32 %v9037_v62, %v7492_v45  ;;  %v2860_v59 = vpop.f32.mrb[161].mxu0  ;;  %v5141_v52 = vmax.f32 %v4269_v37, 0.0 }
 0x237   : > { %v4264_v50 = vadd.f32 %v9243_v36, %v4263_v49  ;;  %v2861_v41 = vadd.f32 %v9037_v62, %v2860_v59  ;;  %v7493_v51 = vpop.f32.mrb[162].mxu0  ;;  %7746 = vmatprep.mubr.msk.bf16.mxu1 %vm1801_vm0, %v3577_v44  ;;  %v5139_v48 = vmax.f32 %v4261_v40, 0.0  ;;  %v5533_v44 = vsel %vm1801_vm0, %v9179_v57, 0 }
 0x238   : > { %v5142_v54 = vmax.f32 %v4272_v47, 0.0  ;;  %v2872_v24 = vadd.f32 %v9037_v62, %v7493_v51  ;;  %v2863_v55 = vpop.f32.mrb[163].mxu0  ;;  %7747 = vmatmul.mubr.msk.bf16.gmra.mrb[156].mxu1 %vm1801_vm0, %v3578_v39  ;;  %v3405_v2 = vmax.f32 %v2869_v27, 0.0 }
 0x239   : > { %v5140_v58 = vmax.f32 %v4264_v50, 0.0  ;;  %v2864_v63 = vadd.f32 %v9037_v62, %v2863_v55  ;;  %v3403_v6 = vmax.f32 %v2861_v41, 0.0 }
 0x23a   : > { %v5372_v16 = vpack.c.bf16 %v5142_v54, %v5141_v52  ;;  %v3406_v3 = vmax.f32 %v2872_v24, 0.0 }
 0x23b   : > { %v5371_v4 = vpack.c.bf16 %v5140_v58, %v5139_v48  ;;  %v7644_v5 = vpop.f32.mrb[52].mxu1  ;;  %v3404_v7 = vmax.f32 %v2864_v63, 0.0 }
 0x23c   : > { %v4285_v0 = vadd.f32 %v9243_v36, %v7644_v5  ;;  %v4276_v8 = vpop.f32.mrb[53].mxu1  ;;  %v3580_v9 = vpack.c.bf16 %v3406_v3, %v3405_v2 }
 0x23d   : > { %7854 = vmatprep.subr.msk.bf16.mxu1 %vm1801_vm0, %v5371_v4  ;;  %v4277_v11 = vadd.f32 %v9243_v36, %v4276_v8  ;;  %v7645_v12 = vpop.f32.mrb[54].mxu1  ;;  %v3579_v13 = vpack.c.bf16 %v3404_v7, %v3403_v6  ;;  %v7496_v14 = vpop.f32.mrb[164].mxu0  ;;  %7199 = vmatmul.mubr.msk.bf16.vlgmr.msra.gmra.mrb[0].mxu0 %vm1801_vm0, %v9176_v53 }
 0x23e   : > { %7201 = vmatpush3.bf16.xpose.msra.mxu1 %v5530_v10  ;;  %v4288_v17 = vadd.f32 %v9243_v36, %v7645_v12  ;;  %v4279_v18 = vpop.f32.mrb[55].mxu1  ;;  %v2885_v46 = vadd.f32 %v9037_v62, %v7496_v14  ;;  %v2876_v19 = vpop.f32.mrb[165].mxu0  ;;  %7234 = vmatprep.mubr.msk.bf16.mxu0 %vm1801_vm0, %v9176_v53  ;;  %v5145_v56 = vmax.f32 %v4285_v0, 0.0  ;;  %v5536_v12 = vsel %vm1801_vm0, %v9202_v30, 0 }
 0x23f   : > { %7855 = vmatprep.subr.msk.bf16.mxu1 %vm1801_vm0, %v5372_v16  ;;  %v4280_v61 = vadd.f32 %v9243_v36, %v4279_v18  ;;  %v2877_v29 = vadd.f32 %v9037_v62, %v2876_v19  ;;  %v7497_v20 = vpop.f32.mrb[166].mxu0  ;;  %7750 = vmatprep.mubr.msk.bf16.mxu1 %vm1801_vm0, %v3579_v13  ;;  %v5143_v28 = vmax.f32 %v4277_v11, 0.0 }
 0x240   : > { %v5146_v23 = vmax.f32 %v4288_v17, 0.0  ;;  %v2888_v25 = vadd.f32 %v9037_v62, %v7497_v20  ;;  %v2879_v15 = vpop.f32.mrb[167].mxu0  ;;  %7751 = vmatmul.mubr.msk.bf16.gmra.mrb[160].mxu1 %vm1801_vm0, %v3580_v9  ;;  %v3409_v32 = vmax.f32 %v2885_v46, 0.0 }
 0x241   : > { %v5144_v43 = vmax.f32 %v4280_v61, 0.0  ;;  %v2880_v53 = vadd.f32 %v9037_v62, %v2879_v15  ;;  %v3407_v38 = vmax.f32 %v2877_v29, 0.0 }
 0x242   : > { %v5374_v22 = vpack.c.bf16 %v5146_v23, %v5145_v56  ;;  %v3410_v33 = vmax.f32 %v2888_v25, 0.0 }
 0x243   : > { %v5373_v34 = vpack.c.bf16 %v5144_v43, %v5143_v28  ;;  %v7648_v37 = vpop.f32.mrb[56].mxu1  ;;  %v3408_v39 = vmax.f32 %v2880_v53, 0.0 }
 0x244   : > { %v4301_v40 = vadd.f32 %v9243_v36, %v7648_v37  ;;  %v4292_v21 = vpop.f32.mrb[57].mxu1  ;;  %v3582_v42 = vpack.c.bf16 %v3410_v33, %v3409_v32 }
 0x245   : > { %v4293_v45 = vadd.f32 %v9243_v36, %v4292_v21  ;;  %v7649_v47 = vpop.f32.mrb[58].mxu1  ;;  %v3581_v49 = vpack.c.bf16 %v3408_v39, %v3407_v38  ;;  %v7500_v27 = vpop.f32.mrb[168].mxu0 }
 0x246   : > { %7203 = vmatpush3.bf16.xpose.msra.mxu1 %v5533_v44  ;;  %v4304_v59 = vadd.f32 %v9243_v36, %v7649_v47  ;;  %v4295_v50 = vpop.f32.mrb[59].mxu1  ;;  %v2901_v41 = vadd.f32 %v9037_v62, %v7500_v27  ;;  %v2892_v51 = vpop.f32.mrb[169].mxu0  ;;  %v5149_v57 = vmax.f32 %v4301_v40, 0.0 }
 0x247   : > { %7856 = vmatprep.subr.msk.bf16.mxu1 %vm1801_vm0, %v5373_v34  ;;  %v4296_v52 = vadd.f32 %v9243_v36, %v4295_v50  ;;  %v2893_v54 = vadd.f32 %v9037_v62, %v2892_v51  ;;  %v7501_v24 = vpop.f32.mrb[170].mxu0  ;;  %7754 = vmatprep.mubr.msk.bf16.mxu1 %vm1801_vm0, %v3581_v49  ;;  %v5147_v63 = vmax.f32 %v4293_v45, 0.0  ;;  %v5539_v45 = vsel %vm1801_vm0, %v9200_v26, 0 }
 0x248   : > { %v5150_v55 = vmax.f32 %v4304_v59, 0.0  ;;  %v2904_v48 = vadd.f32 %v9037_v62, %v7501_v24  ;;  %v2895_v58 = vpop.f32.mrb[171].mxu0  ;;  %7755 = vmatmul.mubr.msk.bf16.gmra.mrb[164].mxu1 %vm1801_vm0, %v3582_v42  ;;  %v3413_v4 = vmax.f32 %v2901_v41, 0.0 }
 0x249   : > { %v5148_v16 = vmax.f32 %v4296_v52, 0.0  ;;  %v2896_v2 = vadd.f32 %v9037_v62, %v2895_v58  ;;  %v3411_v0 = vmax.f32 %v2893_v54, 0.0 }
 0x24a   : > { %v9288_v3 = vpack.c.bf16 %v5150_v55, %v5149_v57  ;;  %v3414_v5 = vmax.f32 %v2904_v48, 0.0 }
 0x24b   : > { %v5375_v6 = vpack.c.bf16 %v5148_v16, %v5147_v63  ;;  %v7652_v7 = vpop.f32.mrb[60].mxu1  ;;  %v3412_v8 = vmax.f32 %v2896_v2, 0.0  ;;  %v9322_v63 = vld [vmem:[%s10088_s3] ss:$0 sm:$0xff] }
 0x24c   : > { %v4317_v9 = vadd.f32 %v9243_v36, %v7652_v7  ;;  %v4308_v10 = vpop.f32.mrb[61].mxu1  ;;  %v3584_v11 = vpack.c.bf16 %v3414_v5, %v3413_v4 }
 0x24d   : > { %v4309_v13 = vadd.f32 %v9243_v36, %v4308_v10  ;;  %v7653_v14 = vpop.f32.mrb[62].mxu1  ;;  %v3583_v17 = vpack.c.bf16 %v3412_v8, %v3411_v0  ;;  %v7504_v18 = vpop.f32.mrb[172].mxu0 }
 0x24e   : > { %7205 = vmatpush3.bf16.xpose.msra.mxu1 %v5536_v12  ;;  %v4320_v46 = vadd.f32 %v9243_v36, %v7653_v14  ;;  %v4311_v19 = vpop.f32.mrb[63].mxu1  ;;  %v2917_v61 = vadd.f32 %v9037_v62, %v7504_v18  ;;  %v2908_v29 = vpop.f32.mrb[173].mxu0  ;;  %v5153_v30 = vmax.f32 %v4317_v9, 0.0 }
 0x24f   : > { %7857 = vmatprep.subr.msk.bf16.mxu1 %vm1801_vm0, %v5374_v22  ;;  %v4312_v20 = vadd.f32 %v9243_v36, %v4311_v19  ;;  %v2909_v56 = vadd.f32 %v9037_v62, %v2908_v29  ;;  %v7505_v23 = vpop.f32.mrb[174].mxu0  ;;  %7758 = vmatprep.mubr.msk.bf16.mxu1 %vm1801_vm0, %v3583_v17  ;;  %v5151_v43 = vmax.f32 %v4309_v13, 0.0  ;;  %v5542_v13 = vsel %vm1801_vm0, %v9220_v1, 0 }
 0x250   : > { %v5154_v25 = vmax.f32 %v4320_v46, 0.0  ;;  %v2920_v15 = vadd.f32 %v9037_v62, %v7505_v23  ;;  %v2911_v28 = vpop.f32.mrb[175].mxu0  ;;  %7759 = vmatmul.mubr.msk.bf16.gmra.mrb[168].mxu1 %vm1801_vm0, %v3584_v11  ;;  %v3417_v22 = vmax.f32 %v2917_v61, 0.0 }
 0x251   : > { %v5152_v53 = vmax.f32 %v4312_v20, 0.0  ;;  %v2912_v32 = vadd.f32 %v9037_v62, %v2911_v28  ;;  %v3415_v38 = vmax.f32 %v2909_v56, 0.0 }
 0x252   : > { %v9303_v33 = vpack.c.bf16 %v5154_v25, %v5153_v30  ;;  %v3418_v34 = vmax.f32 %v2920_v15, 0.0 }
 0x253   : > { %v9305_v37 = vpack.c.bf16 %v5152_v53, %v5151_v43  ;;  %v3416_v39 = vmax.f32 %v2912_v32, 0.0  ;;  %v7656_v40 = vpop.f32.mrb[64].mxu1 }
 0x254   : > { %v3586_v21 = vpack.c.bf16 %v3418_v34, %v3417_v22  ;;  %v4333_v42 = vadd.f32 %v9243_v36, %v7656_v40  ;;  %v4324_v44 = vpop.f32.mrb[65].mxu1 }
 0x255   : > { %v3585_v47 = vpack.c.bf16 %v3416_v39, %v3415_v38  ;;  %v7508_v49 = vpop.f32.mrb[176].mxu0  ;;  %v4325_v27 = vadd.f32 %v9243_v36, %v4324_v44  ;;  %v7657_v59 = vpop.f32.mrb[66].mxu1 }
 0x256   : > { %7207 = vmatpush3.bf16.xpose.msra.mxu1 %v5539_v45  ;;  %v2933_v50 = vadd.f32 %v9037_v62, %v7508_v49  ;;  %v2924_v41 = vpop.f32.mrb[177].mxu0  ;;  %v4336_v51 = vadd.f32 %v9243_v36, %v7657_v59  ;;  %v4327_v52 = vpop.f32.mrb[67].mxu1  ;;  %v5157_v48 = vmax.f32 %v4333_v42, 0.0 }
 0x257   : > { %7858 = vmatprep.subr.msk.bf16.mxu1 %vm1801_vm0, %v5375_v6  ;;  %v2925_v54 = vadd.f32 %v9037_v62, %v2924_v41  ;;  %v7509_v24 = vpop.f32.mrb[178].mxu0  ;;  %7762 = vmatprep.mubr.msk.bf16.mxu1 %vm1801_vm0, %v3585_v47  ;;  %v4328_v26 = vadd.f32 %v9243_v36, %v4327_v52  ;;  %v5155_v2 = vmax.f32 %v4325_v27, 0.0  ;;  %v5545_v47 = vsel %vm1801_vm0, %v9218_v60, 0 }
 0x258   : > { %v2936_v57 = vadd.f32 %v9037_v62, %v7509_v24  ;;  %v2927_v55 = vpop.f32.mrb[179].mxu0  ;;  %7763 = vmatmul.mubr.msk.bf16.gmra.mrb[172].mxu1 %vm1801_vm0, %v3586_v21  ;;  %v5158_v58 = vmax.f32 %v4336_v51, 0.0  ;;  %v3421_v5 = vmax.f32 %v2933_v50, 0.0 }
 0x259   : > { %v2928_v16 = vadd.f32 %v9322_v63, %v2927_v55  ;;  %v5156_v4 = vmax.f32 %v4328_v26, 0.0  ;;  %v3419_v0 = vmax.f32 %v2925_v54, 0.0 }
 0x25a   : > { %v3422_v6 = vmax.f32 %v2936_v57, 0.0  ;;  %v9325_v7 = vpack.c.bf16 %v5158_v58, %v5157_v48 }
 0x25b   : > { %v3420_v62 = vmax.f32 %v2928_v16, 0.0  ;;  %v9327_v8 = vpack.c.bf16 %v5156_v4, %v5155_v2  ;;  %v7660_v9 = vpop.f32.mrb[68].mxu1 }
 0x25c   : > { %v3588_v10 = vpack.c.bf16 %v3422_v6, %v3421_v5  ;;  %v4349_v11 = vadd.f32 %v9243_v36, %v7660_v9  ;;  %v4340_v12 = vpop.f32.mrb[69].mxu1 }
 0x25d   : > { %v3587_v14 = vpack.c.bf16 %v3420_v62, %v3419_v0  ;;  %v7512_v17 = vpop.f32.mrb[180].mxu0  ;;  %v4341_v18 = vadd.f32 %v9243_v36, %v4340_v12  ;;  %v7661_v46 = vpop.f32.mrb[70].mxu1 }
 0x25e   : > { %7209 = vmatpush3.bf16.xpose.msra.mxu1 %v5542_v13  ;;  %v2949_v19 = vadd.f32 %v9322_v63, %v7512_v17  ;;  %v2940_v61 = vpop.f32.mrb[181].mxu0  ;;  %v4352_v29 = vadd.f32 %v9243_v36, %v7661_v46  ;;  %v4343_v20 = vpop.f32.mrb[71].mxu1  ;;  %v5161_v15 = vmax.f32 %v4349_v11, 0.0 }
 0x25f   : > { %7859 = vmatprep.subr.msk.bf16.mxu1 %vm1801_vm0, %v9288_v3  ;;  %v2941_v56 = vadd.f32 %v9322_v63, %v2940_v61  ;;  %v7513_v23 = vpop.f32.mrb[182].mxu0  ;;  %7766 = vmatprep.mubr.msk.bf16.mxu1 %vm1801_vm0, %v3587_v14  ;;  %v4344_v1 = vadd.f32 %v9243_v36, %v4343_v20  ;;  %v5159_v53 = vmax.f32 %v4341_v18, 0.0  ;;  %v5548_v14 = vsel %vm1801_vm0, %v9238_v31, 0 }
 0x260   : > { %v2952_v30 = vadd.f32 %v9322_v63, %v7513_v23  ;;  %v2943_v25 = vpop.f32.mrb[183].mxu0  ;;  %7767 = vmatmul.mubr.msk.bf16.gmra.mrb[176].mxu1 %vm1801_vm0, %v3588_v10  ;;  %v5162_v28 = vmax.f32 %v4352_v29, 0.0  ;;  %v3425_v22 = vmax.f32 %v2949_v19, 0.0 }
 0x261   : > { %v2944_v43 = vadd.f32 %v9322_v63, %v2943_v25  ;;  %v5160_v32 = vmax.f32 %v4344_v1, 0.0  ;;  %v3423_v38 = vmax.f32 %v2941_v56, 0.0 }
 0x262   : > { %v3426_v3 = vmax.f32 %v2952_v30, 0.0  ;;  %v9343_v34 = vpack.c.bf16 %v5162_v28, %v5161_v15 }
 0x263   : > { %v3424_v39 = vmax.f32 %v2944_v43, 0.0  ;;  %v9345_v40 = vpack.c.bf16 %v5160_v32, %v5159_v53  ;;  %v7664_v21 = vpop.f32.mrb[72].mxu1 }
 0x264   : > { %v3590_v42 = vpack.c.bf16 %v3426_v3, %v3425_v22  ;;  %v4365_v44 = vadd.f32 %v9243_v36, %v7664_v21  ;;  %v4356_v45 = vpop.f32.mrb[73].mxu1 }
 0x265   : > { %v3589_v49 = vpack.c.bf16 %v3424_v39, %v3423_v38  ;;  %v7516_v27 = vpop.f32.mrb[184].mxu0  ;;  %v4357_v59 = vadd.f32 %v9243_v36, %v4356_v45  ;;  %v7665_v50 = vpop.f32.mrb[74].mxu1 }
 0x266   : > { %7211 = vmatpush3.bf16.xpose.msra.mxu1 %v5545_v47  ;;  %v2965_v41 = vadd.f32 %v9322_v63, %v7516_v27  ;;  %v2956_v51 = vpop.f32.mrb[185].mxu0  ;;  %v4368_v52 = vadd.f32 %v9243_v36, %v7665_v50  ;;  %v4359_v54 = vpop.f32.mrb[75].mxu1  ;;  %v5165_v48 = vmax.f32 %v4365_v44, 0.0 }
 0x267   : > { %7860 = vmatprep.subr.msk.bf16.mxu1 %vm1801_vm0, %v9305_v37  ;;  %v2957_v24 = vadd.f32 %v9322_v63, %v2956_v51  ;;  %v7517_v26 = vpop.f32.mrb[186].mxu0  ;;  %7770 = vmatprep.mubr.msk.bf16.mxu1 %vm1801_vm0, %v3589_v49  ;;  %v4360_v60 = vadd.f32 %v9243_v36, %v4359_v54  ;;  %v5163_v2 = vmax.f32 %v4357_v59, 0.0  ;;  %v5551_v49 = vsel %vm1801_vm0, %v9236_v35, 0 }
 0x268   : > { %v2968_v57 = vadd.f32 %v9322_v63, %v7517_v26  ;;  %v2959_v55 = vpop.f32.mrb[187].mxu0  ;;  %7771 = vmatmul.mubr.msk.bf16.gmra.mrb[180].mxu1 %vm1801_vm0, %v3590_v42  ;;  %v5166_v58 = vmax.f32 %v4368_v52, 0.0  ;;  %v3429_v5 = vmax.f32 %v2965_v41, 0.0 }
 0x269   : > { %v2960_v16 = vadd.f32 %v9322_v63, %v2959_v55  ;;  %v5164_v4 = vmax.f32 %v4360_v60, 0.0  ;;  %v3427_v0 = vmax.f32 %v2957_v24, 0.0 }
 0x26a   : > { %v3430_v37 = vmax.f32 %v2968_v57, 0.0  ;;  %v9361_v6 = vpack.c.bf16 %v5166_v58, %v5165_v48 }
 0x26b   : > { %v3428_v62 = vmax.f32 %v2960_v16, 0.0  ;;  %v9363_v9 = vpack.c.bf16 %v5164_v4, %v5163_v2  ;;  %v7668_v10 = vpop.f32.mrb[76].mxu1 }
 0x26c   : > { %v3592_v11 = vpack.c.bf16 %v3430_v37, %v3429_v5  ;;  %v4381_v12 = vadd.f32 %v9243_v36, %v7668_v10  ;;  %v4372_v13 = vpop.f32.mrb[77].mxu1 }
 0x26d   : > { %v3591_v17 = vpack.c.bf16 %v3428_v62, %v3427_v0  ;;  %v7520_v18 = vpop.f32.mrb[188].mxu0  ;;  %v4373_v46 = vadd.f32 %v9243_v36, %v4372_v13  ;;  %v7669_v19 = vpop.f32.mrb[78].mxu1 }
 0x26e   : > { %7213 = vmatpush3.bf16.xpose.msra.mxu1 %v5548_v14  ;;  %v2981_v61 = vadd.f32 %v9322_v63, %v7520_v18  ;;  %v2972_v29 = vpop.f32.mrb[189].mxu0  ;;  %v4384_v20 = vadd.f32 %v9243_v36, %v7669_v19  ;;  %v4375_v56 = vpop.f32.mrb[79].mxu1  ;;  %v5169_v15 = vmax.f32 %v4381_v12, 0.0  ;;  %v5578_v19 = vsel %vm1801_vm0, %v9327_v8, 0 }
 0x26f   : > { %7861 = vmatprep.subr.msk.bf16.mxu1 %vm1801_vm0, %v9303_v33  ;;  %v2973_v23 = vadd.f32 %v9322_v63, %v2972_v29  ;;  %v7521_v1 = vpop.f32.mrb[190].mxu0  ;;  %7774 = vmatprep.mubr.msk.bf16.mxu1 %vm1801_vm0, %v3591_v17  ;;  %v4376_v31 = vadd.f32 %v9243_v36, %v4375_v56  ;;  %v5167_v53 = vmax.f32 %v4373_v46, 0.0 }
 0x270   : > { %v2984_v30 = vadd.f32 %v9322_v63, %v7521_v1  ;;  %v2975_v25 = vpop.f32.mrb[191].mxu0  ;;  %7775 = vmatmul.mubr.msk.bf16.gmra.mrb[184].mxu1 %vm1801_vm0, %v3592_v11  ;;  %v5170_v28 = vmax.f32 %v4384_v20, 0.0  ;;  %v3433_v22 = vmax.f32 %v2981_v61, 0.0 }
 0x271   : > { %v2976_v43 = vadd.f32 %v9322_v63, %v2975_v25  ;;  %v5168_v32 = vmax.f32 %v4376_v31, 0.0  ;;  %v3431_v38 = vmax.f32 %v2973_v23, 0.0 }
 0x272   : > { %v3434_v33 = vmax.f32 %v2984_v30, 0.0  ;;  %v9379_v3 = vpack.c.bf16 %v5170_v28, %v5169_v15 }
 0x273   : > { %v3432_v39 = vmax.f32 %v2976_v43, 0.0  ;;  %v9381_v21 = vpack.c.bf16 %v5168_v32, %v5167_v53  ;;  %v7672_v42 = vpop.f32.mrb[80].mxu1 }
 0x274   : > { %v3594_v44 = vpack.c.bf16 %v3434_v33, %v3433_v22  ;;  %v4397_v45 = vadd.f32 %v9243_v36, %v7672_v42  ;;  %v4388_v47 = vpop.f32.mrb[81].mxu1 }
 0x275   : > { %v3593_v27 = vpack.c.bf16 %v3432_v39, %v3431_v38  ;;  %v7524_v59 = vpop.f32.mrb[192].mxu0  ;;  %v4389_v50 = vadd.f32 %v9243_v36, %v4388_v47  ;;  %v7673_v41 = vpop.f32.mrb[82].mxu1 }
 0x276   : > { %7215 = vmatpush3.bf16.xpose.msra.mxu1 %v5551_v49  ;;  %v2997_v51 = vadd.f32 %v9322_v63, %v7524_v59  ;;  %v2988_v52 = vpop.f32.mrb[193].mxu0  ;;  %v4400_v54 = vadd.f32 %v9243_v36, %v7673_v41  ;;  %v4391_v24 = vpop.f32.mrb[83].mxu1  ;;  %v5173_v48 = vmax.f32 %v4397_v45, 0.0 }
 0x277   : > { %v2989_v26 = vadd.f32 %v9322_v63, %v2988_v52  ;;  %v7525_v60 = vpop.f32.mrb[194].mxu0  ;;  %7778 = vmatprep.mubr.msk.bf16.mxu1 %vm1801_vm0, %v3593_v27  ;;  %v4392_v57 = vadd.f32 %v9243_v36, %v4391_v24  ;;  %v5171_v2 = vmax.f32 %v4389_v50, 0.0 }
 0x278   : > { %v3000_v35 = vadd.f32 %v9322_v63, %v7525_v60  ;;  %v2991_v55 = vpop.f32.mrb[195].mxu0  ;;  %7779 = vmatmul.mubr.msk.bf16.gmra.mrb[188].mxu1 %vm1801_vm0, %v3594_v44  ;;  %v5174_v58 = vmax.f32 %v4400_v54, 0.0  ;;  %v3437_v5 = vmax.f32 %v2997_v51, 0.0  ;;  %v5581_v51 = vsel %vm1801_vm0, %v9325_v7, 0 }
 0x279   : > { %v2992_v16 = vadd.f32 %v9322_v63, %v2991_v55  ;;  %v5172_v4 = vmax.f32 %v4392_v57, 0.0  ;;  %v3435_v62 = vmax.f32 %v2989_v26, 0.0 }
 0x27a   : > { %v3438_v37 = vmax.f32 %v3000_v35, 0.0  ;;  %v5388_v0 = vpack.c.bf16 %v5174_v58, %v5173_v48 }
 0x27b   : > { %v3436_v10 = vmax.f32 %v2992_v16, 0.0  ;;  %v5387_v11 = vpack.c.bf16 %v5172_v4, %v5171_v2  ;;  %v7676_v12 = vpop.f32.mrb[84].mxu1 }
 0x27c   : > { %v3596_v13 = vpack.c.bf16 %v3438_v37, %v3437_v5  ;;  %v4413_v14 = vadd.f32 %v9243_v36, %v7676_v12  ;;  %v4404_v17 = vpop.f32.mrb[85].mxu1 }
 0x27d   : > { %v3595_v18 = vpack.c.bf16 %v3436_v10, %v3435_v62  ;;  %v7528_v46 = vpop.f32.mrb[196].mxu0  ;;  %7862 = vmatprep.subr.msk.bf16.mxu0 %vm1801_vm0, %v5387_v11  ;;  %v4405_v61 = vadd.f32 %v9243_v36, %v4404_v17  ;;  %v7677_v29 = vpop.f32.mrb[86].mxu1 }
 0x27e   : > { %v3013_v20 = vadd.f32 %v9322_v63, %v7528_v46  ;;  %v3004_v56 = vpop.f32.mrb[197].mxu0  ;;  %7219 = vmatpush3.bf16.xpose.msra.mxu0 %v5578_v19  ;;  %v4416_v23 = vadd.f32 %v9243_v36, %v7677_v29  ;;  %v4407_v1 = vpop.f32.mrb[87].mxu1  ;;  %v5177_v28 = vmax.f32 %v4413_v14, 0.0  ;;  %v5584_v29 = vsel %vm1801_vm0, %v9345_v40, 0 }
 0x27f   : > { %v3005_v31 = vadd.f32 %v9322_v63, %v3004_v56  ;;  %v7529_v30 = vpop.f32.mrb[198].mxu0  ;;  %7782 = vmatprep.mubr.msk.bf16.mxu1 %vm1801_vm0, %v3595_v18  ;;  %7863 = vmatprep.subr.msk.bf16.mxu0 %vm1801_vm0, %v5388_v0  ;;  %v4408_v25 = vadd.f32 %v9243_v36, %v4407_v1  ;;  %v5175_v32 = vmax.f32 %v4405_v61, 0.0 }
 0x280   : > { %v3016_v8 = vadd.f32 %v9322_v63, %v7529_v30  ;;  %v3007_v15 = vpop.f32.mrb[199].mxu0  ;;  %7783 = vmatmul.mubr.msk.bf16.gmra.mrb[192].mxu1 %vm1801_vm0, %v3596_v13  ;;  %v5178_v43 = vmax.f32 %v4416_v23, 0.0  ;;  %v3441_v33 = vmax.f32 %v3013_v20, 0.0 }
 0x281   : > { %v3008_v53 = vadd.f32 %v9322_v63, %v3007_v15  ;;  %v5176_v22 = vmax.f32 %v4408_v25, 0.0  ;;  %v3439_v42 = vmax.f32 %v3005_v31, 0.0 }
 0x282   : > { %v3442_v38 = vmax.f32 %v3016_v8, 0.0  ;;  %v5390_v39 = vpack.c.bf16 %v5178_v43, %v5177_v28 }
 0x283   : > { %v3440_v44 = vmax.f32 %v3008_v53, 0.0  ;;  %v5389_v45 = vpack.c.bf16 %v5176_v22, %v5175_v32  ;;  %v7680_v47 = vpop.f32.mrb[88].mxu1 }
 0x284   : > { %v3598_v49 = vpack.c.bf16 %v3442_v38, %v3441_v33  ;;  %v4429_v27 = vadd.f32 %v9243_v36, %v7680_v47  ;;  %v4420_v59 = vpop.f32.mrb[89].mxu1 }
 0x285   : > { %v3597_v50 = vpack.c.bf16 %v3440_v44, %v3439_v42  ;;  %v7532_v41 = vpop.f32.mrb[200].mxu0  ;;  %v4421_v52 = vadd.f32 %v9243_v36, %v4420_v59  ;;  %v7681_v54 = vpop.f32.mrb[90].mxu1 }
 0x286   : > { %v3029_v24 = vadd.f32 %v9322_v63, %v7532_v41  ;;  %v3020_v26 = vpop.f32.mrb[201].mxu0  ;;  %7221 = vmatpush3.bf16.xpose.msra.mxu0 %v5581_v51  ;;  %v4432_v60 = vadd.f32 %v9243_v36, %v7681_v54  ;;  %v4423_v57 = vpop.f32.mrb[91].mxu1  ;;  %v5181_v16 = vmax.f32 %v4429_v27, 0.0 }
 0x287   : > { %v3021_v35 = vadd.f32 %v9322_v63, %v3020_v26  ;;  %v7533_v55 = vpop.f32.mrb[202].mxu0  ;;  %7786 = vmatprep.mubr.msk.bf16.mxu1 %vm1801_vm0, %v3597_v50  ;;  %7864 = vmatprep.subr.msk.bf16.mxu0 %vm1801_vm0, %v5389_v45  ;;  %v4424_v48 = vadd.f32 %v9243_v36, %v4423_v57  ;;  %v5179_v5 = vmax.f32 %v4421_v52, 0.0  ;;  %v5587_v52 = vsel %vm1801_vm0, %v9343_v34, 0 }
 0x288   : > { %v3032_v7 = vadd.f32 %v9322_v63, %v7533_v55  ;;  %v3023_v58 = vpop.f32.mrb[203].mxu0  ;;  %7787 = vmatmul.mubr.msk.bf16.gmra.mrb[196].mxu1 %vm1801_vm0, %v3598_v49  ;;  %v5182_v2 = vmax.f32 %v4432_v60, 0.0  ;;  %v3445_v0 = vmax.f32 %v3029_v24, 0.0 }
 0x289   : > { %v3024_v4 = vadd.f32 %v9322_v63, %v3023_v58  ;;  %v5180_v37 = vmax.f32 %v4424_v48, 0.0  ;;  %v3443_v11 = vmax.f32 %v3021_v35, 0.0 }
 0x28a   : > { %v3446_v62 = vmax.f32 %v3032_v7, 0.0  ;;  %v9422_v10 = vpack.c.bf16 %v5182_v2, %v5181_v16 }
 0x28b   : > { %v3444_v12 = vmax.f32 %v3024_v4, 0.0  ;;  %v5391_v13 = vpack.c.bf16 %v5180_v37, %v5179_v5  ;;  %v7684_v14 = vpop.f32.mrb[92].mxu1 }
 0x28c   : > { %v3600_v17 = vpack.c.bf16 %v3446_v62, %v3445_v0  ;;  %v4445_v18 = vadd.f32 %v9243_v36, %v7684_v14  ;;  %v4436_v46 = vpop.f32.mrb[93].mxu1 }
 0x28d   : > { %v3599_v19 = vpack.c.bf16 %v3444_v12, %v3443_v11  ;;  %v7536_v61 = vpop.f32.mrb[204].mxu0  ;;  %v4437_v20 = vadd.f32 %v9243_v36, %v4436_v46  ;;  %v7685_v56 = vpop.f32.mrb[94].mxu1 }
 0x28e   : > { %v3045_v23 = vadd.f32 %v9322_v63, %v7536_v61  ;;  %v3036_v1 = vpop.f32.mrb[205].mxu0  ;;  %7223 = vmatpush3.bf16.xpose.msra.mxu0 %v5584_v29  ;;  %v4448_v31 = vadd.f32 %v9243_v36, %v7685_v56  ;;  %v4439_v30 = vpop.f32.mrb[95].mxu1  ;;  %v5185_v43 = vmax.f32 %v4445_v18, 0.0 }
 0x28f   : > { %v3037_v25 = vadd.f32 %v9322_v63, %v3036_v1  ;;  %v7537_v8 = vpop.f32.mrb[206].mxu0  ;;  %7790 = vmatprep.mubr.msk.bf16.mxu1 %vm1801_vm0, %v3599_v19  ;;  %7865 = vmatprep.subr.msk.bf16.mxu0 %vm1801_vm0, %v5390_v39  ;;  %v4440_v15 = vadd.f32 %v9243_v36, %v4439_v30  ;;  %v5183_v22 = vmax.f32 %v4437_v20, 0.0  ;;  %v5590_v20 = vsel %vm1801_vm0, %v9363_v9, 0 }
 0x290   : > { %v3048_v40 = vadd.f32 %v9322_v63, %v7537_v8  ;;  %v3039_v28 = vpop.f32.mrb[207].mxu0  ;;  %7791 = vmatmul.mubr.msk.bf16.gmra.mrb[200].mxu1 %vm1801_vm0, %v3600_v17  ;;  %v5186_v53 = vmax.f32 %v4448_v31, 0.0  ;;  %v3449_v38 = vmax.f32 %v3045_v23, 0.0 }
 0x291   : > { %v3040_v32 = vadd.f32 %v9322_v63, %v3039_v28  ;;  %v5184_v33 = vmax.f32 %v4440_v15, 0.0  ;;  %v3447_v45 = vmax.f32 %v3037_v25, 0.0 }
 0x292   : > { %v3450_v42 = vmax.f32 %v3048_v40, 0.0  ;;  %v9437_v44 = vpack.c.bf16 %v5186_v53, %v5185_v43 }
 0x293   : > { %v3448_v47 = vmax.f32 %v3040_v32, 0.0  ;;  %v9439_v39 = vpack.c.bf16 %v5184_v33, %v5183_v22  ;;  %v7688_v49 = vpop.f32.mrb[96].mxu1 }
 0x294   : > { %v3602_v27 = vpack.c.bf16 %v3450_v42, %v3449_v38  ;;  %v4461_v59 = vadd.f32 %v9243_v36, %v7688_v49  ;;  %v4452_v50 = vpop.f32.mrb[97].mxu1 }
 0x295   : > { %v3601_v41 = vpack.c.bf16 %v3448_v47, %v3447_v45  ;;  %v7540_v51 = vpop.f32.mrb[208].mxu0  ;;  %v4453_v54 = vadd.f32 %v9243_v36, %v4452_v50  ;;  %v7689_v24 = vpop.f32.mrb[98].mxu1 }
 0x296   : > { %v3061_v26 = vadd.f32 %v9322_v63, %v7540_v51  ;;  %v3052_v60 = vpop.f32.mrb[209].mxu0  ;;  %7225 = vmatpush3.bf16.xpose.msra.mxu0 %v5587_v52  ;;  %v4464_v57 = vadd.f32 %v9243_v36, %v7689_v24  ;;  %v4455_v35 = vpop.f32.mrb[99].mxu1  ;;  %v5189_v16 = vmax.f32 %v4461_v59, 0.0 }
 0x297   : > { %v3053_v55 = vadd.f32 %v9322_v63, %v3052_v60  ;;  %v7541_v48 = vpop.f32.mrb[210].mxu0  ;;  %7794 = vmatprep.mubr.msk.bf16.mxu1 %vm1801_vm0, %v3601_v41  ;;  %7866 = vmatprep.subr.msk.bf16.mxu0 %vm1801_vm0, %v5391_v13  ;;  %v4456_v7 = vadd.f32 %v9243_v36, %v4455_v35  ;;  %v5187_v5 = vmax.f32 %v4453_v54, 0.0  ;;  %v5593_v54 = vsel %vm1801_vm0, %v9361_v6, 0 }
 0x298   : > { %v3064_v34 = vadd.f32 %v9322_v63, %v7541_v48  ;;  %v3055_v58 = vpop.f32.mrb[211].mxu0  ;;  %7795 = vmatmul.mubr.msk.bf16.gmra.mrb[204].mxu1 %vm1801_vm0, %v3602_v27  ;;  %v5190_v2 = vmax.f32 %v4464_v57, 0.0  ;;  %v3453_v0 = vmax.f32 %v3061_v26, 0.0 }
 0x299   : > { %v3056_v4 = vadd.f32 %v9322_v63, %v3055_v58  ;;  %v5188_v37 = vmax.f32 %v4456_v7, 0.0  ;;  %v3451_v12 = vmax.f32 %v3053_v55, 0.0 }
 0x29a   : > { %v3454_v62 = vmax.f32 %v3064_v34, 0.0  ;;  %v9454_v11 = vpack.c.bf16 %v5190_v2, %v5189_v16 }
 0x29b   : > { %v3452_v14 = vmax.f32 %v3056_v4, 0.0  ;;  %v9456_v13 = vpack.c.bf16 %v5188_v37, %v5187_v5  ;;  %v7692_v17 = vpop.f32.mrb[100].mxu1 }
 0x29c   : > { %v3604_v18 = vpack.c.bf16 %v3454_v62, %v3453_v0  ;;  %v4477_v46 = vadd.f32 %v9243_v36, %v7692_v17  ;;  %v4468_v19 = vpop.f32.mrb[101].mxu1 }
 0x29d   : > { %v3603_v61 = vpack.c.bf16 %v3452_v14, %v3451_v12  ;;  %v7544_v29 = vpop.f32.mrb[212].mxu0  ;;  %v4469_v56 = vadd.f32 %v9243_v36, %v4468_v19  ;;  %v7693_v23 = vpop.f32.mrb[102].mxu1 }
 0x29e   : > { %v3077_v1 = vadd.f32 %v9322_v63, %v7544_v29  ;;  %v3068_v31 = vpop.f32.mrb[213].mxu0  ;;  %7227 = vmatpush3.bf16.xpose.msra.mxu0 %v5590_v20  ;;  %v4480_v30 = vadd.f32 %v9243_v36, %v7693_v23  ;;  %v4471_v25 = vpop.f32.mrb[103].mxu1  ;;  %v5193_v43 = vmax.f32 %v4477_v46, 0.0 }
 0x29f   : > { %v3069_v8 = vadd.f32 %v9322_v63, %v3068_v31  ;;  %v7545_v15 = vpop.f32.mrb[214].mxu0  ;;  %7798 = vmatprep.mubr.msk.bf16.mxu1 %vm1801_vm0, %v3603_v61  ;;  %7867 = vmatprep.subr.msk.bf16.mxu0 %vm1801_vm0, %v9422_v10  ;;  %v4472_v9 = vadd.f32 %v9243_v36, %v4471_v25  ;;  %v5191_v22 = vmax.f32 %v4469_v56, 0.0  ;;  %v5596_v56 = vsel %vm1801_vm0, %v9381_v21, 0 }
 0x2a0   : > { %v3080_v40 = vadd.f32 %v9322_v63, %v7545_v15  ;;  %v3071_v28 = vpop.f32.mrb[215].mxu0  ;;  %7799 = vmatmul.mubr.msk.bf16.gmra.mrb[208].mxu1 %vm1801_vm0, %v3604_v18  ;;  %v5194_v53 = vmax.f32 %v4480_v30, 0.0  ;;  %v3457_v38 = vmax.f32 %v3077_v1, 0.0 }
 0x2a1   : > { %v3072_v32 = vadd.f32 %v9322_v63, %v3071_v28  ;;  %v5192_v33 = vmax.f32 %v4472_v9, 0.0  ;;  %v3455_v47 = vmax.f32 %v3069_v8, 0.0 }
 0x2a2   : > { %v3458_v42 = vmax.f32 %v3080_v40, 0.0  ;;  %v9472_v45 = vpack.c.bf16 %v5194_v53, %v5193_v43  ;;  %v9505_v40 = vld [vmem:[%s10090_s5] ss:$0 sm:$0xff] }
 0x2a3   : > { %v3456_v49 = vmax.f32 %v3072_v32, 0.0  ;;  %v9474_v10 = vpack.c.bf16 %v5192_v33, %v5191_v22  ;;  %v7696_v27 = vpop.f32.mrb[104].mxu1 }
 0x2a4   : > { %v3606_v59 = vpack.c.bf16 %v3458_v42, %v3457_v38  ;;  %v4493_v50 = vadd.f32 %v9243_v36, %v7696_v27  ;;  %v4484_v41 = vpop.f32.mrb[105].mxu1 }
 0x2a5   : > { %v3605_v51 = vpack.c.bf16 %v3456_v49, %v3455_v47  ;;  %v7548_v52 = vpop.f32.mrb[216].mxu0  ;;  %v4485_v24 = vadd.f32 %v9243_v36, %v4484_v41  ;;  %v7697_v26 = vpop.f32.mrb[106].mxu1 }
 0x2a6   : > { %v3093_v60 = vadd.f32 %v9322_v63, %v7548_v52  ;;  %v3084_v57 = vpop.f32.mrb[217].mxu0  ;;  %7229 = vmatpush3.bf16.xpose.msra.mxu0 %v5593_v54  ;;  %v4496_v35 = vadd.f32 %v9243_v36, %v7697_v26  ;;  %v4487_v55 = vpop.f32.mrb[107].mxu1  ;;  %v5197_v16 = vmax.f32 %v4493_v50, 0.0 }
 0x2a7   : > { %v3085_v48 = vadd.f32 %v9322_v63, %v3084_v57  ;;  %v7549_v7 = vpop.f32.mrb[218].mxu0  ;;  %7802 = vmatprep.mubr.msk.bf16.mxu1 %vm1801_vm0, %v3605_v51  ;;  %7868 = vmatprep.subr.msk.bf16.mxu0 %vm1801_vm0, %v9439_v39  ;;  %v4488_v6 = vadd.f32 %v9243_v36, %v4487_v55  ;;  %v5195_v5 = vmax.f32 %v4485_v24, 0.0 }
 0x2a8   : > { %v3096_v34 = vadd.f32 %v9322_v63, %v7549_v7  ;;  %v3087_v58 = vpop.f32.mrb[219].mxu0  ;;  %7803 = vmatmul.mubr.msk.bf16.gmra.mrb[212].mxu1 %vm1801_vm0, %v3606_v59  ;;  %v5198_v2 = vmax.f32 %v4496_v35, 0.0  ;;  %v3461_v0 = vmax.f32 %v3093_v60, 0.0  ;;  %v5599_v60 = vsel %vm1801_vm0, %v9379_v3, 0 }
 0x2a9   : > { %v3088_v4 = vadd.f32 %v9322_v63, %v3087_v58  ;;  %v5196_v37 = vmax.f32 %v4488_v6, 0.0  ;;  %v3459_v14 = vmax.f32 %v3085_v48, 0.0 }
 0x2aa   : > { %v3462_v62 = vmax.f32 %v3096_v34, 0.0  ;;  %v9490_v12 = vpack.c.bf16 %v5198_v2, %v5197_v16 }
 0x2ab   : > { %v3460_v17 = vmax.f32 %v3088_v4, 0.0  ;;  %v9492_v39 = vpack.c.bf16 %v5196_v37, %v5195_v5  ;;  %v7700_v18 = vpop.f32.mrb[108].mxu1 }
 0x2ac   : > { %v3608_v46 = vpack.c.bf16 %v3462_v62, %v3461_v0  ;;  %v4509_v19 = vadd.f32 %v9243_v36, %v7700_v18  ;;  %v4500_v61 = vpop.f32.mrb[109].mxu1 }
 0x2ad   : > { %v3607_v29 = vpack.c.bf16 %v3460_v17, %v3459_v14  ;;  %v7552_v20 = vpop.f32.mrb[220].mxu0  ;;  %v4501_v23 = vadd.f32 %v9243_v36, %v4500_v61  ;;  %v7701_v1 = vpop.f32.mrb[110].mxu1 }
 0x2ae   : > { %v3109_v31 = vadd.f32 %v9322_v63, %v7552_v20  ;;  %v3100_v30 = vpop.f32.mrb[221].mxu0  ;;  %7231 = vmatpush3.bf16.xpose.msra.mxu0 %v5596_v56  ;;  %v4512_v25 = vadd.f32 %v9243_v36, %v7701_v1  ;;  %v4503_v8 = vpop.f32.mrb[111].mxu1  ;;  %v5201_v36 = vmax.f32 %v4509_v19, 0.0 }
 0x2af   : > { %v3101_v15 = vadd.f32 %v9322_v63, %v3100_v30  ;;  %v7553_v9 = vpop.f32.mrb[222].mxu0  ;;  %7806 = vmatprep.mubr.msk.bf16.mxu1 %vm1801_vm0, %v3607_v29  ;;  %v4504_v21 = vadd.f32 %v9505_v40, %v4503_v8  ;;  %7869 = vmatprep.subr.msk.bf16.mxu0 %vm1801_vm0, %v9437_v44  ;;  %v5199_v22 = vmax.f32 %v4501_v23, 0.0  ;;  %v9537_v30 = vld [vmem:[%s10091_s6] sm:$0x1] }
 0x2b0   : > { %v3112_v28 = vadd.f32 %v9322_v63, %v7553_v9  ;;  %v3103_v43 = vpop.f32.mrb[223].mxu0  ;;  %7807 = vmatmul.mubr.msk.bf16.gmra.mrb[216].mxu1 %vm1801_vm0, %v3608_v46  ;;  %v5202_v53 = vmax.f32 %v4512_v25, 0.0  ;;  %v3465_v38 = vmax.f32 %v3109_v31, 0.0 }
 0x2b1   : > { %v3104_v32 = vadd.f32 %v9322_v63, %v3103_v43  ;;  %v5200_v33 = vmax.f32 %v4504_v21, 0.0  ;;  %v3463_v49 = vmax.f32 %v3101_v15, 0.0 }
 0x2b2   : > { %v3466_v42 = vmax.f32 %v3112_v28, 0.0  ;;  %v9513_v47 = vpack.c.bf16 %v5202_v53, %v5201_v36 }
 0x2b3   : > { %v3464_v27 = vmax.f32 %v3104_v32, 0.0  ;;  %v9515_v59 = vpack.c.bf16 %v5200_v33, %v5199_v22  ;;  %v7704_v44 = vpop.f32.mrb[112].mxu1 }
 0x2b4   : > { %v3610_v50 = vpack.c.bf16 %v3466_v42, %v3465_v38  ;;  %v4525_v41 = vadd.f32 %v9505_v40, %v7704_v44  ;;  %v4516_v51 = vpop.f32.mrb[113].mxu1 }
 0x2b5   : > { %v3609_v52 = vpack.c.bf16 %v3464_v27, %v3463_v49  ;;  %v7556_v54 = vpop.f32.mrb[224].mxu0  ;;  %v4517_v24 = vadd.f32 %v9505_v40, %v4516_v51  ;;  %v7705_v26 = vpop.f32.mrb[114].mxu1 }
 0x2b6   : > { %v3125_v57 = vadd.f32 %v9322_v63, %v7556_v54  ;;  %v3116_v35 = vpop.f32.mrb[225].mxu0  ;;  %v4528_v55 = vadd.f32 %v9505_v40, %v7705_v26  ;;  %v4519_v48 = vpop.f32.mrb[115].mxu1  ;;  %7233 = vmatpush3.bf16.xpose.msra.mxu0 %v5599_v60  ;;  %v5205_v3 = vmax.f32 %v4525_v41, 0.0 }
 0x2b7   : > { %v3117_v7 = vadd.f32 %v9322_v63, %v3116_v35  ;;  %v7557_v6 = vpop.f32.mrb[226].mxu0  ;;  %7810 = vmatprep.mubr.msk.bf16.mxu1 %vm1801_vm0, %v3609_v52  ;;  %v4520_v34 = vadd.f32 %v9505_v40, %v4519_v48  ;;  %v5203_v5 = vmax.f32 %v4517_v24, 0.0 }
 0x2b8   : > { %v3128_v58 = vadd.f32 %v9322_v63, %v7557_v6  ;;  %v3119_v16 = vpop.f32.mrb[227].mxu0  ;;  %7811 = vmatmul.mubr.msk.bf16.gmra.mrb[220].mxu1 %vm1801_vm0, %v3610_v50  ;;  %v5206_v2 = vmax.f32 %v4528_v55, 0.0  ;;  %v3469_v0 = vmax.f32 %v3125_v57, 0.0 }
 0x2b9   : > { %v3120_v4 = vadd.f32 %v9322_v63, %v3119_v16  ;;  %v5204_v37 = vmax.f32 %v4520_v34, 0.0  ;;  %v3467_v17 = vmax.f32 %v3117_v7, 0.0 }
 0x2ba   : > { %v3470_v62 = vmax.f32 %v3128_v58, 0.0  ;;  %v9529_v14 = vpack.c.bf16 %v5206_v2, %v5205_v3 }
 0x2bb   : > { %v3468_v18 = vmax.f32 %v3120_v4, 0.0  ;;  %v5403_v46 = vpack.c.bf16 %v5204_v37, %v5203_v5  ;;  %v7708_v19 = vpop.f32.mrb[116].mxu1 }
 0x2bc   : > { %v3612_v61 = vpack.c.bf16 %v3470_v62, %v3469_v0  ;;  %v4541_v29 = vadd.f32 %v9505_v40, %v7708_v19  ;;  %v4532_v20 = vpop.f32.mrb[117].mxu1 }
 0x2bd   : > { %v3611_v56 = vpack.c.bf16 %v3468_v18, %v3467_v17  ;;  %v7560_v23 = vpop.f32.mrb[228].mxu0  ;;  %7870 = vmatprep.subr.msk.bf16.mxu1 %vm1801_vm0, %v5403_v46  ;;  %v4533_v1 = vadd.f32 %v9505_v40, %v4532_v20  ;;  %v7709_v31 = vpop.f32.mrb[118].mxu1  ;;  %7235 = vmatmul.mubr.msk.bf16.vlgmr.msra.gmra.mrb[4].mxu0 %vm1801_vm0, %v9537_v30 }
 0x2be   : > { %v3141_v25 = vadd.f32 %v9322_v63, %v7560_v23  ;;  %v3132_v8 = vpop.f32.mrb[229].mxu0  ;;  %v4544_v15 = vadd.f32 %v9505_v40, %v7709_v31  ;;  %v4535_v9 = vpop.f32.mrb[119].mxu1  ;;  %7270 = vmatprep.mubr.msk.bf16.mxu0 %vm1801_vm0, %v9537_v30  ;;  %v5209_v32 = vmax.f32 %v4541_v29, 0.0 }
 0x2bf   : > { %v3133_v21 = vadd.f32 %v9322_v63, %v3132_v8  ;;  %v7561_v28 = vpop.f32.mrb[230].mxu0  ;;  %7814 = vmatprep.mubr.msk.bf16.mxu1 %vm1801_vm0, %v3611_v56  ;;  %v4536_v43 = vadd.f32 %v9505_v40, %v4535_v9  ;;  %v5207_v38 = vmax.f32 %v4533_v1, 0.0 }
 0x2c0   : > { %v3144_v36 = vadd.f32 %v9322_v63, %v7561_v28  ;;  %v3135_v53 = vpop.f32.mrb[231].mxu0  ;;  %7815 = vmatmul.mubr.msk.bf16.gmra.mrb[224].mxu1 %vm1801_vm0, %v3612_v61  ;;  %v5210_v22 = vmax.f32 %v4544_v15, 0.0  ;;  %v3473_v49 = vmax.f32 %v3141_v25, 0.0 }
 0x2c1   : > { %v3136_v33 = vadd.f32 %v9322_v63, %v3135_v53  ;;  %v5208_v42 = vmax.f32 %v4536_v43, 0.0  ;;  %v3471_v50 = vmax.f32 %v3133_v21, 0.0 }
 0x2c2   : > { %v3474_v27 = vmax.f32 %v3144_v36, 0.0  ;;  %v9551_v44 = vpack.c.bf16 %v5210_v22, %v5209_v32 }
 0x2c3   : > { %v3472_v41 = vmax.f32 %v3136_v33, 0.0  ;;  %v9553_v51 = vpack.c.bf16 %v5208_v42, %v5207_v38  ;;  %v7712_v52 = vpop.f32.mrb[120].mxu1 }
 0x2c4   : > { %v3614_v54 = vpack.c.bf16 %v3474_v27, %v3473_v49  ;;  %v4557_v24 = vadd.f32 %v9505_v40, %v7712_v52  ;;  %v4548_v26 = vpop.f32.mrb[121].mxu1 }
 0x2c5   : > { %v3613_v60 = vpack.c.bf16 %v3472_v41, %v3471_v50  ;;  %v7564_v57 = vpop.f32.mrb[232].mxu0  ;;  %v4549_v35 = vadd.f32 %v9505_v40, %v4548_v26  ;;  %v7713_v55 = vpop.f32.mrb[122].mxu1 }
 0x2c6   : > { %v3157_v48 = vadd.f32 %v9322_v63, %v7564_v57  ;;  %v3148_v7 = vpop.f32.mrb[233].mxu0  ;;  %v4560_v6 = vadd.f32 %v9505_v40, %v7713_v55  ;;  %v4551_v34 = vpop.f32.mrb[123].mxu1  ;;  %v5213_v5 = vmax.f32 %v4557_v24, 0.0 }
 0x2c7   : > { %v3149_v58 = vadd.f32 %v9322_v63, %v3148_v7  ;;  %v7565_v16 = vpop.f32.mrb[234].mxu0  ;;  %7818 = vmatprep.mubr.msk.bf16.mxu1 %vm1801_vm0, %v3613_v60  ;;  %v4552_v3 = vadd.f32 %v9505_v40, %v4551_v34  ;;  %v5211_v62 = vmax.f32 %v4549_v35, 0.0 }
 0x2c8   : > { %v3160_v2 = vadd.f32 %v9322_v63, %v7565_v16  ;;  %v3151_v4 = vpop.f32.mrb[235].mxu0  ;;  %7819 = vmatmul.mubr.msk.bf16.gmra.mrb[228].mxu1 %vm1801_vm0, %v3614_v54  ;;  %v5214_v37 = vmax.f32 %v4560_v6, 0.0  ;;  %v3477_v18 = vmax.f32 %v3157_v48, 0.0 }
 0x2c9   : > { %v3152_v0 = vadd.f32 %v9322_v63, %v3151_v4  ;;  %v5212_v17 = vmax.f32 %v4552_v3, 0.0  ;;  %v3475_v61 = vmax.f32 %v3149_v58, 0.0 }
 0x2ca   : > { %v3478_v46 = vmax.f32 %v3160_v2, 0.0  ;;  %v9565_v19 = vpack.c.bf16 %v5214_v37, %v5213_v5 }
 0x2cb   : > { %v3476_v29 = vmax.f32 %v3152_v0, 0.0  ;;  %v9567_v20 = vpack.c.bf16 %v5212_v17, %v5211_v62  ;;  %v7716_v56 = vpop.f32.mrb[124].mxu1  ;;  %v9593_v17 = vld [vmem:[%s10088_s3] ss:$0 sm:$0xff] }
 0x2cc   : > { %v3616_v23 = vpack.c.bf16 %v3478_v46, %v3477_v18  ;;  %v4573_v1 = vadd.f32 %v9505_v40, %v7716_v56  ;;  %v4564_v31 = vpop.f32.mrb[125].mxu1 }
 0x2cd   : > { %v3615_v25 = vpack.c.bf16 %v3476_v29, %v3475_v61  ;;  %v7568_v8 = vpop.f32.mrb[236].mxu0  ;;  %v4565_v15 = vadd.f32 %v9505_v40, %v4564_v31  ;;  %v7717_v9 = vpop.f32.mrb[126].mxu1 }
 0x2ce   : > { %v3173_v21 = vadd.f32 %v9322_v63, %v7568_v8  ;;  %v3164_v28 = vpop.f32.mrb[237].mxu0  ;;  %v4576_v43 = vadd.f32 %v9505_v40, %v7717_v9  ;;  %v4567_v36 = vpop.f32.mrb[127].mxu1  ;;  %v5217_v42 = vmax.f32 %v4573_v1, 0.0 }
 0x2cf   : > { %v3165_v53 = vadd.f32 %v9322_v63, %v3164_v28  ;;  %v7569_v32 = vpop.f32.mrb[238].mxu0  ;;  %7822 = vmatprep.mubr.msk.bf16.mxu1 %vm1801_vm0, %v3615_v25  ;;  %v4568_v22 = vadd.f32 %v9505_v40, %v4567_v36  ;;  %v5215_v50 = vmax.f32 %v4565_v15, 0.0 }
 0x2d0   : > { %v3176_v33 = vadd.f32 %v9322_v63, %v7569_v32  ;;  %v3167_v38 = vpop.f32.mrb[239].mxu0  ;;  %7823 = vmatmul.mubr.msk.bf16.gmra.mrb[232].mxu1 %vm1801_vm0, %v3616_v23  ;;  %v5218_v49 = vmax.f32 %v4576_v43, 0.0  ;;  %v3481_v52 = vmax.f32 %v3173_v21, 0.0 }
 0x2d1   : > { %v3168_v27 = vadd.f32 %v9322_v63, %v3167_v38  ;;  %v5216_v41 = vmax.f32 %v4568_v22, 0.0  ;;  %v3479_v26 = vmax.f32 %v3165_v53, 0.0 }
 0x2d2   : > { %v3482_v54 = vmax.f32 %v3176_v33, 0.0  ;;  %v9579_v24 = vpack.c.bf16 %v5218_v49, %v5217_v42 }
 0x2d3   : > { %v3480_v60 = vmax.f32 %v3168_v27, 0.0  ;;  %v9581_v57 = vpack.c.bf16 %v5216_v41, %v5215_v50  ;;  %v7720_v35 = vpop.f32.mrb[128].mxu1 }
 0x2d4   : > { %v3618_v55 = vpack.c.bf16 %v3482_v54, %v3481_v52  ;;  %v4589_v48 = vadd.f32 %v9505_v40, %v7720_v35  ;;  %v4580_v7 = vpop.f32.mrb[129].mxu1 }
 0x2d5   : > { %v3617_v6 = vpack.c.bf16 %v3480_v60, %v3479_v26  ;;  %v7572_v34 = vpop.f32.mrb[240].mxu0  ;;  %v4581_v58 = vadd.f32 %v9505_v40, %v4580_v7  ;;  %v7721_v16 = vpop.f32.mrb[130].mxu1 }
 0x2d6   : > { %v3189_v3 = vadd.f32 %v9322_v63, %v7572_v34  ;;  %v3180_v2 = vpop.f32.mrb[241].mxu0  ;;  %v4592_v4 = vadd.f32 %v9505_v40, %v7721_v16  ;;  %v4583_v5 = vpop.f32.mrb[131].mxu1  ;;  %v5221_v61 = vmax.f32 %v4589_v48, 0.0 }
 0x2d7   : > { %v3181_v37 = vadd.f32 %v9322_v63, %v3180_v2  ;;  %v7573_v0 = vpop.f32.mrb[242].mxu0  ;;  %7826 = vmatprep.mubr.msk.bf16.mxu1 %vm1801_vm0, %v3617_v6  ;;  %v4584_v62 = vadd.f32 %v9505_v40, %v4583_v5  ;;  %v5219_v63 = vmax.f32 %v4581_v58, 0.0 }
 0x2d8   : > { %v3192_v18 = vadd.f32 %v9593_v17, %v7573_v0  ;;  %v3183_v46 = vpop.f32.mrb[243].mxu0  ;;  %7827 = vmatmul.mubr.msk.bf16.gmra.mrb[236].mxu1 %vm1801_vm0, %v3618_v55  ;;  %v5222_v29 = vmax.f32 %v4592_v4, 0.0  ;;  %v3485_v1 = vmax.f32 %v3189_v3, 0.0 }
 0x2d9   : > { %v3184_v56 = vadd.f32 %v9593_v17, %v3183_v46  ;;  %v5220_v23 = vmax.f32 %v4584_v62, 0.0  ;;  %v3483_v8 = vmax.f32 %v3181_v37, 0.0 }
 0x2da   : > { %v3486_v31 = vmax.f32 %v3192_v18, 0.0  ;;  %v9598_v25 = vpack.c.bf16 %v5222_v29, %v5221_v61 }
 0x2db   : > { %v3484_v15 = vmax.f32 %v3184_v56, 0.0  ;;  %v9600_v9 = vpack.c.bf16 %v5220_v23, %v5219_v63  ;;  %v7724_v21 = vpop.f32.mrb[132].mxu1 }
 0x2dc   : > { %v3620_v28 = vpack.c.bf16 %v3486_v31, %v3485_v1  ;;  %v4605_v43 = vadd.f32 %v9505_v40, %v7724_v21  ;;  %v4596_v36 = vpop.f32.mrb[133].mxu1 }
 0x2dd   : > { %v3619_v53 = vpack.c.bf16 %v3484_v15, %v3483_v8  ;;  %v7576_v32 = vpop.f32.mrb[244].mxu0  ;;  %v4597_v22 = vadd.f32 %v9505_v40, %v4596_v36  ;;  %v7725_v33 = vpop.f32.mrb[134].mxu1 }
 0x2de   : > { %v3205_v38 = vadd.f32 %v9593_v17, %v7576_v32  ;;  %v3196_v42 = vpop.f32.mrb[245].mxu0  ;;  %v4608_v49 = vadd.f32 %v9505_v40, %v7725_v33  ;;  %v4599_v27 = vpop.f32.mrb[135].mxu1  ;;  %v5225_v35 = vmax.f32 %v4605_v43, 0.0 }
 0x2df   : > { %v3197_v50 = vadd.f32 %v9593_v17, %v3196_v42  ;;  %v7577_v41 = vpop.f32.mrb[246].mxu0  ;;  %7830 = vmatprep.mubr.msk.bf16.mxu1 %vm1801_vm0, %v3619_v53  ;;  %v4600_v52 = vadd.f32 %v9505_v40, %v4599_v27  ;;  %v5223_v6 = vmax.f32 %v4597_v22, 0.0 }
 0x2e0   : > { %v3489_v54 = vmax.f32 %v3205_v38, 0.0  ;;  %v3208_v26 = vadd.f32 %v9593_v17, %v7577_v41  ;;  %v3199_v60 = vpop.f32.mrb[247].mxu0  ;;  %7831 = vmatmul.mubr.msk.bf16.gmra.mrb[240].mxu1 %vm1801_vm0, %v3620_v28  ;;  %v5226_v55 = vmax.f32 %v4608_v49, 0.0 }
 0x2e1   : > { %v3487_v48 = vmax.f32 %v3197_v50, 0.0  ;;  %v3200_v7 = vadd.f32 %v9593_v17, %v3199_v60  ;;  %v5224_v34 = vmax.f32 %v4600_v52, 0.0 }
 0x2e2   : > { %v3490_v58 = vmax.f32 %v3208_v26, 0.0  ;;  %v9612_v16 = vpack.c.bf16 %v5226_v55, %v5225_v35 }
 0x2e3   : > { %v3488_v3 = vmax.f32 %v3200_v7, 0.0  ;;  %v9614_v2 = vpack.c.bf16 %v5224_v34, %v5223_v6  ;;  %v7728_v4 = vpop.f32.mrb[136].mxu1 }
 0x2e4   : > { %v3622_v5 = vpack.c.bf16 %v3490_v58, %v3489_v54  ;;  %v4621_v37 = vadd.f32 %v9505_v40, %v7728_v4  ;;  %v4612_v0 = vpop.f32.mrb[137].mxu1 }
 0x2e5   : > { %v3621_v62 = vpack.c.bf16 %v3488_v3, %v3487_v48  ;;  %v7580_v18 = vpop.f32.mrb[248].mxu0  ;;  %v4613_v46 = vadd.f32 %v9505_v40, %v4612_v0  ;;  %v7729_v61 = vpop.f32.mrb[138].mxu1 }
 0x2e6   : > { %v3221_v29 = vadd.f32 %v9593_v17, %v7580_v18  ;;  %v3212_v56 = vpop.f32.mrb[249].mxu0  ;;  %v4624_v63 = vadd.f32 %v9505_v40, %v7729_v61  ;;  %v4615_v23 = vpop.f32.mrb[139].mxu1  ;;  %v5229_v43 = vmax.f32 %v4621_v37, 0.0 }
 0x2e7   : > { %v3213_v1 = vadd.f32 %v9593_v17, %v3212_v56  ;;  %v7581_v31 = vpop.f32.mrb[250].mxu0  ;;  %7834 = vmatprep.mubr.msk.bf16.mxu1 %vm1801_vm0, %v3621_v62  ;;  %v4616_v8 = vadd.f32 %v9505_v40, %v4615_v23  ;;  %v5227_v22 = vmax.f32 %v4613_v46, 0.0 }
 0x2e8   : > { %v3493_v15 = vmax.f32 %v3221_v29, 0.0  ;;  %v3224_v21 = vadd.f32 %v9593_v17, %v7581_v31  ;;  %v3215_v28 = vpop.f32.mrb[251].mxu0  ;;  %7835 = vmatmul.mubr.msk.bf16.gmra.mrb[244].mxu1 %vm1801_vm0, %v3622_v5  ;;  %v5230_v36 = vmax.f32 %v4624_v63, 0.0 }
 0x2e9   : > { %v3491_v53 = vmax.f32 %v3213_v1, 0.0  ;;  %v3216_v32 = vadd.f32 %v9593_v17, %v3215_v28  ;;  %v5228_v33 = vmax.f32 %v4616_v8, 0.0 }
 0x2ea   : > { %v3494_v38 = vmax.f32 %v3224_v21, 0.0  ;;  %v9626_v42 = vpack.c.bf16 %v5230_v36, %v5229_v43 }
 0x2eb   : > { %v3492_v49 = vmax.f32 %v3216_v32, 0.0  ;;  %v9628_v27 = vpack.c.bf16 %v5228_v33, %v5227_v22  ;;  %v7732_v50 = vpop.f32.mrb[140].mxu1 }
 0x2ec   : > { %v3624_v41 = vpack.c.bf16 %v3494_v38, %v3493_v15  ;;  %v4637_v52 = vadd.f32 %v9505_v40, %v7732_v50  ;;  %v4628_v54 = vpop.f32.mrb[141].mxu1 }
 0x2ed   : > { %v3623_v26 = vpack.c.bf16 %v3492_v49, %v3491_v53  ;;  %v7584_v60 = vpop.f32.mrb[252].mxu0  ;;  %v4629_v35 = vadd.f32 %v9505_v40, %v4628_v54  ;;  %v7733_v55 = vpop.f32.mrb[142].mxu1 }
 0x2ee   : > { %v3237_v48 = vadd.f32 %v9593_v17, %v7584_v60  ;;  %v3228_v7 = vpop.f32.mrb[253].mxu0  ;;  %v4640_v6 = vadd.f32 %v9505_v40, %v7733_v55  ;;  %v4631_v34 = vpop.f32.mrb[143].mxu1  ;;  %v5233_v62 = vmax.f32 %v4637_v52, 0.0 }
 0x2ef   : > { %v3229_v58 = vadd.f32 %v9593_v17, %v3228_v7  ;;  %v7585_v3 = vpop.f32.mrb[254].mxu0  ;;  %7838 = vmatprep.mubr.msk.bf16.mxu1 %vm1801_vm0, %v3623_v26  ;;  %v4632_v4 = vadd.f32 %v9505_v40, %v4631_v34  ;;  %v5231_v29 = vmax.f32 %v4629_v35, 0.0  ;;  %v5674_v35 = vsel %vm1801_vm0, %v9600_v9, 0 }
 0x2f0   : > { %v3497_v5 = vmax.f32 %v3237_v48, 0.0  ;;  %v3240_v37 = vadd.f32 %v9593_v17, %v7585_v3  ;;  %v3231_v0 = vpop.f32.mrb[255].mxu0  ;;  %7839 = vmatmul.mubr.msk.bf16.gmra.mrb[248].mxu1 %vm1801_vm0, %v3624_v41  ;;  %v5234_v18 = vmax.f32 %v4640_v6, 0.0 }
 0x2f1   : > { %v3495_v46 = vmax.f32 %v3229_v58, 0.0  ;;  %v3232_v61 = vadd.f32 %v9593_v17, %v3231_v0  ;;  %v5232_v56 = vmax.f32 %v4632_v4, 0.0  ;;  %v5626_v58 = vsel %vm1801_vm0, %v9456_v13, 0 }
 0x2f2   : > { %v3498_v63 = vmax.f32 %v3240_v37, 0.0  ;;  %v9640_v23 = vpack.c.bf16 %v5234_v18, %v5233_v62  ;;  %v5677_v13 = vsel %vm1801_vm0, %v9598_v25, 0 }
 0x2f3   : > { %v3496_v1 = vmax.f32 %v3232_v61, 0.0  ;;  %v9642_v31 = vpack.c.bf16 %v5232_v56, %v5231_v29  ;;  %v7736_v8 = vpop.f32.mrb[144].mxu1 }
 0x2f4   : > { %v3626_v15 = vpack.c.bf16 %v3498_v63, %v3497_v5  ;;  %v4653_v21 = vadd.f32 %v9505_v40, %v7736_v8  ;;  %v4644_v28 = vpop.f32.mrb[145].mxu1 }
 0x2f5   : > { %v3625_v43 = vpack.c.bf16 %v3496_v1, %v3495_v46  ;;  %v4645_v36 = vadd.f32 %v9505_v40, %v4644_v28  ;;  %v7737_v53 = vpop.f32.mrb[146].mxu1  ;;  %v5629_v1 = vsel %vm1801_vm0, %v9454_v11, 0 }
 0x2f6   : > { %v4656_v32 = vadd.f32 %v9505_v40, %v7737_v53  ;;  %v4647_v17 = vpop.f32.mrb[147].mxu1  ;;  %v5237_v33 = vmax.f32 %v4653_v21, 0.0 }
 0x2f7   : > { %7842 = vmatprep.mubr.msk.bf16.mxu1 %vm1801_vm0, %v3625_v43  ;;  %v4648_v22 = vadd.f32 %v9505_v40, %v4647_v17  ;;  %v5235_v49 = vmax.f32 %v4645_v36, 0.0  ;;  %v5680_v17 = vsel %vm1801_vm0, %v9614_v2, 0 }
 0x2f8   : > { %7843 = vmatmul.mubr.msk.bf16.gmra.mrb[252].mxu1 %vm1801_vm0, %v3626_v15  ;;  %v5238_v38 = vmax.f32 %v4656_v32, 0.0 }
 0x2f9   : > { %7216 = vmatprep.mubr.msk.bf16.mxu1 %vm1801_vm0, %v9537_v30  ;;  %v5236_v50 = vmax.f32 %v4648_v22, 0.0 }
 0x2fa   : > { %v5420_v41 = vpack.c.bf16 %v5238_v38, %v5237_v33 }
 0x2fb   : > { %v5419_v52 = vpack.c.bf16 %v5236_v50, %v5235_v49  ;;  %v7740_v54 = vpop.f32.mrb[148].mxu1  ;;  %v5632_v49 = vsel %vm1801_vm0, %v9474_v10, 0 }
 0x2fc   : > { %v4669_v26 = vadd.f32 %v9505_v40, %v7740_v54  ;;  %v4660_v60 = vpop.f32.mrb[149].mxu1 }
 0x2fd   : > { %7878 = vmatprep.subr.msk.bf16.mxu0 %vm1801_vm0, %v5419_v52  ;;  %v4661_v55 = vadd.f32 %v9505_v40, %v4660_v60  ;;  %v7741_v48 = vpop.f32.mrb[150].mxu1 }
 0x2fe   : > { %7255 = vmatpush3.bf16.xpose.msra.mxu0 %v5674_v35  ;;  %v4672_v7 = vadd.f32 %v9505_v40, %v7741_v48  ;;  %v4663_v6 = vpop.f32.mrb[151].mxu1  ;;  %v5241_v3 = vmax.f32 %v4669_v26, 0.0  ;;  %v5683_v48 = vsel %vm1801_vm0, %v9612_v16, 0 }
 0x2ff   : > { %7879 = vmatprep.subr.msk.bf16.mxu0 %vm1801_vm0, %v5420_v41  ;;  %v4664_v34 = vadd.f32 %v9505_v40, %v4663_v6  ;;  %v5239_v9 = vmax.f32 %v4661_v55, 0.0 }
 0x300   : > { %7217 = vmatmul.mubr.msk.bf16.vlgmr.msra.gmra.mrb[0].mxu1 %vm1801_vm0, %v9537_v30  ;;  %v5242_v4 = vmax.f32 %v4672_v7, 0.0 }
 0x301   : > { %7237 = vmatpush3.bf16.xpose.msra.mxu1 %v5626_v58  ;;  %v5240_v5 = vmax.f32 %v4664_v34, 0.0  ;;  %7252 = vmatprep.mubr.msk.bf16.mxu1 %vm1801_vm0, %v9537_v30  ;;  %v5635_v58 = vsel %vm1801_vm0, %v9472_v45, 0 }
 0x302   : > { %7871 = vmatprep.subr.msk.bf16.mxu1 %vm1801_vm0, %v9529_v14  ;;  %v5422_v37 = vpack.c.bf16 %v5242_v4, %v5241_v3 }
 0x303   : > { %v5421_v0 = vpack.c.bf16 %v5240_v5, %v5239_v9  ;;  %v7744_v62 = vpop.f32.mrb[152].mxu1 }
 0x304   : > { %v4685_v18 = vadd.f32 %v9505_v40, %v7744_v62  ;;  %v4676_v46 = vpop.f32.mrb[153].mxu1 }
 0x305   : > { %v4677_v61 = vadd.f32 %v9505_v40, %v4676_v46  ;;  %v7745_v29 = vpop.f32.mrb[154].mxu1  ;;  %v5686_v46 = vsel %vm1801_vm0, %v9628_v27, 0 }
 0x306   : > { %7257 = vmatpush3.bf16.xpose.msra.mxu0 %v5677_v13  ;;  %v4688_v56 = vadd.f32 %v9505_v40, %v7745_v29  ;;  %v4679_v63 = vpop.f32.mrb[155].mxu1  ;;  %v5245_v8 = vmax.f32 %v4685_v18, 0.0 }
 0x307   : > { %7880 = vmatprep.subr.msk.bf16.mxu0 %vm1801_vm0, %v5421_v0  ;;  %v4680_v14 = vadd.f32 %v9505_v40, %v4679_v63  ;;  %v5243_v21 = vmax.f32 %v4677_v61, 0.0 }
 0x308   : > { %v5246_v15 = vmax.f32 %v4688_v56, 0.0  ;;  %v5638_v56 = vsel %vm1801_vm0, %v9492_v39, 0 }
 0x309   : > { %7239 = vmatpush3.bf16.xpose.msra.mxu1 %v5629_v1  ;;  %v5244_v28 = vmax.f32 %v4680_v14, 0.0 }
 0x30a   : > { %7872 = vmatprep.subr.msk.bf16.mxu1 %vm1801_vm0, %v9553_v51  ;;  %v5424_v25 = vpack.c.bf16 %v5246_v15, %v5245_v8 }
 0x30b   : > { %v5423_v43 = vpack.c.bf16 %v5244_v28, %v5243_v21  ;;  %v7748_v36 = vpop.f32.mrb[156].mxu1 }
 0x30c   : > { %v4701_v53 = vadd.f32 %v9505_v40, %v7748_v36  ;;  %v4692_v32 = vpop.f32.mrb[157].mxu1 }
 0x30d   : > { %v4693_v22 = vadd.f32 %v9505_v40, %v4692_v32  ;;  %v7749_v11 = vpop.f32.mrb[158].mxu1 }
 0x30e   : > { %7259 = vmatpush3.bf16.xpose.msra.mxu0 %v5680_v17  ;;  %v4704_v33 = vadd.f32 %v9505_v40, %v7749_v11  ;;  %v4695_v38 = vpop.f32.mrb[159].mxu1  ;;  %v5249_v50 = vmax.f32 %v4701_v53, 0.0  ;;  %v5641_v17 = vsel %vm1801_vm0, %v9490_v12, 0 }
 0x30f   : > { %7881 = vmatprep.subr.msk.bf16.mxu0 %vm1801_vm0, %v5422_v37  ;;  %v4696_v51 = vadd.f32 %v9505_v40, %v4695_v38  ;;  %v5247_v52 = vmax.f32 %v4693_v22, 0.0 }
 0x310   : > { %v5250_v41 = vmax.f32 %v4704_v33, 0.0 }
 0x311   : > { %7241 = vmatpush3.bf16.xpose.msra.mxu1 %v5632_v49  ;;  %v5248_v54 = vmax.f32 %v4696_v51, 0.0 }
 0x312   : > { %7873 = vmatprep.subr.msk.bf16.mxu1 %vm1801_vm0, %v9551_v44  ;;  %v9690_v2 = vpack.c.bf16 %v5250_v41, %v5249_v50 }
 0x313   : > { %v5425_v26 = vpack.c.bf16 %v5248_v54, %v5247_v52  ;;  %v7752_v60 = vpop.f32.mrb[160].mxu1  ;;  %v5692_v52 = vsel %vm1801_vm0, %v9642_v31, 0 }
 0x314   : > { %v4717_v35 = vadd.f32 %v9505_v40, %v7752_v60  ;;  %v4708_v55 = vpop.f32.mrb[161].mxu1 }
 0x315   : > { %v4709_v10 = vadd.f32 %v9505_v40, %v4708_v55  ;;  %v7753_v7 = vpop.f32.mrb[162].mxu1 }
 0x316   : > { %7261 = vmatpush3.bf16.xpose.msra.mxu0 %v5683_v48  ;;  %v4720_v6 = vadd.f32 %v9505_v40, %v7753_v7  ;;  %v4711_v34 = vpop.f32.mrb[163].mxu1  ;;  %v5253_v3 = vmax.f32 %v4717_v35, 0.0  ;;  %v5644_v35 = vsel %vm1801_vm0, %v9515_v59, 0  ;;  %v5695_v59 = vsel %vm1801_vm0, %v9640_v23, 0 }
 0x317   : > { %7882 = vmatprep.subr.msk.bf16.mxu0 %vm1801_vm0, %v5423_v43  ;;  %v4712_v44 = vadd.f32 %v9505_v40, %v4711_v34  ;;  %v5251_v9 = vmax.f32 %v4709_v10, 0.0  ;;  %v5689_v43 = vsel %vm1801_vm0, %v9626_v42, 0 }
 0x318   : > { %v5254_v4 = vmax.f32 %v4720_v6, 0.0 }
 0x319   : > { %7243 = vmatpush3.bf16.xpose.msra.mxu1 %v5635_v58  ;;  %v5252_v5 = vmax.f32 %v4712_v44, 0.0 }
 0x31a   : > { %7874 = vmatprep.subr.msk.bf16.mxu1 %vm1801_vm0, %v9567_v20  ;;  %v9703_v16 = vpack.c.bf16 %v5254_v4, %v5253_v3 }
 0x31b   : > { %v9705_v37 = vpack.c.bf16 %v5252_v5, %v5251_v9  ;;  %v7756_v0 = vpop.f32.mrb[164].mxu1  ;;  %v5647_v5 = vsel %vm1801_vm0, %v9513_v47, 0 }
 0x31c   : > { %v4733_v62 = vadd.f32 %v9505_v40, %v7756_v0  ;;  %v4724_v18 = vpop.f32.mrb[165].mxu1 }
 0x31d   : > { %v4725_v45 = vadd.f32 %v9505_v40, %v4724_v18  ;;  %v7757_v13 = vpop.f32.mrb[166].mxu1 }
 0x31e   : > { %7263 = vmatpush3.bf16.xpose.msra.mxu0 %v5686_v46  ;;  %v4736_v61 = vadd.f32 %v9505_v40, %v7757_v13  ;;  %v4727_v29 = vpop.f32.mrb[167].mxu1  ;;  %v5257_v63 = vmax.f32 %v4733_v62, 0.0 }
 0x31f   : > { %7883 = vmatprep.subr.msk.bf16.mxu0 %vm1801_vm0, %v5424_v25  ;;  %v4728_v20 = vadd.f32 %v9505_v40, %v4727_v29  ;;  %v5255_v1 = vmax.f32 %v4725_v45, 0.0 }
 0x320   : > { %v5258_v14 = vmax.f32 %v4736_v61, 0.0 }
 0x321   : > { %7245 = vmatpush3.bf16.xpose.msra.mxu1 %v5638_v56  ;;  %v5256_v8 = vmax.f32 %v4728_v20, 0.0 }
 0x322   : > { %7875 = vmatprep.subr.msk.bf16.mxu1 %vm1801_vm0, %v9565_v19  ;;  %v9718_v27 = vpack.c.bf16 %v5258_v14, %v5257_v63 }
 0x323   : > { %v9720_v15 = vpack.c.bf16 %v5256_v8, %v5255_v1  ;;  %v7760_v21 = vpop.f32.mrb[168].mxu1  ;;  %v5722_v1 = vsel %vm1801_vm0, %v9705_v37, 0 }
 0x324   : > { %v4749_v28 = vadd.f32 %v9505_v40, %v7760_v21  ;;  %v4740_v25 = vpop.f32.mrb[169].mxu1 }
 0x325   : > { %v4741_v39 = vadd.f32 %v9505_v40, %v4740_v25  ;;  %v7761_v36 = vpop.f32.mrb[170].mxu1 }
 0x326   : > { %7265 = vmatpush3.bf16.xpose.msra.mxu0 %v5689_v43  ;;  %v4752_v53 = vadd.f32 %v9505_v40, %v7761_v36  ;;  %v4743_v32 = vpop.f32.mrb[171].mxu1  ;;  %v5261_v22 = vmax.f32 %v4749_v28, 0.0 }
 0x327   : > { %7884 = vmatprep.subr.msk.bf16.mxu0 %vm1801_vm0, %v5425_v26  ;;  %v4744_v19 = vadd.f32 %v9505_v40, %v4743_v32  ;;  %v5259_v33 = vmax.f32 %v4741_v39, 0.0 }
 0x328   : > { %v5262_v11 = vmax.f32 %v4752_v53, 0.0 }
 0x329   : > { %7247 = vmatpush3.bf16.xpose.msra.mxu1 %v5641_v17  ;;  %v5260_v38 = vmax.f32 %v4744_v19, 0.0 }
 0x32a   : > { %7876 = vmatprep.subr.msk.bf16.mxu1 %vm1801_vm0, %v9581_v57  ;;  %v9733_v42 = vpack.c.bf16 %v5262_v11, %v5261_v22 }
 0x32b   : > { %v9735_v51 = vpack.c.bf16 %v5260_v38, %v5259_v33  ;;  %v7764_v49 = vpop.f32.mrb[172].mxu1  ;;  %v5725_v33 = vsel %vm1801_vm0, %v9703_v16, 0 }
 0x32c   : > { %v4765_v50 = vadd.f32 %v9505_v40, %v7764_v49  ;;  %v4756_v41 = vpop.f32.mrb[173].mxu1 }
 0x32d   : > { %v4757_v12 = vadd.f32 %v9505_v40, %v4756_v41  ;;  %v7765_v54 = vpop.f32.mrb[174].mxu1 }
 0x32e   : > { %7267 = vmatpush3.bf16.xpose.msra.mxu0 %v5692_v52  ;;  %v4768_v26 = vadd.f32 %v9505_v40, %v7765_v54  ;;  %v4759_v60 = vpop.f32.mrb[175].mxu1  ;;  %v5265_v55 = vmax.f32 %v4765_v50, 0.0 }
 0x32f   : > { %v4760_v57 = vadd.f32 %v9505_v40, %v4759_v60  ;;  %7885 = vmatprep.subr.msk.bf16.mxu0 %vm1801_vm0, %v9690_v2  ;;  %v5263_v10 = vmax.f32 %v4757_v12, 0.0 }
 0x330   : > { %v5266_v48 = vmax.f32 %v4768_v26, 0.0 }
 0x331   : > { %7249 = vmatpush3.bf16.xpose.msra.mxu1 %v5644_v35  ;;  %v5264_v31 = vmax.f32 %v4760_v57, 0.0 }
 0x332   : > { %7877 = vmatprep.subr.msk.bf16.mxu1 %vm1801_vm0, %v9579_v24  ;;  %v9749_v7 = vpack.c.bf16 %v5266_v48, %v5265_v55  ;;  %v5728_v48 = vsel %vm1801_vm0, %v9720_v15, 0 }
 0x333   : > { %v9751_v6 = vpack.c.bf16 %v5264_v31, %v5263_v10  ;;  %v7768_v34 = vpop.f32.mrb[176].mxu1 }
 0x334   : > { %v4781_v44 = vadd.f32 %v9505_v40, %v7768_v34  ;;  %v4772_v58 = vpop.f32.mrb[177].mxu1 }
 0x335   : > { %v4773_v2 = vadd.f32 %v9505_v40, %v4772_v58  ;;  %v7769_v3 = vpop.f32.mrb[178].mxu1 }
 0x336   : > { %v4784_v4 = vadd.f32 %v9505_v40, %v7769_v3  ;;  %v4775_v9 = vpop.f32.mrb[179].mxu1  ;;  %7269 = vmatpush3.bf16.xpose.msra.mxu0 %v5695_v59  ;;  %v5269_v0 = vmax.f32 %v4781_v44, 0.0 }
 0x337   : > { %v4776_v24 = vadd.f32 %v9505_v40, %v4775_v9  ;;  %v5267_v18 = vmax.f32 %v4773_v2, 0.0 }
 0x338   : > { %v5270_v62 = vmax.f32 %v4784_v4, 0.0 }
 0x339   : > { %7251 = vmatpush3.bf16.xpose.msra.mxu1 %v5647_v5  ;;  %v5268_v46 = vmax.f32 %v4776_v24, 0.0 }
 0x33a   : > { %v5436_v45 = vpack.c.bf16 %v5270_v62, %v5269_v0  ;;  %v5731_v62 = vsel %vm1801_vm0, %v9718_v27, 0 }
 0x33b   : > { %v5435_v13 = vpack.c.bf16 %v5268_v46, %v5267_v18  ;;  %v7772_v61 = vpop.f32.mrb[180].mxu1 }
 0x33c   : > { %v4797_v29 = vadd.f32 %v9505_v40, %v7772_v61  ;;  %v4788_v23 = vpop.f32.mrb[181].mxu1 }
 0x33d   : > { %7886 = vmatprep.subr.msk.bf16.mxu1 %vm1801_vm0, %v5435_v13  ;;  %v4789_v20 = vadd.f32 %v9505_v40, %v4788_v23  ;;  %v7773_v56 = vpop.f32.mrb[182].mxu1  ;;  %7271 = vmatmul.mubr.msk.bf16.vlgmr.msra.gmra.mrb[8].mxu0 %vm1801_vm0, %v9537_v30 }
 0x33e   : > { %v4800_v47 = vadd.f32 %v9505_v40, %v7773_v56  ;;  %v4791_v63 = vpop.f32.mrb[183].mxu1  ;;  %7306 = vmatprep.mubr.msk.bf16.mxu0 %vm1801_vm0, %v9537_v30  ;;  %v5273_v8 = vmax.f32 %v4797_v29, 0.0 }
 0x33f   : > { %v4792_v14 = vadd.f32 %v9505_v40, %v4791_v63  ;;  %v5271_v28 = vmax.f32 %v4789_v20, 0.0  ;;  %v9807_v20 = vld [vmem:[%s10090_s5] ss:$0 sm:$0xff] }
 0x340   : > { %7253 = vmatmul.mubr.msk.bf16.vlgmr.msra.gmra.mrb[4].mxu1 %vm1801_vm0, %v9537_v30  ;;  %v5274_v21 = vmax.f32 %v4800_v47, 0.0 }
 0x341   : > { %7273 = vmatpush3.bf16.xpose.msra.mxu1 %v5722_v1  ;;  %v5272_v25 = vmax.f32 %v4792_v14, 0.0  ;;  %7288 = vmatprep.mubr.msk.bf16.mxu1 %vm1801_vm0, %v9537_v30 }
 0x342   : > { %v5438_v43 = vpack.c.bf16 %v5274_v21, %v5273_v8  ;;  %7887 = vmatprep.subr.msk.bf16.mxu1 %vm1801_vm0, %v5436_v45  ;;  %v5734_v8 = vsel %vm1801_vm0, %v9735_v51, 0 }
 0x343   : > { %v5437_v39 = vpack.c.bf16 %v5272_v25, %v5271_v28  ;;  %v7776_v36 = vpop.f32.mrb[184].mxu1 }
 0x344   : > { %v4813_v53 = vadd.f32 %v9505_v40, %v7776_v36  ;;  %v4804_v32 = vpop.f32.mrb[185].mxu1 }
 0x345   : > { %v4805_v19 = vadd.f32 %v9505_v40, %v4804_v32  ;;  %v7777_v17 = vpop.f32.mrb[186].mxu1 }
 0x346   : > { %v4816_v37 = vadd.f32 %v9505_v40, %v7777_v17  ;;  %v4807_v22 = vpop.f32.mrb[187].mxu1  ;;  %v5277_v30 = vmax.f32 %v4813_v53, 0.0 }
 0x347   : > { %v4808_v11 = vadd.f32 %v9505_v40, %v4807_v22  ;;  %v5275_v49 = vmax.f32 %v4805_v19, 0.0 }
 0x348   : > { %v5278_v38 = vmax.f32 %v4816_v37, 0.0 }
 0x349   : > { %7275 = vmatpush3.bf16.xpose.msra.mxu1 %v5725_v33  ;;  %v5276_v50 = vmax.f32 %v4808_v11, 0.0  ;;  %v5737_v33 = vsel %vm1801_vm0, %v9733_v42, 0 }
 0x34a   : > { %7888 = vmatprep.subr.msk.bf16.mxu1 %vm1801_vm0, %v5437_v39  ;;  %v5440_v41 = vpack.c.bf16 %v5278_v38, %v5277_v30 }
 0x34b   : > { %v5439_v52 = vpack.c.bf16 %v5276_v50, %v5275_v49  ;;  %v7780_v12 = vpop.f32.mrb[188].mxu1 }
 0x34c   : > { %v4829_v54 = vadd.f32 %v9505_v40, %v7780_v12  ;;  %v4820_v26 = vpop.f32.mrb[189].mxu1 }
 0x34d   : > { %v4821_v60 = vadd.f32 %v9505_v40, %v4820_v26  ;;  %v7781_v57 = vpop.f32.mrb[190].mxu1 }
 0x34e   : > { %v4832_v35 = vadd.f32 %v9505_v40, %v7781_v57  ;;  %v4823_v55 = vpop.f32.mrb[191].mxu1  ;;  %v5281_v10 = vmax.f32 %v4829_v54, 0.0 }
 0x34f   : > { %v4824_v16 = vadd.f32 %v9505_v40, %v4823_v55  ;;  %v5279_v34 = vmax.f32 %v4821_v60, 0.0 }
 0x350   : > { %v5282_v31 = vmax.f32 %v4832_v35, 0.0 }
 0x351   : > { %7277 = vmatpush3.bf16.xpose.msra.mxu1 %v5728_v48  ;;  %v5280_v44 = vmax.f32 %v4824_v16, 0.0  ;;  %v5740_v16 = vsel %vm1801_vm0, %v9751_v6, 0 }
 0x352   : > { %7889 = vmatprep.subr.msk.bf16.mxu1 %vm1801_vm0, %v5438_v43  ;;  %v9791_v58 = vpack.c.bf16 %v5282_v31, %v5281_v10 }
 0x353   : > { %v5441_v2 = vpack.c.bf16 %v5280_v44, %v5279_v34  ;;  %v7784_v3 = vpop.f32.mrb[192].mxu1 }
 0x354   : > { %v4845_v59 = vadd.f32 %v9505_v40, %v7784_v3  ;;  %v4836_v4 = vpop.f32.mrb[193].mxu1 }
 0x355   : > { %v4837_v9 = vadd.f32 %v9505_v40, %v4836_v4  ;;  %v7785_v24 = vpop.f32.mrb[194].mxu1 }
 0x356   : > { %v4848_v5 = vadd.f32 %v9505_v40, %v7785_v24  ;;  %v4839_v15 = vpop.f32.mrb[195].mxu1  ;;  %v5285_v18 = vmax.f32 %v4845_v59, 0.0 }
 0x357   : > { %v4840_v0 = vadd.f32 %v9505_v40, %v4839_v15  ;;  %v5283_v45 = vmax.f32 %v4837_v9, 0.0 }
 0x358   : > { %v5286_v46 = vmax.f32 %v4848_v5, 0.0 }
 0x359   : > { %7279 = vmatpush3.bf16.xpose.msra.mxu1 %v5731_v62  ;;  %v5284_v13 = vmax.f32 %v4840_v0, 0.0 }
 0x35a   : > { %7890 = vmatprep.subr.msk.bf16.mxu1 %vm1801_vm0, %v5439_v52  ;;  %v9800_v61 = vpack.c.bf16 %v5286_v46, %v5285_v18  ;;  %v5743_v18 = vsel %vm1801_vm0, %v9749_v7, 0 }
 0x35b   : > { %v9802_v29 = vpack.c.bf16 %v5284_v13, %v5283_v45  ;;  %v7788_v23 = vpop.f32.mrb[196].mxu1 }
 0x35c   : > { %v4861_v40 = vadd.f32 %v9807_v20, %v7788_v23  ;;  %v4852_v27 = vpop.f32.mrb[197].mxu1 }
 0x35d   : > { %v4853_v56 = vadd.f32 %v9807_v20, %v4852_v27  ;;  %v7789_v47 = vpop.f32.mrb[198].mxu1 }
 0x35e   : > { %v4864_v63 = vadd.f32 %v9807_v20, %v7789_v47  ;;  %v4855_v14 = vpop.f32.mrb[199].mxu1  ;;  %v5289_v21 = vmax.f32 %v4861_v40, 0.0 }
 0x35f   : > { %v4856_v1 = vadd.f32 %v9807_v20, %v4855_v14  ;;  %v5287_v25 = vmax.f32 %v4853_v56, 0.0  ;;  %v5770_v56 = vsel %vm1801_vm0, %v9802_v29, 0  ;;  %v5899_v14 = vpop.f32.mrb[0].mxu0  ;;  %v9860_v29 = vld [vmem:[%s10091_s6] sm:$0x1] }
 0x360   : > { %v5290_v28 = vmax.f32 %v4864_v63, 0.0 }
 0x361   : > { %7281 = vmatpush3.bf16.xpose.msra.mxu1 %v5734_v8  ;;  %v5288_v43 = vmax.f32 %v4856_v1, 0.0  ;;  %v5901_v8 = vpop.f32.mrb[1].mxu0 }
 0x362   : > { %7891 = vmatprep.subr.msk.bf16.mxu1 %vm1801_vm0, %v5440_v41  ;;  %v9816_v39 = vpack.c.bf16 %v5290_v28, %v5289_v21  ;;  %v5903_v28 = vpop.f32.mrb[2].mxu0 }
 0x363   : > { %v9818_v36 = vpack.c.bf16 %v5288_v43, %v5287_v25  ;;  %v7792_v53 = vpop.f32.mrb[200].mxu1 }
 0x364   : > { %v4877_v32 = vadd.f32 %v9807_v20, %v7792_v53  ;;  %v4868_v19 = vpop.f32.mrb[201].mxu1  ;;  %v5904_v53 = vpop.f32.mrb[3].mxu0 }
 0x365   : > { %v4869_v17 = vadd.f32 %v9807_v20, %v4868_v19  ;;  %v7793_v37 = vpop.f32.mrb[202].mxu1 }
 0x366   : > { %v4880_v51 = vadd.f32 %v9807_v20, %v7793_v37  ;;  %v4871_v22 = vpop.f32.mrb[203].mxu1  ;;  %v5293_v30 = vmax.f32 %v4877_v32, 0.0 }
 0x367   : > { %v4872_v11 = vadd.f32 %v9807_v20, %v4871_v22  ;;  %v5291_v49 = vmax.f32 %v4869_v17, 0.0 }
 0x368   : > { %v5294_v38 = vmax.f32 %v4880_v51, 0.0 }
 0x369   : > { %7283 = vmatpush3.bf16.xpose.msra.mxu1 %v5737_v33  ;;  %v5292_v50 = vmax.f32 %v4872_v11, 0.0  ;;  %v5773_v33 = vsel %vm1801_vm0, %v9800_v61, 0 }
 0x36a   : > { %v9826_v41 = vpack.c.bf16 %v5294_v38, %v5293_v30  ;;  %7892 = vmatprep.subr.msk.bf16.mxu1 %vm1801_vm0, %v5441_v2 }
 0x36b   : > { %v9829_v52 = vpack.c.bf16 %v5292_v50, %v5291_v49  ;;  %v7796_v12 = vpop.f32.mrb[204].mxu1  ;;  %v9870_v49 = vstv %s5476_s27  ;;  %s8033_s27 = scalar_lea.vmem %s8032_s7, 512 }
 0x36c   : > { %v4893_v54 = vadd.f32 %v9807_v20, %v7796_v12  ;;  %v4884_v26 = vpop.f32.mrb[205].mxu1  ;;  %v5902_v61 = vadd.f32 %v5901_v8, %v9870_v49  ;;  %p8035_p1 = scmp.lt.s32.totalorder %s8033_s27, %s8027_s26 }
 0x36d   : > { %v4885_v60 = vadd.f32 %v9807_v20, %v4884_v26  ;;  %v7797_v57 = vpop.f32.mrb[206].mxu1 }
 0x36e   : > { %v4896_v42 = vadd.f32 %v9807_v20, %v7797_v57  ;;  %v4887_v35 = vpop.f32.mrb[207].mxu1  ;;  %v5297_v48 = vmax.f32 %v4893_v54, 0.0  ;;  %v5900_v57 = vadd.f32 %v5899_v14, %v9870_v49  ;;  %p8036_p2 = por %p8035_p1, %p8034_p0 }
 0x36f   : > { %v4888_v55 = vadd.f32 %v9807_v20, %v4887_v35  ;;  %v5295_v31 = vmax.f32 %v4885_v60, 0.0 }
 0x370   : > { %v5298_v10 = vmax.f32 %v4896_v42, 0.0  ;;  %p8037_p3 = pnand %p8036_p2, %p8030_p13 }
 0x371   : > { %7285 = vmatpush3.bf16.xpose.msra.mxu1 %v5740_v16  ;;  %v5296_v34 = vmax.f32 %v4888_v55, 0.0 }
 0x372   : > { %v9837_v44 = vpack.c.bf16 %v5298_v10, %v5297_v48  ;;  %7893 = vmatprep.subr.msk.bf16.mxu1 %vm1801_vm0, %v9791_v58 }
 0x373   : > { %v9841_v2 = vpack.c.bf16 %v5296_v34, %v5295_v31  ;;  %v7800_v3 = vpop.f32.mrb[208].mxu1  ;;  %v6900_v34 = vmul.f32 -1.442695, %v5900_v57 }
 0x374   : > { %v4909_v59 = vadd.f32 %v9807_v20, %v7800_v3  ;;  %v4900_v4 = vpop.f32.mrb[209].mxu1  ;;  %v5776_v3 = vsel %vm1801_vm0, %v9818_v36, 0 }
 0x375   : > { %v4901_v9 = vadd.f32 %v9807_v20, %v4900_v4  ;;  %v7801_v24 = vpop.f32.mrb[210].mxu1  ;;  %7954 = vpow2.f32 %v6900_v34 }
 0x376   : > { %v4912_v6 = vadd.f32 %v9807_v20, %v7801_v24  ;;  %v4903_v5 = vpop.f32.mrb[211].mxu1  ;;  %v5301_v0 = vmax.f32 %v4909_v59, 0.0 }
 0x377   : > { %v4904_v15 = vadd.f32 %v9807_v20, %v4903_v5  ;;  %v5299_v58 = vmax.f32 %v4901_v9, 0.0  ;;  %v6901_v9 = vmul.f32 -1.442695, %v5902_v61 }
 0x378   : > { %v5302_v62 = vmax.f32 %v4912_v6, 0.0 }
 0x379   : > { %v5300_v46 = vmax.f32 %v4904_v15, 0.0  ;;  %7287 = vmatpush3.bf16.xpose.msra.mxu1 %v5743_v18  ;;  %7956 = vpow2.f32 %v6901_v9 }
 0x37a   : > { %v5452_v45 = vpack.c.bf16 %v5302_v62, %v5301_v0 }
 0x37b   : > { %v5451_v13 = vpack.c.bf16 %v5300_v46, %v5299_v58  ;;  %v7804_v23 = vpop.f32.mrb[212].mxu1 }
 0x37c   : > { %v4925_v40 = vadd.f32 %v9807_v20, %v7804_v23  ;;  %v4916_v27 = vpop.f32.mrb[213].mxu1 }
 0x37d   : > { %7894 = vmatprep.subr.msk.bf16.mxu0 %vm1801_vm0, %v5451_v13  ;;  %v4917_v47 = vadd.f32 %v9807_v20, %v4916_v27  ;;  %v7805_v63 = vpop.f32.mrb[214].mxu1 }
 0x37e   : > { %7291 = vmatpush3.bf16.xpose.msra.mxu0 %v5770_v56  ;;  %v4928_v7 = vadd.f32 %v9807_v20, %v7805_v63  ;;  %v4919_v1 = vpop.f32.mrb[215].mxu1  ;;  %v5305_v25 = vmax.f32 %v4925_v40, 0.0 }
 0x37f   : > { %7895 = vmatprep.subr.msk.bf16.mxu0 %vm1801_vm0, %v5452_v45  ;;  %v4920_v21 = vadd.f32 %v9807_v20, %v4919_v1  ;;  %v5303_v32 = vmax.f32 %v4917_v47, 0.0  ;;  %v5779_v47 = vsel %vm1801_vm0, %v9816_v39, 0 }
 0x380   : > { %v5306_v43 = vmax.f32 %v4928_v7, 0.0  ;;  %7289 = vmatmul.mubr.msk.bf16.vlgmr.msra.gmra.mrb[8].mxu1 %vm1801_vm0, %v9860_v29 }
 0x381   : > { %v5304_v19 = vmax.f32 %v4920_v21, 0.0  ;;  %7324 = vmatprep.mubr.msk.bf16.mxu1 %vm1801_vm0, %v9860_v29 }
 0x382   : > { %v5454_v17 = vpack.c.bf16 %v5306_v43, %v5305_v25 }
 0x383   : > { %v5453_v37 = vpack.c.bf16 %v5304_v19, %v5303_v32  ;;  %v7808_v51 = vpop.f32.mrb[216].mxu1 }
 0x384   : > { %v4941_v22 = vadd.f32 %v9807_v20, %v7808_v51  ;;  %v4932_v11 = vpop.f32.mrb[217].mxu1 }
 0x385   : > { %v4933_v30 = vadd.f32 %v9807_v20, %v4932_v11  ;;  %v7809_v38 = vpop.f32.mrb[218].mxu1 }
 0x386   : > { %7293 = vmatpush3.bf16.xpose.msra.mxu0 %v5773_v33  ;;  %v4944_v50 = vadd.f32 %v9807_v20, %v7809_v38  ;;  %v4935_v12 = vpop.f32.mrb[219].mxu1  ;;  %v5309_v26 = vmax.f32 %v4941_v22, 0.0  ;;  %v5782_v38 = vsel %vm1801_vm0, %v9829_v52, 0 }
 0x387   : > { %7896 = vmatprep.subr.msk.bf16.mxu0 %vm1801_vm0, %v5453_v37  ;;  %v4936_v54 = vadd.f32 %v9807_v20, %v4935_v12  ;;  %v5307_v42 = vmax.f32 %v4933_v30, 0.0 }
 0x388   : > { %v5310_v60 = vmax.f32 %v4944_v50, 0.0 }
 0x389   : > { %v5308_v35 = vmax.f32 %v4936_v54, 0.0 }
 0x38a   : > { %v9877_v55 = vpack.c.bf16 %v5310_v60, %v5309_v26 }
 0x38b   : > { %v5455_v16 = vpack.c.bf16 %v5308_v35, %v5307_v42  ;;  %v7812_v48 = vpop.f32.mrb[220].mxu1 }
 0x38c   : > { %v4957_v10 = vadd.f32 %v9807_v20, %v7812_v48  ;;  %v4948_v31 = vpop.f32.mrb[221].mxu1 }
 0x38d   : > { %v4949_v59 = vadd.f32 %v9807_v20, %v4948_v31  ;;  %v7813_v4 = vpop.f32.mrb[222].mxu1 }
 0x38e   : > { %7295 = vmatpush3.bf16.xpose.msra.mxu0 %v5776_v3  ;;  %v4960_v24 = vadd.f32 %v9807_v20, %v7813_v4  ;;  %v4951_v6 = vpop.f32.mrb[223].mxu1  ;;  %v5313_v15 = vmax.f32 %v4957_v10, 0.0 }
 0x38f   : > { %7897 = vmatprep.subr.msk.bf16.mxu0 %vm1801_vm0, %v5454_v17  ;;  %v4952_v5 = vadd.f32 %v9807_v20, %v4951_v6  ;;  %v5311_v18 = vmax.f32 %v4949_v59, 0.0  ;;  %v7955_v17 = vpop.eup %7954 }
 0x390   : > { %v5314_v0 = vmax.f32 %v4960_v24, 0.0  ;;  %v5981_v62 = vpop.f32.mrb[4].mxu0  ;;  %v7957_v51 = vpop.eup %7956  ;;  %v6241_v54 = vadd.f32 1.0, %v7955_v17  ;;  %v5785_v24 = vsel %vm1801_vm0, %v9826_v41, 0 }
 0x391   : > { %v5312_v58 = vmax.f32 %v4952_v5, 0.0  ;;  %v5982_v36 = vadd.f32 %v5981_v62, %v9870_v49  ;;  %v5983_v56 = vpop.f32.mrb[5].mxu0  ;;  %v6242_v57 = vadd.f32 1.0, %v7957_v51 }
 0x392   : > { %v9887_v46 = vpack.c.bf16 %v5314_v0, %v5313_v15  ;;  %v5984_v7 = vadd.f32 %v5983_v56, %v9870_v49  ;;  %v5985_v1 = vpop.f32.mrb[6].mxu0 }
 0x393   : > { %v9889_v45 = vpack.c.bf16 %v5312_v58, %v5311_v18  ;;  %v7816_v13 = vpop.f32.mrb[224].mxu1  ;;  %v6904_v23 = vmul.f32 -1.442695, %v5982_v36  ;;  %v5986_v28 = vpop.f32.mrb[7].mxu0 }
 0x394   : > { %v4973_v40 = vadd.f32 %v9807_v20, %v7816_v13  ;;  %v4964_v27 = vpop.f32.mrb[225].mxu1  ;;  %v6905_v43 = vmul.f32 -1.442695, %v5984_v7 }
 0x395   : > { %v4965_v63 = vadd.f32 %v9807_v20, %v4964_v27  ;;  %v7817_v14 = vpop.f32.mrb[226].mxu1  ;;  %7958 = vpow2.f32 %v6904_v23 }
 0x396   : > { %7297 = vmatpush3.bf16.xpose.msra.mxu0 %v5779_v47  ;;  %v4976_v8 = vadd.f32 %v9807_v20, %v7817_v14  ;;  %v4967_v21 = vpop.f32.mrb[227].mxu1  ;;  %v5317_v53 = vmax.f32 %v4973_v40, 0.0  ;;  %7960 = vpow2.f32 %v6905_v43 }
 0x397   : > { %7898 = vmatprep.subr.msk.bf16.mxu0 %vm1801_vm0, %v5455_v16  ;;  %v4968_v25 = vadd.f32 %v9807_v20, %v4967_v21  ;;  %v5315_v39 = vmax.f32 %v4965_v63, 0.0  ;;  %7962 = vrcp.f32 %v6241_v54 }
 0x398   : > { %v5318_v32 = vmax.f32 %v4976_v8, 0.0  ;;  %7964 = vrcp.f32 %v6242_v57 }
 0x399   : > { %v5316_v19 = vmax.f32 %v4968_v25, 0.0 }
 0x39a   : > { %v9899_v37 = vpack.c.bf16 %v5318_v32, %v5317_v53 }
 0x39b   : > { %v9901_v22 = vpack.c.bf16 %v5316_v19, %v5315_v39  ;;  %v7820_v11 = vpop.f32.mrb[228].mxu1 }
 0x39c   : > { %v4989_v33 = vadd.f32 %v9807_v20, %v7820_v11  ;;  %v4980_v30 = vpop.f32.mrb[229].mxu1 }
 0x39d   : > { %v4981_v50 = vadd.f32 %v9807_v20, %v4980_v30  ;;  %v7821_v12 = vpop.f32.mrb[230].mxu1 }
 0x39e   : > { %7299 = vmatpush3.bf16.xpose.msra.mxu0 %v5782_v38  ;;  %v4992_v26 = vadd.f32 %v9807_v20, %v7821_v12  ;;  %v4983_v60 = vpop.f32.mrb[231].mxu1  ;;  %v5321_v35 = vmax.f32 %v4989_v33, 0.0 }
 0x39f   : > { %7899 = vmatprep.subr.msk.bf16.mxu0 %vm1801_vm0, %v9877_v55  ;;  %v4984_v42 = vadd.f32 %v9807_v20, %v4983_v60  ;;  %v7959_v16 = vpop.eup %7958  ;;  %v5319_v48 = vmax.f32 %v4981_v50, 0.0  ;;  %v5791_v50 = vsel %vm1801_vm0, %v9837_v44, 0  ;;  %v5818_v44 = vsel %vm1801_vm0, %v9901_v22, 0 }
 0x3a0   : > { %v5322_v61 = vmax.f32 %v4992_v26, 0.0  ;;  %v6245_v31 = vadd.f32 1.0, %v7959_v16  ;;  %v7961_v34 = vpop.eup %7960 }
 0x3a1   : > { %v5320_v10 = vmax.f32 %v4984_v42, 0.0  ;;  %v6246_v55 = vadd.f32 1.0, %v7961_v34  ;;  %v9925_v41 = vpop.eup %7962 }
 0x3a2   : > { %v9911_v52 = vpack.c.bf16 %v5322_v61, %v5321_v35  ;;  %7966 = vrcp.f32 %v6245_v31  ;;  %v9929_v56 = vpop.eup %7964 }
 0x3a3   : > { %v9913_v3 = vpack.c.bf16 %v5320_v10, %v5319_v48  ;;  %v7824_v59 = vpop.f32.mrb[232].mxu1  ;;  %7968 = vrcp.f32 %v6246_v55  ;;  %v6305_v25 = vcombine.low %v9925_v41, %v9929_v56 }
 0x3a4   : > { %v5005_v4 = vadd.f32 %v9807_v20, %v7824_v59  ;;  %v4996_v9 = vpop.f32.mrb[233].mxu1 }
 0x3a5   : > { %v4997_v6 = vadd.f32 %v9807_v20, %v4996_v9  ;;  %v7825_v5 = vpop.f32.mrb[234].mxu1 }
 0x3a6   : > { %7301 = vmatpush3.bf16.xpose.msra.mxu0 %v5785_v24  ;;  %v5008_v15 = vadd.f32 %v9807_v20, %v7825_v5  ;;  %v4999_v0 = vpop.f32.mrb[235].mxu1  ;;  %v5325_v18 = vmax.f32 %v5005_v4, 0.0 }
 0x3a7   : > { %7900 = vmatprep.subr.msk.bf16.mxu0 %vm1801_vm0, %v9889_v45  ;;  %v5000_v62 = vadd.f32 %v9807_v20, %v4999_v0  ;;  %v5323_v36 = vmax.f32 %v4997_v6, 0.0  ;;  %v5788_v45 = vsel %vm1801_vm0, %v9841_v2, 0 }
 0x3a8   : > { %v5326_v58 = vmax.f32 %v5008_v15, 0.0 }
 0x3a9   : > { %v5324_v13 = vmax.f32 %v5000_v62, 0.0 }
 0x3aa   : > { %v9923_v23 = vpack.c.bf16 %v5326_v58, %v5325_v18 }
 0x3ab   : > { %v9927_v40 = vpack.c.bf16 %v5324_v13, %v5323_v36  ;;  %v7828_v27 = vpop.f32.mrb[236].mxu1  ;;  %v5821_v36 = vsel %vm1801_vm0, %v9899_v37, 0 }
 0x3ac   : > { %v5021_v47 = vadd.f32 %v9807_v20, %v7828_v27  ;;  %v5012_v63 = vpop.f32.mrb[237].mxu1  ;;  %v9935_v1 = vpop.eup %7966 }
 0x3ad   : > { %v5013_v14 = vadd.f32 %v9807_v20, %v5012_v63  ;;  %v7829_v7 = vpop.f32.mrb[238].mxu1  ;;  %v9943_v43 = vpop.eup %7968 }
 0x3ae   : > { %7303 = vmatpush3.bf16.xpose.msra.mxu0 %v5788_v45  ;;  %v5024_v8 = vadd.f32 %v9807_v20, %v7829_v7  ;;  %v5015_v21 = vpop.f32.mrb[239].mxu1  ;;  %v5329_v2 = vmax.f32 %v5021_v47, 0.0  ;;  %v6307_v19 = vcombine.low %v9935_v1, %v9943_v43 }
 0x3af   : > { %v5016_v28 = vadd.f32 %v9807_v20, %v5015_v21  ;;  %7901 = vmatprep.subr.msk.bf16.mxu0 %vm1801_vm0, %v9887_v46  ;;  %v5327_v32 = vmax.f32 %v5013_v14, 0.0 }
 0x3b0   : > { %v5330_v53 = vmax.f32 %v5024_v8, 0.0 }
 0x3b1   : > { %v5328_v39 = vmax.f32 %v5016_v28, 0.0 }
 0x3b2   : > { %v9947_v17 = vpack.c.bf16 %v5330_v53, %v5329_v2 }
 0x3b3   : > { %v9949_v51 = vpack.c.bf16 %v5328_v39, %v5327_v32  ;;  %v7832_v11 = vpop.f32.mrb[240].mxu1  ;;  %v5824_v39 = vsel %vm1801_vm0, %v9913_v3, 0 }
 0x3b4   : > { %v5037_v33 = vadd.f32 %v9807_v20, %v7832_v11  ;;  %v5028_v46 = vpop.f32.mrb[241].mxu1 }
 0x3b5   : > { %v5029_v30 = vadd.f32 %v9807_v20, %v5028_v46  ;;  %v7833_v38 = vpop.f32.mrb[242].mxu1 }
 0x3b6   : > { %v5040_v12 = vadd.f32 %v9807_v20, %v7833_v38  ;;  %v5031_v54 = vpop.f32.mrb[243].mxu1  ;;  %7305 = vmatpush3.bf16.xpose.msra.mxu0 %v5791_v50  ;;  %v5333_v60 = vmax.f32 %v5037_v33, 0.0 }
 0x3b7   : > { %v5032_v26 = vadd.f32 %v9807_v20, %v5031_v54  ;;  %v5331_v42 = vmax.f32 %v5029_v30, 0.0 }
 0x3b8   : > { %v5334_v57 = vmax.f32 %v5040_v12, 0.0 }
 0x3b9   : > { %v5332_v35 = vmax.f32 %v5032_v26, 0.0 }
 0x3ba   : > { %v5468_v61 = vpack.c.bf16 %v5334_v57, %v5333_v60 }
 0x3bb   : > { %v5467_v16 = vpack.c.bf16 %v5332_v35, %v5331_v42  ;;  %v7836_v48 = vpop.f32.mrb[244].mxu1 }
 0x3bc   : > { %v5053_v10 = vadd.f32 %v9807_v20, %v7836_v48  ;;  %v5044_v31 = vpop.f32.mrb[245].mxu1 }
 0x3bd   : > { %7902 = vmatprep.subr.msk.bf16.mxu1 %vm1801_vm0, %v5467_v16  ;;  %v5045_v34 = vadd.f32 %v9807_v20, %v5044_v31  ;;  %v7837_v59 = vpop.f32.mrb[246].mxu1  ;;  %7307 = vmatmul.mubr.msk.bf16.vlgmr.msra.gmra.mrb[12].mxu0 %vm1801_vm0, %v9860_v29 }
 0x3be   : > { %7309 = vmatpush3.bf16.xpose.msra.mxu1 %v5818_v44  ;;  %v5337_v4 = vmax.f32 %v5053_v10, 0.0  ;;  %v5056_v9 = vadd.f32 %v9807_v20, %v7837_v59  ;;  %v5047_v55 = vpop.f32.mrb[247].mxu1  ;;  %v5830_v44 = vsel %vm1801_vm0, %v9927_v40, 0 }
 0x3bf   : > { %v5335_v24 = vmax.f32 %v5045_v34, 0.0  ;;  %7903 = vmatprep.subr.msk.bf16.mxu1 %vm1801_vm0, %v5468_v61  ;;  %v5048_v6 = vadd.f32 %v9807_v20, %v5047_v55  ;;  %v5827_v61 = vsel %vm1801_vm0, %v9911_v52, 0  ;;  %v8091_v55 = vmov 1966171168  }
 0x3c0   : > { %v5338_v5 = vmax.f32 %v5056_v9, 0.0  ;;  %v5833_v9 = vsel %vm1801_vm0, %v9923_v23, 0 }
 0x3c1   : > { %v5336_v15 = vmax.f32 %v5048_v6, 0.0  ;;  %v6312_v6 = vlaneseq }
 0x3c2   : > { %v5470_v0 = vpack.c.bf16 %v5338_v5, %v5337_v4 }
 0x3c3   : > { %v5469_v22 = vpack.c.bf16 %v5336_v15, %v5335_v24  ;;  %v7840_v62 = vpop.f32.mrb[248].mxu1  ;;  %v6310_v24 = vunpack.c.l.s4 %v8091_v55  ;;  %v6313_v40 = vshrl.u32 %v6312_v6, 7  ;;  %v5836_v15 = vsel %vm1801_vm0, %v9949_v51, 0 }
 0x3c4   : > { %v5069_v18 = vadd.f32 %v9807_v20, %v7840_v62  ;;  %v5060_v58 = vpop.f32.mrb[249].mxu1 }
 0x3c5   : > { %v5061_v13 = vadd.f32 %v9807_v20, %v5060_v58  ;;  %v7841_v27 = vpop.f32.mrb[250].mxu1  ;;  %v6311_v5 = vunpack.c.0.s8 %v6310_v24 }
 0x3c6   : > { %7311 = vmatpush3.bf16.xpose.msra.mxu1 %v5821_v36  ;;  %v5341_v47 = vmax.f32 %v5069_v18, 0.0  ;;  %v5072_v63 = vadd.f32 %v9807_v20, %v7841_v27  ;;  %v5063_v45 = vpop.f32.mrb[251].mxu1  ;;  %v5839_v36 = vsel %vm1801_vm0, %v9947_v17, 0 }
 0x3c7   : > { %7904 = vmatprep.subr.msk.bf16.mxu1 %vm1801_vm0, %v5469_v22  ;;  %v5339_v14 = vmax.f32 %v5061_v13, 0.0  ;;  %v5064_v7 = vadd.f32 %v9807_v20, %v5063_v45 }
 0x3c8   : > { %v5342_v8 = vmax.f32 %v5072_v63, 0.0 }
 0x3c9   : > { %v5340_v21 = vmax.f32 %v5064_v7, 0.0 }
 0x3ca   : > { %v5472_v28 = vpack.c.bf16 %v5342_v8, %v5341_v47 }
 0x3cb   : > { %v5471_v2 = vpack.c.bf16 %v5340_v21, %v5339_v14  ;;  %v7844_v53 = vpop.f32.mrb[252].mxu1 }
 0x3cc   : > { %v5085_v37 = vadd.f32 %v9807_v20, %v7844_v53  ;;  %v5076_v32 = vpop.f32.mrb[253].mxu1 }
 0x3cd   : > { %v5077_v11 = vadd.f32 %v9807_v20, %v5076_v32  ;;  %v7845_v33 = vpop.f32.mrb[254].mxu1 }
 0x3ce   : > { %7313 = vmatpush3.bf16.xpose.msra.mxu1 %v5824_v39  ;;  %v5345_v46 = vmax.f32 %v5085_v37, 0.0  ;;  %v5088_v30 = vadd.f32 %v9807_v20, %v7845_v33  ;;  %v5079_v38 = vpop.f32.mrb[255].mxu1 }
 0x3cf   : > { %7905 = vmatprep.subr.msk.bf16.mxu1 %vm1801_vm0, %v5470_v0  ;;  %v5343_v50 = vmax.f32 %v5077_v11, 0.0  ;;  %v5080_v12 = vadd.f32 %v9807_v20, %v5079_v38  ;;  %v9994_v0 = vsub.s32 %v6311_v5, %v6313_v40 }
 0x3d0   : > { %v5346_v54 = vmax.f32 %v5088_v30, 0.0 }
 0x3d1   : > { %v5344_v26 = vmax.f32 %v5080_v12, 0.0  ;;  %v6315_v18 = vrot.slane %v6305_v25, %v9994_v0 }
 0x3d2   : > { %v5474_v60 = vpack.c.bf16 %v5346_v54, %v5345_v46 }
 0x3d3   : > { %v5473_v57 = vpack.c.bf16 %v5344_v26, %v5343_v50  ;;  %v5940_v42 = vpop.f32.mrb[0].mxu1 }
 0x3d4   : > { %v5941_v3 = vadd.f32 %v5940_v42, %v9870_v49  ;;  %v5942_v35 = vpop.f32.mrb[1].mxu1 }
 0x3d5   : > { %v5943_v16 = vadd.f32 %v5942_v35, %v9870_v49  ;;  %v5944_v48 = vpop.f32.mrb[2].mxu1 }
 0x3d6   : > { %7315 = vmatpush3.bf16.xpose.msra.mxu1 %v5827_v61  ;;  %v6902_v10 = vmul.f32 -1.442695, %v5941_v3  ;;  %v5945_v31 = vpop.f32.mrb[3].mxu1 }
 0x3d7   : > { %7906 = vmatprep.subr.msk.bf16.mxu1 %vm1801_vm0, %v5471_v2  ;;  %v6903_v20 = vmul.f32 -1.442695, %v5943_v16 }
 0x3d8   : > { %7970 = vpow2.f32 %v6902_v10 }
 0x3d9   : > { %7972 = vpow2.f32 %v6903_v20 }
 0x3de   : > { %7317 = vmatpush3.bf16.xpose.msra.mxu1 %v5830_v44 }
 0x3df   : > { %7907 = vmatprep.subr.msk.bf16.mxu1 %vm1801_vm0, %v5472_v28 }
 0x3e2   : > { %v7971_v34 = vpop.eup %7970 }
 0x3e3   : > { %v7973_v59 = vpop.eup %7972  ;;  %v6243_v52 = vadd.f32 1.0, %v7971_v34 }
 0x3e4   : > { %v6244_v4 = vadd.f32 1.0, %v7973_v59 }
 0x3e5   : > { %7974 = vrcp.f32 %v6243_v52 }
 0x3e6   : > { %7319 = vmatpush3.bf16.xpose.msra.mxu1 %v5833_v9  ;;  %7976 = vrcp.f32 %v6244_v4 }
 0x3e7   : > { %7908 = vmatprep.subr.msk.bf16.mxu1 %vm1801_vm0, %v5473_v57  ;;  %v6329_v57 = vrot.slane %v6307_v19, %v9994_v0 }
 0x3ee   : > { %7321 = vmatpush3.bf16.xpose.msra.mxu1 %v5836_v15 }
 0x3ef   : > { %v7975_v22 = vpop.eup %7974  ;;  %7909 = vmatprep.subr.msk.bf16.mxu1 %vm1801_vm0, %v5474_v60 }
 0x3f0   : > { %v7977_v23 = vpop.eup %7976 }
 0x3f1   : > { %v6306_v62 = vcombine.low %v7975_v22, %v7977_v23 }
 0x3f3   : > { %v6322_v58 = vrot.slane %v6306_v62, %v9994_v0 }
 0x3f5   : > { %v6337_v13 = vcombine.low %v6315_v18, %v6322_v58 }
 0x3f6   : > { %7323 = vmatpush3.bf16.xpose.msra.mxu1 %v5839_v36 }
 0x3f7   : > { %v6345_v35 = vrot.slane %v6337_v13, %v9994_v0 }
 0x3fd   : > { %7325 = vmatmul.mubr.msk.bf16.vlgmr.msra.gmra.mrb[12].mxu1 %vm1801_vm0, %v9860_v29 }
 0x410   : > { %v6063_v51 = vpop.f32.mrb[8].mxu0 }
 0x411   : > { %v6064_v27 = vadd.f32 %v6063_v51, %v9870_v49  ;;  %v6065_v47 = vpop.f32.mrb[9].mxu0 }
 0x412   : > { %v6066_v63 = vadd.f32 %v6065_v47, %v9870_v49  ;;  %v6067_v45 = vpop.f32.mrb[10].mxu0 }
 0x413   : > { %v6022_v14 = vpop.f32.mrb[4].mxu1  ;;  %v6908_v41 = vmul.f32 -1.442695, %v6064_v27  ;;  %v6068_v56 = vpop.f32.mrb[11].mxu0 }
 0x414   : > { %v6023_v25 = vadd.f32 %v6022_v14, %v9870_v49  ;;  %v6024_v7 = vpop.f32.mrb[5].mxu1  ;;  %v6909_v8 = vmul.f32 -1.442695, %v6066_v63 }
 0x415   : > { %v6025_v17 = vadd.f32 %v6024_v7, %v9870_v49  ;;  %v6026_v21 = vpop.f32.mrb[6].mxu1  ;;  %7978 = vpow2.f32 %v6908_v41 }
 0x416   : > { %v6906_v28 = vmul.f32 -1.442695, %v6023_v25  ;;  %v6027_v29 = vpop.f32.mrb[7].mxu1  ;;  %7980 = vpow2.f32 %v6909_v8 }
 0x417   : > { %v6907_v2 = vmul.f32 -1.442695, %v6025_v17 }
 0x418   : > { %7982 = vpow2.f32 %v6906_v28 }
 0x419   : > { %7984 = vpow2.f32 %v6907_v2 }
 0x41f   : > { %v7979_v53 = vpop.eup %7978 }
 0x420   : > { %v7981_v37 = vpop.eup %7980  ;;  %v6249_v32 = vadd.f32 1.0, %v7979_v53 }
 0x421   : > { %v6250_v39 = vadd.f32 1.0, %v7981_v37 }
 0x422   : > { %v7983_v11 = vpop.eup %7982  ;;  %7986 = vrcp.f32 %v6249_v32 }
 0x423   : > { %v7985_v33 = vpop.eup %7984  ;;  %v6247_v46 = vadd.f32 1.0, %v7983_v11  ;;  %7988 = vrcp.f32 %v6250_v39 }
 0x424   : > { %v6248_v30 = vadd.f32 1.0, %v7985_v33 }
 0x425   : > { %7990 = vrcp.f32 %v6247_v46 }
 0x426   : > { %7992 = vrcp.f32 %v6248_v30 }
 0x42c   : > { %v7987_v38 = vpop.eup %7986 }
 0x42d   : > { %v7989_v50 = vpop.eup %7988 }
 0x42e   : > { %v6354_v54 = vcombine.low %v7987_v38, %v7989_v50 }
 0x42f   : > { %v7991_v12 = vpop.eup %7990 }
 0x430   : > { %v7993_v26 = vpop.eup %7992  ;;  %v6364_v6 = vrot.slane %v6354_v54, %v9994_v0 }
 0x431   : > { %v6308_v60 = vcombine.low %v7991_v12, %v7993_v26 }
 0x433   : > { %v6336_v42 = vrot.slane %v6308_v60, %v9994_v0 }
 0x435   : > { %v6338_v3 = vcombine.low %v6329_v57, %v6336_v42 }
 0x437   : > { %v6352_v61 = vrot.slane %v6338_v3, %v9994_v0 }
 0x439   : > { %v6353_v16 = vcombine.low %v6345_v35, %v6352_v61 }
 0x43b   : > { %6405 = vst [vmem:[%s10020_s19] sm:$0xff] %v6353_v16 }
 0x453   : > { %v6104_v48 = vpop.f32.mrb[8].mxu1 }
 0x454   : > { %v6105_v10 = vadd.f32 %v6104_v48, %v9870_v49  ;;  %v6106_v1 = vpop.f32.mrb[9].mxu1 }
 0x455   : > { %v6107_v43 = vadd.f32 %v6106_v1, %v9870_v49  ;;  %v6108_v19 = vpop.f32.mrb[10].mxu1 }
 0x456   : > { %v6910_v31 = vmul.f32 -1.442695, %v6105_v10  ;;  %v6109_v20 = vpop.f32.mrb[11].mxu1 }
 0x457   : > { %v6911_v44 = vmul.f32 -1.442695, %v6107_v43 }
 0x458   : > { %7994 = vpow2.f32 %v6910_v31 }
 0x459   : > { %7996 = vpow2.f32 %v6911_v44 }
 0x462   : > { %v7995_v34 = vpop.eup %7994 }
 0x463   : > { %v7997_v59 = vpop.eup %7996  ;;  %v6251_v52 = vadd.f32 1.0, %v7995_v34 }
 0x464   : > { %v6252_v4 = vadd.f32 1.0, %v7997_v59 }
 0x465   : > { %7998 = vrcp.f32 %v6251_v52 }
 0x466   : > { %8000 = vrcp.f32 %v6252_v4 }
 0x46f   : > { %v7999_v9 = vpop.eup %7998 }
 0x470   : > { %v8001_v55 = vpop.eup %8000 }
 0x471   : > { %v6355_v24 = vcombine.low %v7999_v9, %v8001_v55 }
 0x473   : > { %v6371_v5 = vrot.slane %v6355_v24, %v9994_v0 }
 0x475   : > { %v6386_v40 = vcombine.low %v6364_v6, %v6371_v5 }
 0x477   : > { %v6394_v38 = vrot.slane %v6386_v40, %v9994_v0 }
 0x490   : > { %v6145_v15 = vpop.f32.mrb[12].mxu0 }
 0x491   : > { %v6146_v22 = vadd.f32 %v6145_v15, %v9870_v49  ;;  %v6147_v23 = vpop.f32.mrb[13].mxu0 }
 0x492   : > { %v6148_v62 = vadd.f32 %v6147_v23, %v9870_v49  ;;  %v6149_v18 = vpop.f32.mrb[14].mxu0 }
 0x493   : > { %v6912_v58 = vmul.f32 -1.442695, %v6146_v22  ;;  %v6150_v36 = vpop.f32.mrb[15].mxu0 }
 0x494   : > { %v6913_v13 = vmul.f32 -1.442695, %v6148_v62 }
 0x495   : > { %8002 = vpow2.f32 %v6912_v58 }
 0x496   : > { %8004 = vpow2.f32 %v6913_v13 }
 0x49f   : > { %v8003_v51 = vpop.eup %8002 }
 0x4a0   : > { %v8005_v27 = vpop.eup %8004  ;;  %v6253_v47 = vadd.f32 1.0, %v8003_v51 }
 0x4a1   : > { %v6254_v63 = vadd.f32 1.0, %v8005_v27 }
 0x4a2   : > { %8006 = vrcp.f32 %v6253_v47 }
 0x4a3   : > { %8008 = vrcp.f32 %v6254_v63 }
 0x4ac   : > { %v8007_v45 = vpop.eup %8006 }
 0x4ad   : > { %v8009_v14 = vpop.eup %8008 }
 0x4ae   : > { %v6356_v41 = vcombine.low %v8007_v45, %v8009_v14 }
 0x4b0   : > { %v6378_v33 = vrot.slane %v6356_v41, %v9994_v0 }
 0x4d0   : > { %v6186_v56 = vpop.f32.mrb[12].mxu1 }
 0x4d1   : > { %v6187_v25 = vadd.f32 %v6186_v56, %v9870_v49  ;;  %v6188_v7 = vpop.f32.mrb[13].mxu1 }
 0x4d2   : > { %v6189_v8 = vadd.f32 %v6188_v7, %v9870_v49  ;;  %v6190_v17 = vpop.f32.mrb[14].mxu1 }
 0x4d3   : > { %v6914_v21 = vmul.f32 -1.442695, %v6187_v25  ;;  %v6191_v28 = vpop.f32.mrb[15].mxu1 }
 0x4d4   : > { %v6915_v29 = vmul.f32 -1.442695, %v6189_v8 }
 0x4d5   : > { %8010 = vpow2.f32 %v6914_v21 }
 0x4d6   : > { %8012 = vpow2.f32 %v6915_v29 }
 0x4df   : > { %v8011_v2 = vpop.eup %8010 }
 0x4e0   : > { %v8013_v53 = vpop.eup %8012  ;;  %v6255_v37 = vadd.f32 1.0, %v8011_v2 }
 0x4e1   : > { %v6256_v32 = vadd.f32 1.0, %v8013_v53 }
 0x4e2   : > { %8014 = vrcp.f32 %v6255_v37 }
 0x4e3   : > { %8016 = vrcp.f32 %v6256_v32 }
 0x4ec   : > { %v8015_v39 = vpop.eup %8014 }
 0x4ed   : > { %v8017_v11 = vpop.eup %8016 }
 0x4ee   : > { %v6357_v49 = vcombine.low %v8015_v39, %v8017_v11 }
 0x4f0   : > { %v6385_v46 = vrot.slane %v6357_v49, %v9994_v0 }
 0x4f2   : > { %v6387_v30 = vcombine.low %v6378_v33, %v6385_v46 }
 0x4f4   : > { %v6401_v50 = vrot.slane %v6387_v30, %v9994_v0 }
 0x4f6   : > { %v6402_v12 = vcombine.low %v6394_v38, %v6401_v50 }
 0x4f8   : > { %6406 = vst [vmem:[%s10020_s19 + $0x8] sm:$0xff] %v6402_v12 }
 0x4f9   : > { %8040 = shalt.err (!%p8037_p3)
}
 0x4fa   : > { %s8041_s20 = scalar_lea.hbm %s10040_s24, 256  ;;  %s8045_s14 = scalar_lea.hbm %s10093_s8, 512 }
 0x4fb   : > { %p8042_p4 = scmp.ne.s32.totalorder %s10040_s24, %s8041_s20  ;;  %p8046_p9 = scmp.lt.u32.totalorder %s10040_s24, %s10093_s8 }
 0x4fc   : > { %p8047_p10 = scmp.lt.u32.totalorder %s8045_s14, %s8041_s20  ;;  %p8049_p12 = scmp.lt.u32.totalorder %s8041_s20, %s10040_s24 }
 0x4fd   : > { %p8043_p7 = pnand %p8042_p4, %p8176_p5 }
 0x4fe   : > { %p8048_p11 = por %p8047_p10, %p8046_p9 }
 0x4ff   : > { %p8044_p8 = pneg %p8043_p7 }
 0x500   : > { %p8050_p13 = por %p8049_p12, %p8048_p11 }
 0x502   : > { %p8051_p0 = pnand %p8050_p13, %p8044_p8 }
 0x504   : > { %8054 = shalt.err (!%p8051_p0)
}
 0x505   : > { %7910 = dma.vmem_to_hbm [thread:$0]  (%p8176_p5), %s10042_s21, 256, %s10040_s24, %s6408_s25  }
 0x506 PF: > { %p7916_p1 = scmp.ge.s32.totalorder %s8089_s10, 2  ;;  %s6434_s22 = sand.u32 1, %s8077_s29  }
 0x507   : > { %s6435_s23 = scalar_lea.sflag [#allocation4], %s6434_s22 }
 0x508   : > { %p7913_p2 = pnand %p7916_p1, %p8180_p6 }
 0x50a   : > { %8072 = dma.done.wait (!%p7913_p2), %s6435_s23, 256  }
 0x50b   : > { %8074 = vsyncadd (!%p7913_p2), %s6435_s23, 4294967040  ;;  %p19_p3 = scmp.ge.s32.totalorder %s8164_s12, 4   ;;  %s10096_s29 = smov %s8081_s30 }
 0x50c   : > { %s10097_s30 = smov %s8085_s9  ;;  %s10098_s9 = smov %s8174_s15 }
 0x50d   : > { %s10099_s10 = smov %s8164_s12  ;;  %21 = sbr.rel (!%p19_p3) target bundleno = 5 (0x5), region = 90 }
 0x514   :  { %6440 = vsyncpa [#allocation4], 1 }
 0x515   :  { %6442 = vsyncpa [#allocation4 + $0x1], 1 }

</bundles_post_ra>
